<compile_context>
chip_gen: v6e
topology: v6e:2x2x1
jax: 0.10.0
libtpu: 0.0.40
codegen_flags: <defaults>
</compile_context>

<pallas_src>
import functools

import jax
import jax.numpy as jnp
from jax.experimental import pallas as pl
from jax.experimental.pallas import tpu as pltpu

P2_K = 1.0          # p2_loss_weight_k
P2_GAMMA = 0.5      # p2_loss_weight_gamma (rsqrt form used)


# ----------------------------- Pallas kernel -------------------------------

def _unet_loss_kernel(p_ref, w1_ref, cond_ref, w2t_ref, b2_ref, noise_ref,
                      out_ref, flat_ref, *, H, W):
    """Fused per-image UNet forward + squared-error reduction.

    p_ref    : (H*W, 9*C)       bf16  im2col patches of the noisy image
    w1_ref   : (9*C, Ch)        bf16  conv1 weights (resident)
    cond_ref : (1, Ch)          f32   b1 + time-emb + text-emb for this image
    w2t_ref  : (9, Cp, Ch)      bf16  conv2 weights, transposed + channel-padded
    b2_ref   : (Cp, 1)          f32   conv2 bias (channel-padded)
    noise_ref: (Cp, H*W)        f32   noise target, channel-major (lane-dense)
    out_ref  : (1, 1)           f32   sum_{c,h,w} (pred - noise)^2
    flat_ref : (3, (H+2)*W, Ch) bf16  scratch: dx-shifted zero-padded copies of h
    """
    HW = H * W
    Ch = w1_ref.shape[1]

    # ---- conv1 (3x3 via im2col patches) + conditioning + SiLU (f32 epilogue) ---
    z = jnp.dot(p_ref[...], w1_ref[...], preferred_element_type=jnp.float32)
    z = z + cond_ref[...]                                   # (HW, Ch) + (1, Ch)
    h = (z * jax.nn.sigmoid(z)).astype(jnp.bfloat16)        # SiLU -> bf16

    # ---- build the 3 dx-shifted, zero-padded flattened copies of h -------------
    # flat_dx[r*W + u, :] == hpad[r, u + dx, :] with hpad = 1-pixel zero-padded h,
    # so conv2 tap (dy, dx) is the 16-row-aligned slice flat_dx[dy*W : dy*W + HW].
    zero_halo = jnp.zeros((W, Ch), jnp.bfloat16)

    flat_ref[1, 0:W, :] = zero_halo                          # dx = 1: [0s ; h ; 0s]
    flat_ref[1, W:W + HW, :] = h
    flat_ref[1, W + HW:, :] = zero_halo

    col = jax.lax.broadcasted_iota(jnp.int32, (HW, 1), 0) % W    # x coordinate

    v0 = flat_ref[1, W - 1:W - 1 + HW, :]                    # flat_1 shifted by -1
    flat_ref[0, 0:W, :] = zero_halo                          # dx = 0
    flat_ref[0, W:W + HW, :] = jnp.where(col == 0, 0.0, v0)
    flat_ref[0, W + HW:, :] = zero_halo

    v2 = flat_ref[1, W + 1:W + 1 + HW, :]                    # flat_1 shifted by +1
    flat_ref[2, 0:W, :] = zero_halo                          # dx = 2
    flat_ref[2, W:W + HW, :] = jnp.where(col == W - 1, 0.0, v2)
    flat_ref[2, W + HW:, :] = zero_halo

    # ---- conv2: 9 shifted taps, lane-dense (Cp, HW) register accumulation ------
    trans_b = (((1,), (1,)), ((), ()))                       # contract Ch with Ch
    acc = None
    for dy in range(3):
        for dx in range(3):
            k = dy * 3 + dx
            patch = flat_ref[dx, dy * W:dy * W + HW, :]      # (HW, Ch) aligned view
            t = jax.lax.dot_general(w2t_ref[k], patch, trans_b,
                                    preferred_element_type=jnp.float32)
            acc = t if acc is None else acc + t              # (Cp, HW) f32, in regs

    diff = acc + b2_ref[...] - noise_ref[...]                # (Cp, HW) f32
    row = jnp.sum(diff * diff, axis=1, keepdims=True)        # lane reduction
    out_ref[...] = jnp.sum(row, axis=0, keepdims=True)       # (1, 1) SSE


def unet_sse(p, w1, cond, w2t, b2, noise_t, H, W):
    """Per-image sum of squared errors of (conv3x3(SiLU(conv3x3(x)+cond))+b2 - noise)."""
    B, HW, KC = p.shape
    Ch = w1.shape[1]
    Cp = w2t.shape[1]
    HpW = (H + 2) * W
    kernel = functools.partial(_unet_loss_kernel, H=H, W=W)
    out = pl.pallas_call(
        kernel,
        out_shape=jax.ShapeDtypeStruct((B, 1, 1), jnp.float32),
        grid=(B,),
        in_specs=[
            pl.BlockSpec((None, HW, KC), lambda b: (b, 0, 0)),    # patches (per image)
            pl.BlockSpec((KC, Ch), lambda b: (0, 0)),             # W1 (resident)
            pl.BlockSpec((None, 1, Ch), lambda b: (b, 0, 0)),     # cond (per image)
            pl.BlockSpec((9, Cp, Ch), lambda b: (0, 0, 0)),       # W2^T (resident)
            pl.BlockSpec((Cp, 1), lambda b: (0, 0)),              # b2 (resident)
            pl.BlockSpec((None, Cp, HW), lambda b: (b, 0, 0)),    # noise target
        ],
        out_specs=pl.BlockSpec((None, 1, 1), lambda b: (b, 0, 0)),
        scratch_shapes=[pltpu.VMEM((3, HpW, Ch), jnp.bfloat16)],
        compiler_params=pltpu.CompilerParams(
            dimension_semantics=("parallel",),
            vmem_limit_bytes=32 * 1024 * 1024),
    )(p, w1, cond, w2t, b2, noise_t)
    return out[:, 0, 0]


# ------------------------------ JAX glue ------------------------------------

def cosine_log_snr(t, s=0.008, eps=1e-5):
    # Imagen cosine noise schedule in continuous time (log-SNR parameterization).
    c = jnp.cos((t + s) / (1.0 + s) * jnp.pi * 0.5)
    return -jnp.log(jnp.maximum(c ** -2 - 1.0, eps))


def time_features(log_snr, n_freq=8):
    freqs = 2.0 ** jnp.arange(n_freq, dtype=jnp.float32)
    ang = log_snr[:, None] * freqs[None, :]
    return jnp.concatenate([jnp.sin(ang), jnp.cos(ang)], axis=-1)    # (B, 2*n_freq)


def conditioning(params, log_snr, text_embeds, text_mask):
    # TODO(synk): stands in for TextEncoderT5Based pooling + the UNet cond MLPs.
    t_emb = jnp.dot(time_features(log_snr), params["W_time"])        # (B, Ch)
    msum = jnp.maximum(text_mask.sum(axis=1, keepdims=True), 1.0)
    pooled = (text_embeds * text_mask[..., None]).sum(axis=1) / msum  # (B, Dt)
    txt_emb = jnp.dot(pooled, params["W_text"])                       # (B, Ch)
    return params["b1"][None, :] + t_emb + txt_emb                    # (B, Ch)


def im2col3x3(x):
    # x: (B, H, W, C) -> (B, H*W, 9*C)  ('same' zero padding, dy-major tap order)
    B, H, W, C = x.shape
    xp = jnp.pad(x, ((0, 0), (1, 1), (1, 1), (0, 0)))
    patches = [xp[:, i:i + H, j:j + W, :] for i in range(3) for j in range(3)]
    return jnp.concatenate(patches, axis=-1).reshape(B, H * W, 9 * C)


def sample_times_noise(key, B, H, W, C):
    k_t, k_n = jax.random.split(key)
    times = jax.random.uniform(k_t, (B,), dtype=jnp.float32)          # sample_random_times
    noise = jax.random.normal(k_n, (B, H, W, C), dtype=jnp.float32)
    return times, noise


def init_params(key, C=3, Ch=128, Dt=32, n_freq=8):
    ks = jax.random.split(key, 4)
    s = 0.02
    return {
        "W_time": jax.random.normal(ks[0], (2 * n_freq, Ch), jnp.float32) * s,
        "W_text": jax.random.normal(ks[1], (Dt, Ch), jnp.float32) * s,
        "W1": jax.random.normal(ks[2], (9 * C, Ch), jnp.float32) * s,
        "b1": jnp.zeros((Ch,), jnp.float32),
        "W2": jax.random.normal(ks[3], (9 * Ch, C), jnp.float32) * s,
        "b2": jnp.zeros((C,), jnp.float32),
    }


def imagen_forward(params, images_nchw, text_embeds, text_mask, key):
    """Reproduces Imagen.forward: scalar p2-weighted diffusion loss (Pallas path)."""
    B, C, H, W = images_nchw.shape
    Ch = params["W1"].shape[1]
    Cp = 8 * ((C + 7) // 8)                 # pad channels to one sublane tile
    HW = H * W

    x = jnp.transpose(images_nchw, (0, 2, 3, 1)).astype(jnp.float32)  # NCHW -> NHWC
    times, noise = sample_times_noise(key, B, H, W, C)

    log_snr = cosine_log_snr(times)                                   # (B,)
    alpha = jnp.sqrt(jax.nn.sigmoid(log_snr))[:, None, None, None]
    sigma = jnp.sqrt(jax.nn.sigmoid(-log_snr))[:, None, None, None]

    # q_sample (normalize + forward diffuse): trivial elementwise, left to XLA so
    # it fuses with the im2col producer; bf16 output feeds the MXU.
    x_noisy = (alpha * (x * 2.0 - 1.0) + sigma * noise).astype(jnp.bfloat16)

    # conditioning: tiny B-sized matmuls -> plain XLA (no kernel launches)
    cond = conditioning(params, log_snr, text_embeds, text_mask)      # (B, Ch) f32

    # conv1 patches (tiny at 16x16).  TODO(synk): fold into the kernel for >=64x64.
    p = im2col3x3(x_noisy)                                            # (B, HW, 9C) bf16

    # conv2 weights transposed to (9, C, Ch) and channel-padded so the in-kernel
    # accumulator is lane-dense (Cp, HW); padded rows are zero and contribute 0.
    w2t = jnp.transpose(params["W2"].reshape(9, Ch, C), (0, 2, 1))
    w2t = jnp.pad(w2t, ((0, 0), (0, Cp - C), (0, 0))).astype(jnp.bfloat16)
    b2 = jnp.pad(params["b2"], (0, Cp - C)).reshape(Cp, 1)
    noise_t = jnp.pad(jnp.transpose(noise.reshape(B, HW, C), (0, 2, 1)),
                      ((0, 0), (0, Cp - C), (0, 0)))                  # (B, Cp, HW) f32

    sse = unet_sse(p, params["W1"].astype(jnp.bfloat16),
                   cond.reshape(B, 1, Ch), w2t, b2, noise_t, H, W)    # (B,)

    losses = sse / float(H * W * C)                                   # mean_{chw}
    p2_w = jax.lax.rsqrt(P2_K + jnp.exp(log_snr))                     # (k+e^snr)^(-0.5)
    return jnp.mean(losses * p2_w)                                    # scalar loss


def imagen_forward_ref(params, images_nchw, text_embeds, text_mask, key):
    """Pure-JAX f32 reference of the same forward pass (tolerance check)."""
    B, C, H, W = images_nchw.shape
    Ch = params["W1"].shape[1]
    HW = H * W

    x = jnp.transpose(images_nchw, (0, 2, 3, 1)).astype(jnp.float32)
    times, noise = sample_times_noise(key, B, H, W, C)
    log_snr = cosine_log_snr(times)
    alpha = jnp.sqrt(jax.nn.sigmoid(log_snr))[:, None, None, None]
    sigma = jnp.sqrt(jax.nn.sigmoid(-log_snr))[:, None, None, None]
    x_noisy = alpha * (x * 2.0 - 1.0) + sigma * noise

    cond = conditioning(params, log_snr, text_embeds, text_mask)      # (B, Ch)
    p = im2col3x3(x_noisy)                                            # (B, HW, 9C)
    z = jnp.einsum("bnk,kc->bnc", p, params["W1"]) + cond[:, None, :]
    h = z * jax.nn.sigmoid(z)                                         # (B, HW, Ch)

    p2 = im2col3x3(h.reshape(B, H, W, Ch))                            # (B, HW, 9Ch)
    pred = jnp.einsum("bnk,kc->bnc", p2, params["W2"]) + params["b2"]  # (B, HW, C)

    losses = jnp.mean((pred - noise.reshape(B, HW, C)) ** 2, axis=(1, 2))
    p2_w = jax.lax.rsqrt(P2_K + jnp.exp(log_snr))
    return jnp.mean(losses * p2_w)


# --------------------------------- main -------------------------------------

if __name__ == "__main__":
    key = jax.random.PRNGKey(0)
    k_img, k_txt, k_param, k_fwd = jax.random.split(key, 4)

    B, C, H, W = 2, 3, 16, 16        # image_sizes[0] = 16, channels = 3
    S, Dt, Ch = 8, 32, 128           # text seq len, text embed dim, unet hidden

    images = jax.random.uniform(k_img, (B, C, H, W), dtype=jnp.float32)   # NCHW, [0,1]
    text_embeds = jax.random.normal(k_txt, (B, S, Dt), dtype=jnp.float32)
    text_mask = jnp.concatenate(
        [jnp.ones((B, S - 2), jnp.float32),
         jnp.array([[1.0, 1.0], [0.0, 0.0]], jnp.float32)], axis=1)       # (B, S)

    params = init_params(k_param, C=C, Ch=Ch, Dt=Dt)

    loss = jax.jit(imagen_forward)(params, images, text_embeds, text_mask, k_fwd)
    loss = jax.block_until_ready(loss)
    ref = jax.jit(imagen_forward_ref)(params, images, text_embeds, text_mask, k_fwd)
    ref = jax.block_until_ready(ref)

    assert loss.shape == () and bool(jnp.isfinite(loss))
    assert abs(float(loss) - float(ref)) <= 5e-2 * abs(float(ref)) + 1e-4, (loss, ref)
    print("KERNEL_OK")
</pallas_src>

<mosaic_0001>
module attributes {stable_mosaic.version = 11 : i64} {
  func.func @_unet_loss_kernel(%arg0: i32, %arg1: memref<1x256x27xbf16, #tpu.memory_space<vmem>>, %arg2: memref<27x128xbf16, #tpu.memory_space<vmem>>, %arg3: memref<1x1x128xf32, #tpu.memory_space<vmem>>, %arg4: memref<9x8x128xbf16, #tpu.memory_space<vmem>>, %arg5: memref<8x1xf32, #tpu.memory_space<vmem>>, %arg6: memref<1x8x256xf32, #tpu.memory_space<vmem>>, %arg7: memref<1x1x1xf32, #tpu.memory_space<vmem>>, %arg8: memref<3x288x128xbf16, #tpu.memory_space<vmem>>) attributes {dimension_semantics = [#tpu.dimension_semantics<parallel>], iteration_bounds = array<i64: 2>, scalar_prefetch = 0 : i64, scratch_operands = 1 : i64, tpu.core_type = #tpu.core_type<tc>, window_params = [{transform_indices = @transform_0, window_bounds = array<i64: 1, 256, 27>}, {pipeline_mode = #tpu.pipeline_mode<synchronous>, transform_indices = @transform_1, window_bounds = array<i64: 27, 128>}, {transform_indices = @transform_2, window_bounds = array<i64: 1, 1, 128>}, {pipeline_mode = #tpu.pipeline_mode<synchronous>, transform_indices = @transform_3, window_bounds = array<i64: 9, 8, 128>}, {pipeline_mode = #tpu.pipeline_mode<synchronous>, transform_indices = @transform_4, window_bounds = array<i64: 8, 1>}, {transform_indices = @transform_5, window_bounds = array<i64: 1, 8, 256>}, {transform_indices = @transform_6, window_bounds = array<i64: 1, 1, 1>}]} {
    %c0 = arith.constant 0 : index
    %c0_0 = arith.constant 0 : index
    %c0_1 = arith.constant 0 : index
    %0 = vector.load %arg1[%c0, %c0_0, %c0_1] : memref<1x256x27xbf16, #tpu.memory_space<vmem>>, vector<1x256x27xbf16>
    %1 = vector.shape_cast %0 : vector<1x256x27xbf16> to vector<256x27xbf16>
    %c0_2 = arith.constant 0 : index
    %c0_3 = arith.constant 0 : index
    %2 = vector.load %arg2[%c0_2, %c0_3] : memref<27x128xbf16, #tpu.memory_space<vmem>>, vector<27x128xbf16>
    %cst = arith.constant dense<0.000000e+00> : vector<256x128xf32>
    %3 = tpu.matmul %1, %2, %cst {dimension_numbers = #tpu.dot_dimension_numbers<[1], [0], [0], [1], [0, 0, 1, 1], [], []>} : vector<256x27xbf16>, vector<27x128xbf16>, vector<256x128xf32> -> vector<256x128xf32>
    %c0_4 = arith.constant 0 : index
    %c0_5 = arith.constant 0 : index
    %c0_6 = arith.constant 0 : index
    %4 = vector.load %arg3[%c0_4, %c0_5, %c0_6] : memref<1x1x128xf32, #tpu.memory_space<vmem>>, vector<1x1x128xf32>
    %5 = vector.shape_cast %4 : vector<1x1x128xf32> to vector<1x128xf32>
    %6 = vector.broadcast %5 : vector<1x128xf32> to vector<256x128xf32>
    %7 = arith.addf %3, %6 : vector<256x128xf32>
    %8 = arith.negf %7 : vector<256x128xf32>
    %9 = math.exp %8 : vector<256x128xf32>
    %cst_7 = arith.constant 1.000000e+00 : f32
    %10 = vector.broadcast %cst_7 : f32 to vector<256x128xf32>
    %11 = arith.addf %10, %9 : vector<256x128xf32>
    %12 = arith.divf %10, %11 : vector<256x128xf32>
    %13 = arith.mulf %7, %12 : vector<256x128xf32>
    %14 = arith.truncf %13 : vector<256x128xf32> to vector<256x128xbf16>
    %cst_8 = arith.constant 0.000000e+00 : bf16
    %15 = vector.broadcast %cst_8 : bf16 to vector<16x128xbf16>
    %c1 = arith.constant 1 : index
    %c0_9 = arith.constant 0 : index
    %c0_10 = arith.constant 0 : index
    %16 = vector.load %arg8[%c1, %c0_9, %c0_10] : memref<3x288x128xbf16, #tpu.memory_space<vmem>>, vector<1x16x128xbf16>
    %17 = vector.shape_cast %16 : vector<1x16x128xbf16> to vector<16x128xbf16>
    %18 = vector.shape_cast %15 : vector<16x128xbf16> to vector<1x16x128xbf16>
    tpu.vector_store %arg8[%c1, %c0_9, %c0_10], %18 {strides = array<i32>} : memref<3x288x128xbf16, #tpu.memory_space<vmem>>, vector<1x16x128xbf16>,
    %c1_11 = arith.constant 1 : index
    %c16 = arith.constant 16 : index
    %c0_12 = arith.constant 0 : index
    %19 = vector.load %arg8[%c1_11, %c16, %c0_12] : memref<3x288x128xbf16, #tpu.memory_space<vmem>>, vector<1x256x128xbf16>
    %20 = vector.shape_cast %19 : vector<1x256x128xbf16> to vector<256x128xbf16>
    %21 = vector.shape_cast %14 : vector<256x128xbf16> to vector<1x256x128xbf16>
    tpu.vector_store %arg8[%c1_11, %c16, %c0_12], %21 {strides = array<i32>} : memref<3x288x128xbf16, #tpu.memory_space<vmem>>, vector<1x256x128xbf16>,
    %c1_13 = arith.constant 1 : index
    %c272 = arith.constant 272 : index
    %c0_14 = arith.constant 0 : index
    %22 = vector.load %arg8[%c1_13, %c272, %c0_14] : memref<3x288x128xbf16, #tpu.memory_space<vmem>>, vector<1x16x128xbf16>
    %23 = vector.shape_cast %22 : vector<1x16x128xbf16> to vector<16x128xbf16>
    %24 = vector.shape_cast %15 : vector<16x128xbf16> to vector<1x16x128xbf16>
    tpu.vector_store %arg8[%c1_13, %c272, %c0_14], %24 {strides = array<i32>} : memref<3x288x128xbf16, #tpu.memory_space<vmem>>, vector<1x16x128xbf16>,
    %25 = tpu.iota {dimensions = array<i32: 0>} : vector<256x1xi32>
    %c16_i32 = arith.constant 16 : i32
    %c0_i32 = arith.constant 0 : i32
    %26 = arith.cmpi eq, %c16_i32, %c0_i32 : i32
    %c1_i32 = arith.constant 1 : i32
    %27 = arith.select %26, %c1_i32, %c16_i32 : i32
    %28 = vector.broadcast %27 : i32 to vector<256x1xi32>
    %29 = arith.remsi %25, %28 : vector<256x1xi32>
    %c0_i32_15 = arith.constant 0 : i32
    %30 = vector.broadcast %c0_i32_15 : i32 to vector<256x1xi32>
    %31 = arith.cmpi ne, %29, %30 : vector<256x1xi32>
    %c0_i32_16 = arith.constant 0 : i32
    %32 = vector.broadcast %c0_i32_16 : i32 to vector<256x1xi32>
    %33 = arith.cmpi slt, %29, %32 : vector<256x1xi32>
    %c0_i32_17 = arith.constant 0 : i32
    %34 = arith.cmpi slt, %27, %c0_i32_17 : i32
    %35 = vector.broadcast %34 : i1 to vector<256x1xi1>
    %36 = vector.broadcast %35 : vector<256x1xi1> to vector<256x1xi1>
    %37 = arith.xori %33, %36 : vector<256x1xi1>
    %38 = arith.andi %37, %31 : vector<256x1xi1>
    %39 = vector.broadcast %27 : i32 to vector<256x1xi32>
    %40 = arith.addi %29, %39 : vector<256x1xi32>
    %41 = arith.select %38, %40, %29 : vector<256x1xi1>, vector<256x1xi32>
    %c1_18 = arith.constant 1 : index
    %c15 = arith.constant 15 : index
    %c0_19 = arith.constant 0 : index
    %42 = vector.load %arg8[%c1_18, %c15, %c0_19] : memref<3x288x128xbf16, #tpu.memory_space<vmem>>, vector<1x256x128xbf16>
    %43 = vector.shape_cast %42 : vector<1x256x128xbf16> to vector<256x128xbf16>
    %c0_20 = arith.constant 0 : index
    %c0_21 = arith.constant 0 : index
    %c0_22 = arith.constant 0 : index
    %44 = vector.load %arg8[%c0_20, %c0_21, %c0_22] : memref<3x288x128xbf16, #tpu.memory_space<vmem>>, vector<1x16x128xbf16>
    %45 = vector.shape_cast %44 : vector<1x16x128xbf16> to vector<16x128xbf16>
    %46 = vector.shape_cast %15 : vector<16x128xbf16> to vector<1x16x128xbf16>
    tpu.vector_store %arg8[%c0_20, %c0_21, %c0_22], %46 {strides = array<i32>} : memref<3x288x128xbf16, #tpu.memory_space<vmem>>, vector<1x16x128xbf16>,
    %c0_i32_23 = arith.constant 0 : i32
    %47 = vector.broadcast %c0_i32_23 : i32 to vector<256x1xi32>
    %48 = arith.cmpi eq, %41, %47 : vector<256x1xi32>
    %cst_24 = arith.constant 0.000000e+00 : f32
    %49 = arith.truncf %cst_24 : f32 to bf16
    %50 = vector.shape_cast %48 : vector<256x1xi1> to vector<256x1xi1>
    %51 = vector.broadcast %50 : vector<256x1xi1> to vector<256x128xi1>
    %52 = vector.broadcast %49 : bf16 to vector<256x128xbf16>
    %53 = arith.select %51, %52, %43 : vector<256x128xi1>, vector<256x128xbf16>
    %c0_25 = arith.constant 0 : index
    %c16_26 = arith.constant 16 : index
    %c0_27 = arith.constant 0 : index
    %54 = vector.load %arg8[%c0_25, %c16_26, %c0_27] : memref<3x288x128xbf16, #tpu.memory_space<vmem>>, vector<1x256x128xbf16>
    %55 = vector.shape_cast %54 : vector<1x256x128xbf16> to vector<256x128xbf16>
    %56 = vector.shape_cast %53 : vector<256x128xbf16> to vector<1x256x128xbf16>
    tpu.vector_store %arg8[%c0_25, %c16_26, %c0_27], %56 {strides = array<i32>} : memref<3x288x128xbf16, #tpu.memory_space<vmem>>, vector<1x256x128xbf16>,
    %c0_28 = arith.constant 0 : index
    %c272_29 = arith.constant 272 : index
    %c0_30 = arith.constant 0 : index
    %57 = vector.load %arg8[%c0_28, %c272_29, %c0_30] : memref<3x288x128xbf16, #tpu.memory_space<vmem>>, vector<1x16x128xbf16>
    %58 = vector.shape_cast %57 : vector<1x16x128xbf16> to vector<16x128xbf16>
    %59 = vector.shape_cast %15 : vector<16x128xbf16> to vector<1x16x128xbf16>
    tpu.vector_store %arg8[%c0_28, %c272_29, %c0_30], %59 {strides = array<i32>} : memref<3x288x128xbf16, #tpu.memory_space<vmem>>, vector<1x16x128xbf16>,
    %c1_31 = arith.constant 1 : index
    %c17 = arith.constant 17 : index
    %c0_32 = arith.constant 0 : index
    %60 = vector.load %arg8[%c1_31, %c17, %c0_32] : memref<3x288x128xbf16, #tpu.memory_space<vmem>>, vector<1x256x128xbf16>
    %61 = vector.shape_cast %60 : vector<1x256x128xbf16> to vector<256x128xbf16>
    %c2 = arith.constant 2 : index
    %c0_33 = arith.constant 0 : index
    %c0_34 = arith.constant 0 : index
    %62 = vector.load %arg8[%c2, %c0_33, %c0_34] : memref<3x288x128xbf16, #tpu.memory_space<vmem>>, vector<1x16x128xbf16>
    %63 = vector.shape_cast %62 : vector<1x16x128xbf16> to vector<16x128xbf16>
    %64 = vector.shape_cast %15 : vector<16x128xbf16> to vector<1x16x128xbf16>
    tpu.vector_store %arg8[%c2, %c0_33, %c0_34], %64 {strides = array<i32>} : memref<3x288x128xbf16, #tpu.memory_space<vmem>>, vector<1x16x128xbf16>,
    %c15_i32 = arith.constant 15 : i32
    %65 = vector.broadcast %c15_i32 : i32 to vector<256x1xi32>
    %66 = arith.cmpi eq, %41, %65 : vector<256x1xi32>
    %cst_35 = arith.constant 0.000000e+00 : f32
    %67 = arith.truncf %cst_35 : f32 to bf16
    %68 = vector.shape_cast %66 : vector<256x1xi1> to vector<256x1xi1>
    %69 = vector.broadcast %68 : vector<256x1xi1> to vector<256x128xi1>
    %70 = vector.broadcast %67 : bf16 to vector<256x128xbf16>
    %71 = arith.select %69, %70, %61 : vector<256x128xi1>, vector<256x128xbf16>
    %c2_36 = arith.constant 2 : index
    %c16_37 = arith.constant 16 : index
    %c0_38 = arith.constant 0 : index
    %72 = vector.load %arg8[%c2_36, %c16_37, %c0_38] : memref<3x288x128xbf16, #tpu.memory_space<vmem>>, vector<1x256x128xbf16>
    %73 = vector.shape_cast %72 : vector<1x256x128xbf16> to vector<256x128xbf16>
    %74 = vector.shape_cast %71 : vector<256x128xbf16> to vector<1x256x128xbf16>
    tpu.vector_store %arg8[%c2_36, %c16_37, %c0_38], %74 {strides = array<i32>} : memref<3x288x128xbf16, #tpu.memory_space<vmem>>, vector<1x256x128xbf16>,
    %c2_39 = arith.constant 2 : index
    %c272_40 = arith.constant 272 : index
    %c0_41 = arith.constant 0 : index
    %75 = vector.load %arg8[%c2_39, %c272_40, %c0_41] : memref<3x288x128xbf16, #tpu.memory_space<vmem>>, vector<1x16x128xbf16>
    %76 = vector.shape_cast %75 : vector<1x16x128xbf16> to vector<16x128xbf16>
    %77 = vector.shape_cast %15 : vector<16x128xbf16> to vector<1x16x128xbf16>
    tpu.vector_store %arg8[%c2_39, %c272_40, %c0_41], %77 {strides = array<i32>} : memref<3x288x128xbf16, #tpu.memory_space<vmem>>, vector<1x16x128xbf16>,
    %c0_42 = arith.constant 0 : index
    %c0_43 = arith.constant 0 : index
    %c0_44 = arith.constant 0 : index
    %78 = vector.load %arg8[%c0_42, %c0_43, %c0_44] : memref<3x288x128xbf16, #tpu.memory_space<vmem>>, vector<1x256x128xbf16>
    %79 = vector.shape_cast %78 : vector<1x256x128xbf16> to vector<256x128xbf16>
    %c0_45 = arith.constant 0 : index
    %c0_46 = arith.constant 0 : index
    %c0_47 = arith.constant 0 : index
    %80 = vector.load %arg4[%c0_45, %c0_46, %c0_47] : memref<9x8x128xbf16, #tpu.memory_space<vmem>>, vector<1x8x128xbf16>
    %81 = vector.shape_cast %80 : vector<1x8x128xbf16> to vector<8x128xbf16>
    %cst_48 = arith.constant dense<0.000000e+00> : vector<8x256xf32>
    %82 = tpu.matmul %81, %79, %cst_48 {dimension_numbers = #tpu.dot_dimension_numbers<[1], [1], [0], [0], [0, 0, 1, 0], [], []>} : vector<8x128xbf16>, vector<256x128xbf16>, vector<8x256xf32> -> vector<8x256xf32>
    %c1_49 = arith.constant 1 : index
    %c0_50 = arith.constant 0 : index
    %c0_51 = arith.constant 0 : index
    %83 = vector.load %arg8[%c1_49, %c0_50, %c0_51] : memref<3x288x128xbf16, #tpu.memory_space<vmem>>, vector<1x256x128xbf16>
    %84 = vector.shape_cast %83 : vector<1x256x128xbf16> to vector<256x128xbf16>
    %c1_52 = arith.constant 1 : index
    %c0_53 = arith.constant 0 : index
    %c0_54 = arith.constant 0 : index
    %85 = vector.load %arg4[%c1_52, %c0_53, %c0_54] : memref<9x8x128xbf16, #tpu.memory_space<vmem>>, vector<1x8x128xbf16>
    %86 = vector.shape_cast %85 : vector<1x8x128xbf16> to vector<8x128xbf16>
    %cst_55 = arith.constant dense<0.000000e+00> : vector<8x256xf32>
    %87 = tpu.matmul %86, %84, %cst_55 {dimension_numbers = #tpu.dot_dimension_numbers<[1], [1], [0], [0], [0, 0, 1, 0], [], []>} : vector<8x128xbf16>, vector<256x128xbf16>, vector<8x256xf32> -> vector<8x256xf32>
    %88 = arith.addf %82, %87 : vector<8x256xf32>
    %c2_56 = arith.constant 2 : index
    %c0_57 = arith.constant 0 : index
    %c0_58 = arith.constant 0 : index
    %89 = vector.load %arg8[%c2_56, %c0_57, %c0_58] : memref<3x288x128xbf16, #tpu.memory_space<vmem>>, vector<1x256x128xbf16>
    %90 = vector.shape_cast %89 : vector<1x256x128xbf16> to vector<256x128xbf16>
    %c2_59 = arith.constant 2 : index
    %c0_60 = arith.constant 0 : index
    %c0_61 = arith.constant 0 : index
    %91 = vector.load %arg4[%c2_59, %c0_60, %c0_61] : memref<9x8x128xbf16, #tpu.memory_space<vmem>>, vector<1x8x128xbf16>
    %92 = vector.shape_cast %91 : vector<1x8x128xbf16> to vector<8x128xbf16>
    %cst_62 = arith.constant dense<0.000000e+00> : vector<8x256xf32>
    %93 = tpu.matmul %92, %90, %cst_62 {dimension_numbers = #tpu.dot_dimension_numbers<[1], [1], [0], [0], [0, 0, 1, 0], [], []>} : vector<8x128xbf16>, vector<256x128xbf16>, vector<8x256xf32> -> vector<8x256xf32>
    %94 = arith.addf %88, %93 : vector<8x256xf32>
    %c0_63 = arith.constant 0 : index
    %c16_64 = arith.constant 16 : index
    %c0_65 = arith.constant 0 : index
    %95 = vector.load %arg8[%c0_63, %c16_64, %c0_65] : memref<3x288x128xbf16, #tpu.memory_space<vmem>>, vector<1x256x128xbf16>
    %96 = vector.shape_cast %95 : vector<1x256x128xbf16> to vector<256x128xbf16>
    %c3 = arith.constant 3 : index
    %c0_66 = arith.constant 0 : index
    %c0_67 = arith.constant 0 : index
    %97 = vector.load %arg4[%c3, %c0_66, %c0_67] : memref<9x8x128xbf16, #tpu.memory_space<vmem>>, vector<1x8x128xbf16>
    %98 = vector.shape_cast %97 : vector<1x8x128xbf16> to vector<8x128xbf16>
    %cst_68 = arith.constant dense<0.000000e+00> : vector<8x256xf32>
    %99 = tpu.matmul %98, %96, %cst_68 {dimension_numbers = #tpu.dot_dimension_numbers<[1], [1], [0], [0], [0, 0, 1, 0], [], []>} : vector<8x128xbf16>, vector<256x128xbf16>, vector<8x256xf32> -> vector<8x256xf32>
    %100 = arith.addf %94, %99 : vector<8x256xf32>
    %c1_69 = arith.constant 1 : index
    %c16_70 = arith.constant 16 : index
    %c0_71 = arith.constant 0 : index
    %101 = vector.load %arg8[%c1_69, %c16_70, %c0_71] : memref<3x288x128xbf16, #tpu.memory_space<vmem>>, vector<1x256x128xbf16>
    %102 = vector.shape_cast %101 : vector<1x256x128xbf16> to vector<256x128xbf16>
    %c4 = arith.constant 4 : index
    %c0_72 = arith.constant 0 : index
    %c0_73 = arith.constant 0 : index
    %103 = vector.load %arg4[%c4, %c0_72, %c0_73] : memref<9x8x128xbf16, #tpu.memory_space<vmem>>, vector<1x8x128xbf16>
    %104 = vector.shape_cast %103 : vector<1x8x128xbf16> to vector<8x128xbf16>
    %cst_74 = arith.constant dense<0.000000e+00> : vector<8x256xf32>
    %105 = tpu.matmul %104, %102, %cst_74 {dimension_numbers = #tpu.dot_dimension_numbers<[1], [1], [0], [0], [0, 0, 1, 0], [], []>} : vector<8x128xbf16>, vector<256x128xbf16>, vector<8x256xf32> -> vector<8x256xf32>
    %106 = arith.addf %100, %105 : vector<8x256xf32>
    %c2_75 = arith.constant 2 : index
    %c16_76 = arith.constant 16 : index
    %c0_77 = arith.constant 0 : index
    %107 = vector.load %arg8[%c2_75, %c16_76, %c0_77] : memref<3x288x128xbf16, #tpu.memory_space<vmem>>, vector<1x256x128xbf16>
    %108 = vector.shape_cast %107 : vector<1x256x128xbf16> to vector<256x128xbf16>
    %c5 = arith.constant 5 : index
    %c0_78 = arith.constant 0 : index
    %c0_79 = arith.constant 0 : index
    %109 = vector.load %arg4[%c5, %c0_78, %c0_79] : memref<9x8x128xbf16, #tpu.memory_space<vmem>>, vector<1x8x128xbf16>
    %110 = vector.shape_cast %109 : vector<1x8x128xbf16> to vector<8x128xbf16>
    %cst_80 = arith.constant dense<0.000000e+00> : vector<8x256xf32>
    %111 = tpu.matmul %110, %108, %cst_80 {dimension_numbers = #tpu.dot_dimension_numbers<[1], [1], [0], [0], [0, 0, 1, 0], [], []>} : vector<8x128xbf16>, vector<256x128xbf16>, vector<8x256xf32> -> vector<8x256xf32>
    %112 = arith.addf %106, %111 : vector<8x256xf32>
    %c0_81 = arith.constant 0 : index
    %c32 = arith.constant 32 : index
    %c0_82 = arith.constant 0 : index
    %113 = vector.load %arg8[%c0_81, %c32, %c0_82] : memref<3x288x128xbf16, #tpu.memory_space<vmem>>, vector<1x256x128xbf16>
    %114 = vector.shape_cast %113 : vector<1x256x128xbf16> to vector<256x128xbf16>
    %c6 = arith.constant 6 : index
    %c0_83 = arith.constant 0 : index
    %c0_84 = arith.constant 0 : index
    %115 = vector.load %arg4[%c6, %c0_83, %c0_84] : memref<9x8x128xbf16, #tpu.memory_space<vmem>>, vector<1x8x128xbf16>
    %116 = vector.shape_cast %115 : vector<1x8x128xbf16> to vector<8x128xbf16>
    %cst_85 = arith.constant dense<0.000000e+00> : vector<8x256xf32>
    %117 = tpu.matmul %116, %114, %cst_85 {dimension_numbers = #tpu.dot_dimension_numbers<[1], [1], [0], [0], [0, 0, 1, 0], [], []>} : vector<8x128xbf16>, vector<256x128xbf16>, vector<8x256xf32> -> vector<8x256xf32>
    %118 = arith.addf %112, %117 : vector<8x256xf32>
    %c1_86 = arith.constant 1 : index
    %c32_87 = arith.constant 32 : index
    %c0_88 = arith.constant 0 : index
    %119 = vector.load %arg8[%c1_86, %c32_87, %c0_88] : memref<3x288x128xbf16, #tpu.memory_space<vmem>>, vector<1x256x128xbf16>
    %120 = vector.shape_cast %119 : vector<1x256x128xbf16> to vector<256x128xbf16>
    %c7 = arith.constant 7 : index
    %c0_89 = arith.constant 0 : index
    %c0_90 = arith.constant 0 : index
    %121 = vector.load %arg4[%c7, %c0_89, %c0_90] : memref<9x8x128xbf16, #tpu.memory_space<vmem>>, vector<1x8x128xbf16>
    %122 = vector.shape_cast %121 : vector<1x8x128xbf16> to vector<8x128xbf16>
    %cst_91 = arith.constant dense<0.000000e+00> : vector<8x256xf32>
    %123 = tpu.matmul %122, %120, %cst_91 {dimension_numbers = #tpu.dot_dimension_numbers<[1], [1], [0], [0], [0, 0, 1, 0], [], []>} : vector<8x128xbf16>, vector<256x128xbf16>, vector<8x256xf32> -> vector<8x256xf32>
    %124 = arith.addf %118, %123 : vector<8x256xf32>
    %c2_92 = arith.constant 2 : index
    %c32_93 = arith.constant 32 : index
    %c0_94 = arith.constant 0 : index
    %125 = vector.load %arg8[%c2_92, %c32_93, %c0_94] : memref<3x288x128xbf16, #tpu.memory_space<vmem>>, vector<1x256x128xbf16>
    %126 = vector.shape_cast %125 : vector<1x256x128xbf16> to vector<256x128xbf16>
    %c8 = arith.constant 8 : index
    %c0_95 = arith.constant 0 : index
    %c0_96 = arith.constant 0 : index
    %127 = vector.load %arg4[%c8, %c0_95, %c0_96] : memref<9x8x128xbf16, #tpu.memory_space<vmem>>, vector<1x8x128xbf16>
    %128 = vector.shape_cast %127 : vector<1x8x128xbf16> to vector<8x128xbf16>
    %cst_97 = arith.constant dense<0.000000e+00> : vector<8x256xf32>
    %129 = tpu.matmul %128, %126, %cst_97 {dimension_numbers = #tpu.dot_dimension_numbers<[1], [1], [0], [0], [0, 0, 1, 0], [], []>} : vector<8x128xbf16>, vector<256x128xbf16>, vector<8x256xf32> -> vector<8x256xf32>
    %130 = arith.addf %124, %129 : vector<8x256xf32>
    %c0_98 = arith.constant 0 : index
    %c0_99 = arith.constant 0 : index
    %131 = vector.load %arg5[%c0_98, %c0_99] : memref<8x1xf32, #tpu.memory_space<vmem>>, vector<8x1xf32>
    %132 = vector.broadcast %131 : vector<8x1xf32> to vector<8x256xf32>
    %133 = arith.addf %130, %132 : vector<8x256xf32>
    %c0_100 = arith.constant 0 : index
    %c0_101 = arith.constant 0 : index
    %c0_102 = arith.constant 0 : index
    %134 = vector.load %arg6[%c0_100, %c0_101, %c0_102] : memref<1x8x256xf32, #tpu.memory_space<vmem>>, vector<1x8x256xf32>
    %135 = vector.shape_cast %134 : vector<1x8x256xf32> to vector<8x256xf32>
    %136 = arith.subf %133, %135 : vector<8x256xf32>
    %137 = arith.mulf %136, %136 : vector<8x256xf32>
    %cst_103 = arith.constant dense<0.000000e+00> : vector<8xf32>
    %138 = vector.multi_reduction <add>, %137, %cst_103 [1] : vector<8x256xf32> to vector<8xf32>
    %139 = vector.shape_cast %138 : vector<8xf32> to vector<8x1xf32>
    %cst_104 = arith.constant dense<0.000000e+00> : vector<1xf32>
    %140 = vector.multi_reduction <add>, %139, %cst_104 [0] : vector<8x1xf32> to vector<1xf32>
    %141 = vector.shape_cast %140 : vector<1xf32> to vector<1x1xf32>
    %c0_105 = arith.constant 0 : index
    %c0_106 = arith.constant 0 : index
    %c0_107 = arith.constant 0 : index
    %142 = vector.load %arg7[%c0_105, %c0_106, %c0_107] : memref<1x1x1xf32, #tpu.memory_space<vmem>>, vector<1x1x1xf32>
    %143 = vector.shape_cast %142 : vector<1x1x1xf32> to vector<1x1xf32>
    %144 = vector.shape_cast %141 : vector<1x1xf32> to vector<1x1x1xf32>
    tpu.vector_store %arg7[%c0_105, %c0_106, %c0_107], %144 {strides = array<i32>} : memref<1x1x1xf32, #tpu.memory_space<vmem>>, vector<1x1x1xf32>,
    return
  }
  func.func @transform_0(%arg0: i32) -> (i32, i32, i32) {
    %c0_i32 = arith.constant 0 : i32
    %c0_i32_0 = arith.constant 0 : i32
    %c0_i32_1 = arith.constant 0 : i32
    return %arg0, %c0_i32, %c0_i32_0 : i32, i32, i32
  }
  func.func @transform_1(%arg0: i32) -> (i32, i32) {
    %c0_i32 = arith.constant 0 : i32
    %c0_i32_0 = arith.constant 0 : i32
    %c0_i32_1 = arith.constant 0 : i32
    return %c0_i32, %c0_i32_0 : i32, i32
  }
  func.func @transform_2(%arg0: i32) -> (i32, i32, i32) {
    %c0_i32 = arith.constant 0 : i32
    %c0_i32_0 = arith.constant 0 : i32
    %c0_i32_1 = arith.constant 0 : i32
    return %arg0, %c0_i32, %c0_i32_0 : i32, i32, i32
  }
  func.func @transform_3(%arg0: i32) -> (i32, i32, i32) {
    %c0_i32 = arith.constant 0 : i32
    %c0_i32_0 = arith.constant 0 : i32
    %c0_i32_1 = arith.constant 0 : i32
    %c0_i32_2 = arith.constant 0 : i32
    return %c0_i32, %c0_i32_0, %c0_i32_1 : i32, i32, i32
  }
  func.func @transform_4(%arg0: i32) -> (i32, i32) {
    %c0_i32 = arith.constant 0 : i32
    %c0_i32_0 = arith.constant 0 : i32
    %c0_i32_1 = arith.constant 0 : i32
    return %c0_i32, %c0_i32_0 : i32, i32
  }
  func.func @transform_5(%arg0: i32) -> (i32, i32, i32) {
    %c0_i32 = arith.constant 0 : i32
    %c0_i32_0 = arith.constant 0 : i32
    %c0_i32_1 = arith.constant 0 : i32
    return %arg0, %c0_i32, %c0_i32_0 : i32, i32, i32
  }
  func.func @transform_6(%arg0: i32) -> (i32, i32, i32) {
    %c0_i32 = arith.constant 0 : i32
    %c0_i32_0 = arith.constant 0 : i32
    %c0_i32_1 = arith.constant 0 : i32
    return %arg0, %c0_i32, %c0_i32_0 : i32, i32, i32
  }
}

</mosaic_0001>

<bundles_post_ra>
// kernel: imagen_forward.1
= control target key start
LH: loop header
LB: loop body
LE: loop exit
PB: predicated region body
PF: predicated region fallthrough
CT: control target
= control target key end

     0   :  { %s5930_s21 = smov 0   ;;  %s8379_s0 = inlined_call_operand.vmem [shape: bf16[2,256,27], index: 0, kind: input, shape index: {}]   ;;  %s8380_s1 = inlined_call_operand.vmem [shape: bf16[27,128], index: 1, kind: input, shape index: {}]   ;;  %s8381_s2 = inlined_call_operand.vmem [shape: f32[2,1,128], index: 2, kind: input, shape index: {}]   ;;  %s8382_s3 = inlined_call_operand.vmem [shape: bf16[9,8,128], index: 3, kind: input, shape index: {}]   ;;  %s8383_s4 = inlined_call_operand.vmem [shape: f32[8,1], index: 4, kind: input, shape index: {}]   ;;  %s8384_s5 = inlined_call_operand.vmem [shape: f32[2,8,256], index: 5, kind: input, shape index: {}]   ;;  %s8385_s6 = inlined_call_operand.vmem [shape: f32[2,1,1], index: 6, kind: output, shape index: {}]  }
   0x1 LB: > { %s4970_s22 = sadd.s32 4294967295, %s5890_s21   ;;  %p4974_p0 = scmp.ge.s32.totalorder %s5890_s21, 1  ;;  %s5890_s21 = sphi %s5930_s21, %s16_s21  }
   0x2   : > { %p230_p1 = scmp.lt.s32.totalorder %s5890_s21, 3 }
   0x4   : > { %p231_p2 = pnand %p4974_p0, %p230_p1 }
   0x6   : > { %234 = sbr.rel (%p231_p2) target bundleno = 1131 (0x46b), region = 44 }
   0xb   : > { %v5591_v0 = vld [vmem:[%s8380_s1 + $0x8] sm:$0x3f]   ;;  %vm468_vm0 = vcmask 1044480   ;;  %vm469_vm1 = vcmask 1045504   ;;  %v5892_v1 = vmov 65535   ;;  %p266_p3 = scmp.lt.s32.totalorder %s4970_s22, 1  ;;  %v1025_v28 = vlaneseq }
   0xc   : > { %v470_v2 = vsel %vm468_vm0, 4294967295, %v5892_v1  ;;  %v5592_v5 = vld [vmem:[%s8380_s1] sm:$0xff]   ;;  %vm419_vm2 = vcmask 220160   ;;  %vm5893_vm3 = vmmov 0   ;;  %v8389_v22 = vmov 0  }
   0xd   : > { %v471_v3 = vsel %vm469_vm1, %v470_v2, 0  ;;  %s8951_s22 = smov (!%p266_p3, %s4970_s22), 1  ;;  %vm1574_vm4 = vmpackc.low %vm5893_vm3, %vm5893_vm3  ;;  %877 = vst [vmem:[#allocation2 + $0x90] sm:$0xf] %v8389_v22  ;;  %5590 = vset.pattern.permute.xlu0 %v8389_v22  ;;  %v6003_v29 = vshrl.u32 %v1025_v28, 7 }
   0xe   : > { %v473_v4 = vand.u32 %v5591_v0, %v471_v3  ;;  %s5233_s27 = sshll.u32 %s8951_s22, 7  ;;  %878 = vst [vmem:[#allocation2 + $0x94] sm:$0xf] %v8389_v22  ;;  %1023 = vst [vmem:[#allocation2 + $0x118] sm:$0xf] %v8389_v22  ;;  %v1606_v23 = vsel %vm1574_vm4, 65537, %v8389_v22  ;;  %s6320_s9 = scalar_lea.vmem %s8381_s2, %s8951_s22 }
   0xf   : > { %s5950_s30 = scalar_lea.vmem %s8379_s0, %s5233_s27  ;;  %1024 = vst [vmem:[#allocation2 + $0x11c] sm:$0xf] %v8389_v22  ;;  %1475 = vst [vmem:[#allocation2] sm:$0xf] %v8389_v22  ;;  %v1654_v24 = vshrl.u32 %v1606_v23, 16  ;;  %v1650_v25 = vshll.u32 %v1606_v23, 16  ;;  %s281_s18 = scalar_lea.vmem %s8385_s6, %s8951_s22 }
  0x10   : > { %5543 = vmatprep.subr.bf16.mxu0 %v473_v4  ;;  %v5593_v6 = vld [vmem:[%s5950_s30] sm:$0xff]   ;;  %v5594_v7 = vld [vmem:[%s5950_s30 + $0x8] sm:$0xff]   ;;  %v5595_v8 = vld [vmem:[%s5950_s30 + $0x10] sm:$0xff]   ;;  %1476 = vst [vmem:[#allocation2 + $0x4] sm:$0xf] %v8389_v22  ;;  %v1028_v30 = vadd.s32 16, %v6003_v29 }
  0x11   : > { %5544 = vmatpush3.bf16.msra.mxu0 %v473_v4  ;;  %5547 = vmatprep.mubr.msk.bf16.mxu0 %vm419_vm2, %v5593_v6  ;;  %v5596_v9 = vld [vmem:[%s5950_s30 + $0x18] sm:$0xff]   ;;  %v5597_v10 = vld [vmem:[%s5950_s30 + $0x20] sm:$0xff]   ;;  %v5598_v11 = vld [vmem:[%s5950_s30 + $0x28] sm:$0xff]   ;;  %2384 = vst [vmem:[#allocation2 + $0x88] sm:$0xf] %v8389_v22  ;;  %v5998_v26 = vrot.slane %v1654_v24, 7 }
  0x12   : > { %5545 = vmatprep.subr.bf16.mxu0 %v5592_v5  ;;  %v5599_v12 = vld [vmem:[%s5950_s30 + $0x30] sm:$0xff]   ;;  %v5600_v13 = vld [vmem:[%s5950_s30 + $0x38] sm:$0xff]   ;;  %v5601_v14 = vld [vmem:[%s5950_s30 + $0x40] sm:$0xff]   ;;  %2385 = vst [vmem:[#allocation2 + $0x8c] sm:$0xf] %v8389_v22  ;;  %v1076_v31 = vand.u32 15, %v1028_v30 }
  0x13   : > { %v5602_v15 = vld [vmem:[%s5950_s30 + $0x48] sm:$0xff]   ;;  %v5603_v16 = vld [vmem:[%s5950_s30 + $0x50] sm:$0xff]   ;;  %v5604_v17 = vld [vmem:[%s5950_s30 + $0x58] sm:$0xff]   ;;  %2420 = vst [vmem:[#allocation2 + $0x120] sm:$0xf] %v8389_v22  ;;  %v6001_v27 = vor.u32 %v5998_v26, %v1650_v25  ;;  %v1027_v32 = vadd.s32 8, %v6003_v29 }
  0x14   : > { %v5605_v18 = vld [vmem:[%s5950_s30 + $0x60] sm:$0xff]   ;;  %v5606_v19 = vld [vmem:[%s5950_s30 + $0x68] sm:$0xff]   ;;  %v5607_v20 = vld [vmem:[%s5950_s30 + $0x70] sm:$0xff]   ;;  %2421 = vst [vmem:[#allocation2 + $0x124] sm:$0xf] %v8389_v22  ;;  %v1030_v33 = vadd.s32 32, %v6003_v29 }
  0x15   : > { %5546 = vmatpush3.bf16.msra.mxu0 %v5592_v5  ;;  %v5608_v21 = vld [vmem:[%s5950_s30 + $0x78] sm:$0xff]   ;;  %3323 = vst [vmem:[#allocation2 + $0x1a8] sm:$0xf] %v8389_v22  ;;  %3324 = vst [vmem:[#allocation2 + $0x1ac] sm:$0xf] %v8389_v22  ;;  %vm1479_vm5 = vcmp.eq.s32.totalorder %v1076_v31, 0 }
  0x16   : > { %8480 = vst [vmem:[#allocation3_spill] sm:$0xff] %v6001_v27  ;;  %8481 = vst [vmem:[#allocation4_spill] sm:$0xff] %v6003_v29  ;;  %v1029_v34 = vadd.s32 24, %v6003_v29  ;;  %v1069_v35 = vand.u32 15, %v1027_v32  ;;  %v1090_v36 = vand.u32 15, %v1030_v33  ;;  %v1062_v39 = vand.u32 15, %v6003_v29 }
  0x17   : > { %vm1575_vm6 = vmpackc.low %vm1479_vm5, %vm1479_vm5  ;;  %v1032_v45 = vadd.s32 48, %v6003_v29  ;;  %v1031_v48 = vadd.s32 40, %v6003_v29  ;;  %v6029_v49 = vrot.slane %v1650_v25, 5  ;;  %v1656_v50 = vrot.slane %v1654_v24, 4  ;;  %s5234_s12 = sshll.u32 %s8951_s22, 4 }
  0x18   : > { %5548 = vmatmul.mubr.msk.bf16.vlgmr.msra.gmra.mxu0 %vm419_vm2, %v5594_v7  ;;  %v1083_v37 = vand.u32 15, %v1029_v34  ;;  %v1607_v38 = vsel %vm1575_vm6, 65537, %v8389_v22  ;;  %vm2423_vm7 = vcmp.eq.s32.totalorder %v1069_v35, 15  ;;  %vm6011_vm8 = vcmp.eq.s32.totalorder %v1090_v36, 0  ;;  %s278_s15 = scalar_lea.vmem %s8384_s5, %s5234_s12 }
  0x19   : > { %5551 = vmatprep.mubr.msk.bf16.mxu0 %vm419_vm2, %v5595_v8  ;;  %v1660_v41 = vshll.u32 %v1607_v38, 16  ;;  %v1664_v42 = vshrl.u32 %v1607_v38, 16  ;;  %vm2519_vm10 = vmpackc.low %vm2423_vm7, %vm2423_vm7  ;;  %vm6018_vm12 = vcmp.eq.s32.totalorder %v1062_v39, 0  ;;  %v1034_v54 = vadd.s32 64, %v6003_v29 }
  0x1a   : > { %vm2425_vm9 = vcmp.eq.s32.totalorder %v1083_v37, 15  ;;  %vm1577_vm11 = vmpackc.low %vm6011_vm8, %vm6011_vm8  ;;  %v6023_v44 = vsel %vm2519_vm10, 65537, %v8389_v22  ;;  %v1104_v55 = vand.u32 15, %v1032_v45  ;;  %v1097_v58 = vand.u32 15, %v1031_v48 }
  0x1b   : > { %vm2521_vm13 = vmpackc.low %vm2425_vm9, %vm2425_vm9  ;;  %v6026_v46 = vrot.slane %v1660_v41, 5  ;;  %v1666_v47 = vrot.slane %v1664_v42, 4  ;;  %v6035_v51 = vsel %vm1577_vm11, 65537, %v8389_v22  ;;  %v2591_v53 = vshrl.u32 %v6023_v44, 16 }
  0x1c   : > { %vm1573_vm14 = vmpackc.low %vm6018_vm12, %vm6018_vm12  ;;  %v2553_v52 = vsel %vm2521_vm13, 65537, %v8389_v22  ;;  %v1036_v59 = vadd.s32 80, %v6003_v29  ;;  %v1657_v60 = vor.u32 %v1656_v50, %v6029_v49  ;;  %v1680_v61 = vshll.u32 %v6035_v51, 16 }
  0x1d   : > { %v1667_v56 = vor.u32 %v1666_v47, %v6026_v46  ;;  %v1605_v57 = vsel %vm1573_vm14, 65537, %v8389_v22  ;;  %v2609_v62 = vshrl.u32 %v2553_v52, 16  ;;  %vm1637_vm15 = vsmask.f32 3328 }
  0x1e   : > { %vm1638_vm0 = vsmask.f32 7440  ;;  %v2593_v63 = vrot.slane %v2591_v53, 7  ;;  %v1033_v0 = vadd.s32 56, %v6003_v29  ;;  %v1641_v1 = vshll.u32 %v1605_v57, 16 }
  0x1f   : > { %v1644_v2 = vshrl.u32 %v1605_v57, 16  ;;  %v1118_v3 = vand.u32 15, %v1034_v54  ;;  %vm6046_vm1 = vcmp.eq.s32.totalorder %v1104_v55, 0  ;;  %v6050_v5 = vrot.slane %v1667_v56, 4  ;;  %vm6056_vm3 = vmor %vm1637_vm15, %vm1638_vm0 }
  0x20   : > { %5552 = vmatmul.mubr.msk.bf16.gmra.mxu0 %vm419_vm2, %v5596_v9  ;;  %v1132_v7 = vand.u32 15, %v1036_v59  ;;  %vm2025_vm4 = vsmask.f32 256  ;;  %vm2026_vm5 = vsmask.f32 4368  ;;  %v6060_v9 = vrot.slane %v2609_v62, 7  ;;  %vm1579_vm6 = vmpackc.low %vm6046_vm1, %vm6046_vm1 }
  0x21   : > { %5555 = vmatprep.mubr.msk.bf16.mxu0 %vm419_vm2, %v5597_v10  ;;  %v2612_v10 = vshll.u32 %v2553_v52, 16  ;;  %vm6071_vm7 = vcmp.eq.s32.totalorder %v1118_v3, 0  ;;  %vm6084_vm9 = vmor %vm2025_vm4, %vm2026_vm5  ;;  %v6094_v24 = vrot.slane %v5998_v26, 4  ;;  %v1611_v28 = vsel %vm1579_vm6, 65537, %v8389_v22 }
  0x22   : > { %vm6089_vm10 = vcmp.eq.s32.totalorder %v1132_v7, 0  ;;  %v1037_v30 = vadd.s32 88, %v6003_v29  ;;  %vm1581_vm11 = vmpackc.low %vm6071_vm7, %vm6071_vm7  ;;  %v1040_v33 = vadd.s32 112, %v6003_v29  ;;  %v1684_v34 = vshrl.u32 %v6035_v51, 16 }
  0x23   : > { %v6097_v25 = vor.u32 %v2612_v10, %v6060_v9  ;;  %vm1583_vm13 = vmpackc.low %vm6089_vm10, %vm6089_vm10  ;;  %v1700_v39 = vshll.u32 %v1611_v28, 16  ;;  %v1704_v40 = vshrl.u32 %v1611_v28, 16  ;;  %v1038_v41 = vadd.s32 96, %v6003_v29 }
  0x24   : > { %v1139_v45 = vand.u32 15, %v1037_v30  ;;  %v6147_v47 = vsel %vm1581_vm11, 65537, %v8389_v22  ;;  %v1615_v48 = vsel %vm1583_vm13, 65537, %v8389_v22  ;;  %v1039_v50 = vadd.s32 104, %v6003_v29 }
  0x25   : > { %v1160_v51 = vand.u32 15, %v1040_v33  ;;  %v1686_v53 = vrot.slane %v1684_v34, 4  ;;  %v1041_v55 = vadd.s32 120, %v6003_v29  ;;  %v6158_v56 = vrot.slane %v1700_v39, 5 }
  0x26   : > { %v1706_v57 = vrot.slane %v1704_v40, 4  ;;  %v1146_v59 = vand.u32 15, %v1038_v41  ;;  %v1740_v62 = vshll.u32 %v1615_v48, 16  ;;  %vm6162_vm0 = vcmp.eq.s32.totalorder %v1139_v45, 15 }
  0x27   : > { %v1167_v10 = vand.u32 15, %v1041_v55  ;;  %vm2529_vm5 = vmpackc.low %vm6162_vm0, %vm6162_vm0  ;;  %v2616_v41 = vrot.slane %v6060_v9, 4  ;;  %v1050_v31 = vadd.s32 192, %v6003_v29 }
  0x28   : > { %5556 = vmatmul.mubr.msk.bf16.gmra.mxu0 %vm419_vm2, %v5598_v11  ;;  %v6062_v11 = vrot.slane %v1657_v60, 4  ;;  %v1720_v60 = vshll.u32 %v6147_v47, 16  ;;  %vm6185_vm4 = vcmp.eq.s32.totalorder %v1146_v59, 0  ;;  %v6205_v30 = vrot.slane %v1740_v62, 5 }
  0x29   : > { %5559 = vmatprep.mubr.msk.bf16.mxu0 %vm419_vm2, %v5599_v12  ;;  %v6064_v12 = vrot.slane %v1680_v61, 5  ;;  %vm6219_vm10 = vcmp.eq.s32.totalorder %v1167_v10, 15 }
  0x2a   : > { %8509 = vst [vmem:[#allocation6_spill] sm:$0xff] %v6205_v30  ;;  %vm2533_vm13 = vmpackc.low %vm6219_vm10, %vm6219_vm10 }
  0x2b   : > { %v1687_v7 = vor.u32 %v1686_v53, %v6064_v12 }
  0x30   : > { %5560 = vmatmul.mubr.msk.bf16.gmra.mxu0 %vm419_vm2, %v5600_v13  ;;  %v2598_v13 = vrot.slane %v2593_v63, 4 }
  0x31   : > { %5563 = vmatprep.mubr.msk.bf16.mxu0 %vm419_vm2, %v5601_v14  ;;  %v1111_v14 = vand.u32 15, %v1033_v0  ;;  %v1744_v0 = vshrl.u32 %v1615_v48, 16  ;;  %v6337_v48 = vld [vmem:[%s6320_s9] ss:$0 sm:$0xff] }
  0x32   : > { %v6120_v35 = vsel %vm6084_vm9, %v2598_v13, %v6001_v27  ;;  %v1047_v13 = vadd.s32 168, %v6003_v29 }
  0x33   : > { %vm6108_vm12 = vcmp.eq.s32.totalorder %v1111_v14, 15  ;;  %v1707_v14 = vor.u32 %v1706_v57, %v6158_v56  ;;  %v1746_v32 = vrot.slane %v1744_v0, 4 }
  0x34   : > { %vm2525_vm14 = vmpackc.low %vm6108_vm12, %vm6108_vm12 }
  0x35   : > { %v6223_v40 = vrot.slane %v1707_v14, 4  ;;  %v1747_v54 = vor.u32 %v1746_v32, %v6205_v30  ;;  %v1044_v32 = vadd.s32 144, %v6003_v29 }
  0x38   : > { %5564 = vmatmul.mubr.msk.bf16.gmra.mxu0 %vm419_vm2, %v5602_v15  ;;  %v6069_v15 = vrot.slane %v1641_v1, 5  ;;  %v1042_v1 = vadd.s32 128, %v6003_v29 }
  0x39   : > { %5567 = vmatprep.mubr.msk.bf16.mxu0 %vm419_vm2, %v5603_v16  ;;  %v1646_v16 = vrot.slane %v1644_v2, 4  ;;  %v1153_v2 = vand.u32 15, %v1039_v50  ;;  %v1724_v50 = vshrl.u32 %v6147_v47, 16 }
  0x3a   : > { %8492 = vst [vmem:[#allocation5_spill] sm:$0xff] %v6069_v15 }
  0x3b   : > { %v1647_v36 = vor.u32 %v1646_v16, %v6069_v15  ;;  %vm6207_vm7 = vcmp.eq.s32.totalorder %v1153_v2, 15  ;;  %v1726_v2 = vrot.slane %v1724_v50, 4 }
  0x3c   : > { %vm2531_vm11 = vmpackc.low %vm6207_vm7, %vm6207_vm7 }
  0x3d   : > { %v6151_v52 = vrot.slane %v1647_v36, 4  ;;  %v6213_v36 = vrot.slane %v1687_v7, 4  ;;  %v6285_v3 = vsel %vm2531_vm11, 65537, %v8389_v22  ;;  %v6288_v7 = vrot.slane %v1747_v54, 4 }
  0x3e   : > { %v2699_v33 = vshrl.u32 %v6285_v3, 16 }
  0x3f   : > { %8516 = vst [vmem:[#allocation7_spill] sm:$0xff] %v6288_v7 }
  0x40   : > { %5568 = vmatmul.mubr.msk.bf16.gmra.mxu0 %vm419_vm2, %v5604_v17 }
  0x41   : > { %5571 = vmatprep.mubr.msk.bf16.mxu0 %vm419_vm2, %v5605_v18  ;;  %v1035_v18 = vadd.s32 72, %v6003_v29 }
  0x43   : > { %v1125_v37 = vand.u32 15, %v1035_v18  ;;  %v6192_v18 = vrot.slane %v1720_v60, 5 }
  0x45   : > { %vm6153_vm15 = vcmp.eq.s32.totalorder %v1125_v37, 15  ;;  %v2561_v37 = vsel %vm2529_vm5, 65537, %v8389_v22  ;;  %v1727_v50 = vor.u32 %v1726_v2, %v6192_v18  ;;  %v2701_v2 = vrot.slane %v2699_v33, 7 }
  0x46   : > { %vm2527_vm1 = vmpackc.low %vm6153_vm15, %vm6153_vm15  ;;  %v2681_v55 = vshrl.u32 %v2561_v37, 16 }
  0x47   : > { %v6200_v28 = vsel %vm2527_vm1, 65537, %v8389_v22 }
  0x48   : > { %5572 = vmatmul.mubr.msk.bf16.gmra.mxu0 %vm419_vm2, %v5606_v19  ;;  %v2663_v53 = vshrl.u32 %v6200_v28, 16  ;;  %v6290_v14 = vrot.slane %v2681_v55, 7 }
  0x49   : > { %5575 = vmatprep.mubr.msk.bf16.mxu0 %vm419_vm2, %v5607_v20 }
  0x4a   : > { %v2665_v10 = vrot.slane %v2663_v53, 7  ;;  %v2666_v53 = vshll.u32 %v6200_v28, 16 }
  0x4c   : > { %v2670_v55 = vrot.slane %v2665_v10, 4 }
  0x50   : > { %5576 = vmatmul.mubr.msk.bf16.gmra.mxu0 %vm419_vm2, %v5608_v21  ;;  %vm6052_vm2 = vcmp.eq.s32.totalorder %v1097_v58, 15  ;;  %v2594_v21 = vshll.u32 %v6023_v44, 16  ;;  %v2557_v58 = vsel %vm2525_vm14, 65537, %v8389_v22 }
  0x51   : > { %vm2523_vm8 = vmpackc.low %vm6052_vm2, %vm6052_vm2  ;;  %vm6170_vm2 = vcmp.eq.s32.totalorder %v1160_v51, 0  ;;  %v2645_v6 = vshrl.u32 %v2557_v58, 16  ;;  %v2648_v23 = vshll.u32 %v2557_v58, 16  ;;  %v6331_v58 = vrot.slane %v1727_v50, 4 }
  0x52   : > { %v6113_v26 = vsel %vm2523_vm8, 65537, %v8389_v22  ;;  %v6126_v38 = vor.u32 %v2594_v21, %v2593_v63  ;;  %vm1587_vm6 = vmpackc.low %vm6170_vm2, %vm6170_vm2  ;;  %v6270_v63 = vsel %vm6084_vm9, %v2616_v41, %v6001_v27  ;;  %v1043_v41 = vadd.s32 136, %v6003_v29 }
  0x53   : > { %v2627_v44 = vshrl.u32 %v6113_v26, 16  ;;  %v2630_v16 = vshll.u32 %v6113_v26, 16  ;;  %v1174_v26 = vand.u32 15, %v1042_v1  ;;  %v6211_v34 = vrot.slane %v2645_v6, 7  ;;  %vm1585_vm8 = vmpackc.low %vm6185_vm4, %vm6185_vm4  ;;  %8520 = vst [vmem:[#allocation11_spill] sm:$0xff] %v6331_v58 }
  0x54   : > { %v1619_v45 = vsel %vm1587_vm6, 65537, %v8389_v22  ;;  %v1617_v9 = vsel %vm1585_vm8, 65537, %v8389_v22  ;;  %v2565_v6 = vsel %vm2533_vm13, 65537, %v8389_v22  ;;  %v1181_v0 = vand.u32 15, %v1043_v41 }
  0x55   : > { %v2629_v61 = vrot.slane %v2627_v44, 7  ;;  %vm6245_vm12 = vcmp.eq.s32.totalorder %v1174_v26, 0  ;;  %v6253_v47 = vor.u32 %v2648_v23, %v6211_v34  ;;  %v1780_v59 = vshll.u32 %v1619_v45, 16 }
  0x56   : > { %v1784_v60 = vshrl.u32 %v1619_v45, 16  ;;  %v1760_v1 = vshll.u32 %v1617_v9, 16  ;;  %vm1589_vm14 = vmpackc.low %vm6245_vm12, %vm6245_vm12  ;;  %v2717_v39 = vshrl.u32 %v2565_v6, 16  ;;  %v1764_v45 = vshrl.u32 %v1617_v9, 16 }
  0x57   : > { %v2634_v21 = vrot.slane %v2629_v61, 4  ;;  %v6226_v44 = vor.u32 %v2630_v16, %v2629_v61  ;;  %v2684_v16 = vshll.u32 %v2561_v37, 16  ;;  %v6300_v26 = vsel %vm1589_vm14, 65537, %v8389_v22 }
  0x58   : > { %v1786_v23 = vrot.slane %v1784_v60, 4  ;;  %v6304_v37 = vrot.slane %v1760_v1, 5  ;;  %v1800_v28 = vshll.u32 %v6300_v26, 16  ;;  %v2720_v60 = vshll.u32 %v2565_v6, 16 }
  0x59   : > { %v6237_v51 = vsel %vm6084_vm9, %v2634_v21, %v6001_v27  ;;  %v6296_v21 = vrot.slane %v1780_v59, 5  ;;  %v6313_v57 = vor.u32 %v2684_v16, %v6290_v14  ;;  %v1046_v59 = vadd.s32 160, %v6003_v29 }
  0x5a   : > { %8518 = vst [vmem:[#allocation9_spill] sm:$0xff] %v6304_v37  ;;  %v1188_v1 = vand.u32 15, %v1044_v32  ;;  %v6324_v54 = vrot.slane %v2717_v39, 7  ;;  %v1045_v16 = vadd.s32 152, %v6003_v29  ;;  %v2652_v17 = vrot.slane %v6211_v34, 4 }
  0x5b   : > { %8517 = vst [vmem:[#allocation8_spill] sm:$0xff] %v6296_v21  ;;  %8519 = vst [vmem:[#allocation10_spill] sm:$0xff] %v6313_v57  ;;  %v1787_v9 = vor.u32 %v1786_v23, %v6296_v21  ;;  %v6334_v23 = vor.u32 %v2666_v53, %v2665_v10  ;;  %v6342_v6 = vsel %vm6084_vm9, %v2670_v55, %v6001_v27  ;;  %v1766_v33 = vrot.slane %v1764_v45, 4 }
  0x5c   : > { %8522 = vst [vmem:[#allocation13_spill] sm:$0xff] %v6342_v6  ;;  %v1202_v39 = vand.u32 15, %v1046_v59  ;;  %v6354_v41 = vrot.slane %v1800_v28, 5  ;;  %vm6356_vm15 = vcmp.eq.s32.totalorder %v1188_v1, 0  ;;  %v2706_v55 = vrot.slane %v2701_v2, 4 }
  0x5d   : > { %8521 = vst [vmem:[#allocation12_spill] sm:$0xff] %v6334_v23  ;;  %v6352_v10 = vrot.slane %v1787_v9, 4  ;;  %v6361_v62 = vor.u32 %v2720_v60, %v6324_v54  ;;  %v1195_v45 = vand.u32 15, %v1045_v16  ;;  %vm6363_vm0 = vcmp.eq.s32.totalorder %v1181_v0, 15  ;;  %vm1591_vm2 = vmpackc.low %vm6356_vm15, %vm6356_vm15 }
  0x5e   : > { %8524 = vst [vmem:[#allocation15_spill] sm:$0xff] %v6354_v41  ;;  %v6377_v28 = vsel %vm6084_vm9, %v2652_v17, %v6001_v27  ;;  %v1767_v16 = vor.u32 %v1766_v33, %v6304_v37  ;;  %vm6386_vm1 = vcmp.eq.s32.totalorder %v1202_v39, 0  ;;  %vm2535_vm4 = vmpackc.low %vm6363_vm0, %vm6363_vm0 }
  0x5f   : > { %8523 = vst [vmem:[#allocation14_spill] sm:$0xff] %v6352_v10  ;;  %8527 = vst [vmem:[#allocation16_spill] sm:$0xff] %v6361_v62  ;;  %vm6418_vm5 = vcmp.eq.s32.totalorder %v1195_v45, 15  ;;  %v6446_v32 = vsel %vm2535_vm4, 65537, %v8389_v22 }
  0x60   : > { %8530 = vst [vmem:[#allocation17_spill] sm:$0xff] %v6377_v28  ;;  %vm1593_vm6 = vmpackc.low %vm6386_vm1, %vm6386_vm1  ;;  %v6435_v33 = vrot.slane %v1767_v16, 4  ;;  %vm2871_vm1 = vcmp.ne.s16.totalorder %v6120_v35, 0 }
  0x61   : > { %vm2537_vm7 = vmpackc.low %vm6418_vm5, %vm6418_vm5  ;;  %v6456_v16 = vsel %vm1593_vm6, 65537, %v8389_v22 }
  0x62   : > { %8536 = vst [vmem:[#allocation19_spill] sm:$0xff] %v6435_v33 }
  0xd8   : > { %v5549_v53 = vpop.f32.mrf.mxu0 }
  0xd9   : > { %v6368_v34 = vadd.f32 %v5549_v53, %v6337_v48  ;;  %v2702_v53 = vshll.u32 %v6285_v3, 16  ;;  %v1048_v3 = vadd.s32 176, %v6003_v29 }
  0xda   : > { %v509_v60 = vpop.f32.mrf.mxu0 }
  0xdb   : > { %v5016_v17 = vmul.f32 -1.442695, %v6368_v34  ;;  %v6395_v9 = vadd.f32 %v6337_v48, %v509_v60  ;;  %v6412_v60 = vsel %vm6084_vm9, %v2706_v55, %v6001_v27  ;;  %v1623_v55 = vsel %vm1591_vm2, 65537, %v8389_v22 }
  0xdc   : > { %v5550_v39 = vpop.f32.mrf.mxu0  ;;  %8533 = vst [vmem:[#allocation18_spill] sm:$0xff] %v6412_v60  ;;  %v6438_v0 = vor.u32 %v2702_v53, %v2701_v2  ;;  %v1820_v53 = vshll.u32 %v1623_v55, 16  ;;  %v1824_v59 = vshrl.u32 %v1623_v55, 16  ;;  %v1840_v55 = vshll.u32 %v6456_v16, 16 }
  0xdd   : > { %5753 = vpow2.f32 %v5016_v17  ;;  %v5014_v4 = vmul.f32 -1.442695, %v6395_v9  ;;  %v6424_v43 = vadd.f32 %v5550_v39, %v6337_v48  ;;  %v2688_v17 = vrot.slane %v6290_v14, 4 }
  0xde   : > { %v512_v45 = vpop.f32.mrf.mxu0  ;;  %8537 = vst [vmem:[#allocation20_spill] sm:$0xff] %v6438_v0  ;;  %v1216_v14 = vand.u32 15, %v1048_v3  ;;  %v6484_v15 = vrot.slane %v1820_v53, 5  ;;  %v1826_v33 = vrot.slane %v1824_v59, 4  ;;  %v1049_v59 = vadd.s32 184, %v6003_v29 }
  0xdf   : > { %5755 = vpow2.f32 %v5014_v4  ;;  %v5017_v50 = vmul.f32 -1.442695, %v6424_v43  ;;  %v6450_v39 = vadd.f32 %v6337_v48, %v512_v45  ;;  %v2735_v45 = vshrl.u32 %v6446_v32, 16 }
  0xe0   : > { %v5553_v2 = vpop.f32.mrf.mxu0  ;;  %vm6480_vm8 = vcmp.eq.s32.totalorder %v1216_v14, 0  ;;  %8540 = vst [vmem:[#allocation21_spill] sm:$0xff] %v6484_v15  ;;  %v6496_v14 = vsel %vm6084_vm9, %v2688_v17, %v6001_v27  ;;  %v1230_v60 = vand.u32 15, %v1050_v31  ;;  %v1827_v31 = vor.u32 %v1826_v33, %v6484_v15 }
  0xe1   : > { %5757 = vpow2.f32 %v5017_v50  ;;  %v5015_v4 = vmul.f32 -1.442695, %v6450_v39  ;;  %v6461_v42 = vadd.f32 %v5553_v2, %v6337_v48  ;;  %v6473_v50 = vsel %vm2537_vm7, 65537, %v8389_v22  ;;  %8541 = vst [vmem:[#allocation22_spill] sm:$0xff] %v6496_v14  ;;  %vm1595_vm10 = vmpackc.low %vm6480_vm8, %vm6480_vm8 }
  0xe2   : > { %v525_v61 = vpop.f32.mrf.mxu0  ;;  %v1209_v22 = vand.u32 15, %v1047_v13  ;;  %v6491_v62 = vrot.slane %v2735_v45, 7  ;;  %v2753_v53 = vshrl.u32 %v6473_v50, 16  ;;  %v6514_v1 = vrot.slane %v1840_v55, 5 }
  0xe3   : > { %5759 = vpow2.f32 %v5015_v4  ;;  %v5020_v2 = vmul.f32 -1.442695, %v6461_v42  ;;  %v6478_v19 = vadd.f32 %v6337_v48, %v525_v61  ;;  %v2756_v33 = vshll.u32 %v6473_v50, 16 }
  0xe4   : > { %v5554_v3 = vpop.f32.mrf.mxu0  ;;  %8543 = vst [vmem:[#allocation23_spill] sm:$0xff] %v6514_v1  ;;  %vm6516_vm11 = vcmp.eq.s32.totalorder %v1209_v22, 15  ;;  %v1223_v55 = vand.u32 15, %v1049_v59  ;;  %vm6527_vm12 = vcmp.eq.s32.totalorder %v1230_v60, 0  ;;  %v6537_v57 = vrot.slane %v1827_v31, 4 }
  0xe5   : > { %5761 = vpow2.f32 %v5020_v2  ;;  %v5018_v21 = vmul.f32 -1.442695, %v6478_v19  ;;  %v6489_v4 = vadd.f32 %v5554_v3, %v6337_v48  ;;  %v8542_v3 = vshrl.u32 %v6300_v26, 16  ;;  %vm2539_vm13 = vmpackc.low %vm6516_vm11, %vm6516_vm11 }
  0xe6   : > { %v528_v61 = vpop.f32.mrf.mxu0  ;;  %v2742_v26 = vrot.slane %v6491_v62, 4  ;;  %8550 = vst [vmem:[#allocation25_spill] sm:$0xff] %v6537_v57  ;;  %v2738_v50 = vshll.u32 %v6446_v32, 16  ;;  %vm1597_vm14 = vmpackc.low %vm6527_vm12, %vm6527_vm12  ;;  %vm6559_vm15 = vcmp.eq.s32.totalorder %v1223_v55, 15 }
  0xe7   : > { %5763 = vpow2.f32 %v5018_v21  ;;  %v5021_v13 = vmul.f32 -1.442695, %v6489_v4  ;;  %v6505_v45 = vadd.f32 %v6337_v48, %v528_v61  ;;  %v1806_v2 = vrot.slane %v8542_v3, 4  ;;  %vm2541_vm0 = vmpackc.low %vm6559_vm15, %vm6559_vm15 }
  0xe8   : > { %v5557_v17 = vpop.f32.mrf.mxu0  ;;  %v8546_v3 = vmov 0  }
  0xe9   : > { %5765 = vpow2.f32 %v5021_v13  ;;  %v5019_v61 = vmul.f32 -1.442695, %v6505_v45  ;;  %v1627_v10 = vsel %vm1595_vm10, 65537, %v8546_v3  ;;  %v6524_v28 = vadd.f32 %v5557_v17, %v6337_v48 }
  0xea   : > { %v5754_v23 = vpop.eup %5753  ;;  %v541_v14 = vpop.f32.mrf.mxu0  ;;  %v6531_v13 = vrot.slane %v2753_v53, 7  ;;  %v1807_v30 = vor.u32 %v1806_v2, %v6354_v41  ;;  %v1860_v60 = vshll.u32 %v1627_v10, 16  ;;  %v1864_v59 = vshrl.u32 %v1627_v10, 16 }
  0xeb   : > { %8547 = vst [vmem:[#allocation24_spill] sm:$0xff] %v6524_v28  ;;  %v734_v0 = vadd.f32 1.0, %v5754_v23  ;;  %5767 = vpow2.f32 %v5019_v61  ;;  %v6541_v23 = vadd.f32 %v6337_v48, %v541_v14  ;;  %v6550_v2 = vsel %vm6084_vm9, %v2742_v26, %v6001_v27 }
  0xec   : > { %v5756_v17 = vpop.eup %5755  ;;  %v5558_v58 = vpop.f32.mrf.mxu0  ;;  %8552 = vst [vmem:[#allocation27_spill] sm:$0xff] %v6550_v2  ;;  %v5024_v10 = vmul.f32 -1.442695, %v6524_v28  ;;  %v6569_v26 = vsel %vm2539_vm13, 65537, %v8546_v3  ;;  %v6577_v2 = vsel %vm1597_vm14, 65537, %v8546_v3  ;;  %v6579_v41 = vrot.slane %v1860_v60, 5 }
  0xed   : > { %v732_v6 = vadd.f32 1.0, %v5756_v17  ;;  %8551 = vst [vmem:[#allocation26_spill] sm:$0xff] %v6541_v23  ;;  %v6557_v14 = vadd.f32 %v5558_v58, %v6337_v48  ;;  %5769 = vrcp.f32 %v734_v0  ;;  %v6572_v17 = vor.u32 %v2756_v33, %v6531_v13  ;;  %8558 = vst [vmem:[#allocation31_spill] sm:$0xff] %v6577_v2 }
  0xee   : > { %v5758_v32 = vpop.eup %5757  ;;  %v544_v31 = vpop.f32.mrf.mxu0  ;;  %v6574_v58 = vrot.slane %v1807_v30, 4  ;;  %8559 = vst [vmem:[#allocation32_spill] sm:$0xff] %v6579_v41  ;;  %v1866_v37 = vrot.slane %v1864_v59, 4  ;;  %v5022_v7 = vmul.f32 -1.442695, %v6541_v23  ;;  %v2771_v30 = vshrl.u32 %v6569_v26, 16 }
  0xef   : > { %8553 = vst [vmem:[#allocation28_spill] sm:$0xff] %v6557_v14  ;;  %v735_v22 = vadd.f32 1.0, %v5758_v32  ;;  %8556 = vst [vmem:[#allocation29_spill] sm:$0xff] %v6572_v17  ;;  %5771 = vrcp.f32 %v732_v6  ;;  %v5025_v6 = vmul.f32 -1.442695, %v6557_v14  ;;  %v1844_v59 = vshrl.u32 %v6456_v16, 16 }
  0xf0   : > { %8557 = vst [vmem:[#allocation30_spill] sm:$0xff] %v6574_v58  ;;  %v5760_v53 = vpop.eup %5759  ;;  %v5561_v55 = vpop.f32.mrf.mxu0  ;;  %v6598_v23 = vadd.f32 %v6337_v48, %v544_v31  ;;  %v1880_v16 = vshll.u32 %v6577_v2, 16  ;;  %v1867_v31 = vor.u32 %v1866_v37, %v6579_v41  ;;  %v6622_v61 = vor.u32 %v2738_v50, %v6491_v62 }
  0xf1   : > { %5773 = vrcp.f32 %v735_v22  ;;  %v733_v21 = vadd.f32 1.0, %v5760_v53  ;;  %v2724_v22 = vrot.slane %v6324_v54, 4  ;;  %v6615_v15 = vadd.f32 %v5561_v55, %v6337_v48 }
  0xf2   : > { %v5762_v0 = vpop.eup %5761  ;;  %5775 = vpow2.f32 %v5024_v10  ;;  %v557_v33 = vpop.f32.mrf.mxu0  ;;  %8560 = vst [vmem:[#allocation33_spill] sm:$0xff] %v6598_v23  ;;  %8562 = vst [vmem:[#allocation35_spill] sm:$0xff] %v6622_v61  ;;  %v5023_v55 = vmul.f32 -1.442695, %v6598_v23  ;;  %v6630_v57 = vrot.slane %v1880_v16, 5  ;;  %v1052_v17 = vadd.s32 208, %v6003_v29 }
  0xf3   : > { %5777 = vrcp.f32 %v733_v21  ;;  %v738_v53 = vadd.f32 1.0, %v5762_v0  ;;  %v2573_v21 = vsel %vm2541_vm0, 65537, %v8546_v3  ;;  %v6612_v0 = vrot.slane %v2771_v30, 7  ;;  %8561 = vst [vmem:[#allocation34_spill] sm:$0xff] %v6615_v15 }
  0xf4   : > { %v5764_v10 = vpop.eup %5763  ;;  %v5562_v14 = vpop.f32.mrf.mxu0  ;;  %5779 = vpow2.f32 %v5022_v7  ;;  %v6627_v37 = vsel %vm6084_vm9, %v2724_v22, %v6001_v27  ;;  %v2789_v30 = vshrl.u32 %v2573_v21, 16  ;;  %8564 = vst [vmem:[#allocation37_spill] sm:$0xff] %v6630_v57  ;;  %v6633_v50 = vrot.slane %v1867_v31, 4 }
  0xf5   : > { %v736_v54 = vadd.f32 1.0, %v5764_v10  ;;  %5781 = vpow2.f32 %v5025_v6  ;;  %8563 = vst [vmem:[#allocation36_spill] sm:$0xff] %v6627_v37  ;;  %v6638_v22 = vadd.f32 %v5562_v14, %v6337_v48  ;;  %v1846_v23 = vrot.slane %v1844_v59, 4 }
  0xf6   : > { %v5766_v32 = vpop.eup %5765  ;;  %v560_v60 = vpop.f32.mrf.mxu0  ;;  %5783 = vrcp.f32 %v738_v53  ;;  %8565 = vst [vmem:[#allocation38_spill] sm:$0xff] %v6633_v50  ;;  %v2778_v53 = vrot.slane %v6612_v0, 4  ;;  %v6648_v31 = vrot.slane %v2789_v30, 7  ;;  %v1244_v28 = vand.u32 15, %v1052_v17 }
  0xf7   : > { %v739_v7 = vadd.f32 1.0, %v5766_v32  ;;  %5785 = vrcp.f32 %v736_v54  ;;  %v5028_v32 = vmul.f32 -1.442695, %v6615_v15  ;;  %v1054_v54 = vadd.s32 224, %v6003_v29 }
  0xf8   : > { %v5768_v6 = vpop.eup %5767  ;;  %v5565_v10 = vpop.f32.mrf.mxu0  ;;  %8566 = vst [vmem:[#allocation39_spill] sm:$0xff] %v6648_v31  ;;  %v6655_v61 = vadd.f32 %v6337_v48, %v560_v60  ;;  %v6665_v30 = vsel %vm6084_vm9, %v2778_v53, %v6001_v27  ;;  %v5029_v17 = vmul.f32 -1.442695, %v6638_v22  ;;  %vm6685_vm2 = vcmp.eq.s32.totalorder %v1244_v28, 0 }
  0xf9   : > { %5787 = vrcp.f32 %v739_v7  ;;  %v737_v62 = vadd.f32 1.0, %v5768_v6  ;;  %v6646_v7 = vadd.f32 %v6337_v48, %v557_v33  ;;  %v2792_v6 = vshll.u32 %v2573_v21, 16  ;;  %8567 = vst [vmem:[#allocation40_spill] sm:$0xff] %v6665_v30  ;;  %vm1599_vm8 = vmpackc.low %vm6685_vm2, %vm6685_vm2 }
  0xfa   : > { %v573_v37 = vpop.f32.mrf.mxu0  ;;  %v5770_v58 = vpop.eup %5769  ;;  %v6669_v59 = vadd.f32 %v5565_v10, %v6337_v48  ;;  %v1258_v60 = vand.u32 15, %v1054_v54  ;;  %v1847_v10 = vor.u32 %v1846_v23, %v6514_v1  ;;  %v6683_v54 = vadd.s32 200, %v6003_v29 }
  0xfb   : > { %5789 = vrcp.f32 %v737_v62  ;;  %v830_v14 = vmul.f32 %v5770_v58, %v6368_v34  ;;  %v5026_v21 = vmul.f32 -1.442695, %v6646_v7  ;;  %v6675_v57 = vor.u32 %v2792_v6, %v6648_v31 }
  0xfc   : > { %5791 = vpow2.f32 %v5023_v55  ;;  %v5566_v15 = vpop.f32.mrf.mxu0  ;;  %v5772_v16 = vpop.eup %5771  ;;  %v8571_v6 = vsel %vm6056_vm3, %v6050_v5, %v6029_v49  ;;  %v8574_v28 = vsel %vm6056_vm3, %v6062_v11, %v6064_v12  ;;  %v8577_v5 = vsel %vm6084_vm9, %v6094_v24, %v6097_v25 }
  0xfd   : > { %5793 = vpow2.f32 %v5028_v32  ;;  %8568 = vst [vmem:[#allocation41_spill] sm:$0xff] %v6675_v57  ;;  %v6679_v32 = vadd.f32 %v6337_v48, %v573_v37  ;;  %vm6695_vm4 = vcmp.ne.s16.totalorder %v8571_v6, 0  ;;  %vm6704_vm5 = vcmp.ne.s16.totalorder %v8574_v28, 0 }
  0xfe   : > { %v5774_v55 = vpop.eup %5773  ;;  %v576_v50 = vpop.f32.mrf.mxu0  ;;  %vm6715_vm6 = vcmp.ne.s16.totalorder %v8577_v5, 0  ;;  %5795 = vpow2.f32 %v5029_v17  ;;  %v5032_v12 = vmul.f32 -1.442695, %v6669_v59  ;;  %vm6723_vm7 = vcmp.eq.s32.totalorder %v1258_v60, 0 }
  0xff   : > { %v5776_v62 = vpop.eup %5775  ;;  %v831_v33 = vmul.f32 %v5774_v55, %v6424_v43  ;;  %v828_v43 = vmul.f32 %v5772_v16, %v6395_v9  ;;  %v5027_v16 = vmul.f32 -1.442695, %v6655_v61  ;;  %v6721_v55 = vadd.s32 216, %v6003_v29  ;;  %vm1601_vm10 = vmpackc.low %vm6723_vm7, %vm6723_vm7 }
 0x100   : > { %v5778_v53 = vpop.eup %5777  ;;  %v742_v28 = vadd.f32 1.0, %v5776_v62  ;;  %5797 = vpow2.f32 %v5026_v21  ;;  %v5569_v25 = vpop.f32.mrf.mxu0  ;;  %v5030_v60 = vmul.f32 -1.442695, %v6679_v32  ;;  %v6736_v29 = vadd.f32 %v5566_v15, %v6337_v48 }
 0x101   : > { %v5275_v58 = vpack.c.bf16 %v831_v33, %v830_v14  ;;  %v829_v9 = vmul.f32 %v5778_v53, %v6450_v39  ;;  %v5780_v14 = vpop.eup %5779  ;;  %5799 = vpow2.f32 %v5027_v16  ;;  %vm2869_vm13 = vcmp.ne.s16.totalorder %v6001_v27, 0 }
 0x102   : > { %v5782_v53 = vpop.eup %5781  ;;  %8582 = vst [vmem:[#allocation42_spill] sm:$0xff] %v6736_v29  ;;  %v740_v16 = vadd.f32 1.0, %v5780_v14  ;;  %5801 = vpow2.f32 %v5032_v12  ;;  %v589_v14 = vpop.f32.mrf.mxu0  ;;  %v6796_v41 = vadd.f32 %v5569_v25, %v6337_v48  ;;  %vm2875_vm0 = vcmp.ne.s16.totalorder %v6237_v51, 0 }
 0x103   : > { %5348 = vst [vmem:[#allocation2 + $0xa0] sm:$0xff] %v5275_v58   ;;  %v5270_v6 = vpack.c.bf16 %v829_v9, %v828_v43  ;;  %v5784_v5 = vpop.eup %5783  ;;  %v6738_v58 = vrot.slane %v1847_v10, 4  ;;  %v2760_v43 = vrot.slane %v6531_v13, 4  ;;  %v8584_v10 = vsel %vm6056_vm3, %v6151_v52, %v6029_v49 }
 0x104   : > { %v5786_v62 = vpop.eup %5785  ;;  %vm6755_vm11 = vcmp.ne.s16.totalorder %v8584_v10, 0  ;;  %v834_v17 = vmul.f32 %v5784_v5, %v6461_v42  ;;  %5803 = vrcp.f32 %v742_v28  ;;  %v6771_v10 = vadd.f32 %v6337_v48, %v576_v50  ;;  %8592 = vst [vmem:[#allocation46_spill] sm:$0xff] %v6796_v41 }
 0x105   : > { %8583 = vst [vmem:[#allocation43_spill] sm:$0xff] %v6738_v58  ;;  %5347 = vst [vmem:[#allocation2 + $0x98] sm:$0xff] %v5270_v6   ;;  %v6766_v6 = vsel %vm1599_vm8, 65537, %v8546_v3  ;;  %v8588_v13 = vsel %vm6056_vm3, %v6062_v11, %v6026_v46  ;;  %v743_v9 = vadd.f32 1.0, %v5782_v53  ;;  %5805 = vpow2.f32 %v5030_v60 }
 0x106   : > { %v5788_v15 = vpop.eup %5787  ;;  %8587 = vst [vmem:[#allocation44_spill] sm:$0xff] %v6771_v10  ;;  %vm6778_vm12 = vcmp.ne.s16.totalorder %v8588_v13, 0  ;;  %v5033_v42 = vmul.f32 -1.442695, %v6736_v29  ;;  %v832_v28 = vmul.f32 %v5786_v62, %v6478_v19  ;;  %5807 = vrcp.f32 %v740_v16 }
 0x107   : > { %v835_v52 = vmul.f32 %v5788_v15, %v6489_v4  ;;  %v6789_v4 = vsel %vm1601_vm10, 65537, %v8546_v3  ;;  %v1900_v15 = vshll.u32 %v6766_v6, 16  ;;  %v6805_v19 = vsel %vm6084_vm9, %v2760_v43, %v6001_v27 }
 0x108   : > { %v5790_v12 = vpop.eup %5789  ;;  %8591 = vst [vmem:[#allocation45_spill] sm:$0xff] %v6789_v4  ;;  %8593 = vst [vmem:[#allocation47_spill] sm:$0xff] %v6805_v19  ;;  %v5031_v25 = vmul.f32 -1.442695, %v6771_v10  ;;  %5809 = vpow2.f32 %v5033_v42  ;;  %v6835_v33 = vmul.f32 -1.442695, %v6796_v41 }
 0x109   : > { %v5792_v50 = vpop.eup %5791  ;;  %v5285_v46 = vpack.c.bf16 %v835_v52, %v834_v17  ;;  %v833_v5 = vmul.f32 %v5790_v12, %v6505_v45  ;;  %v6811_v52 = vadd.f32 %v6337_v48, %v589_v14  ;;  %v5570_v12 = vpop.f32.mrf.mxu0  ;;  %v8595_v14 = vsel %vm6084_vm9, %v6094_v24, %v6126_v38 }
 0x10a   : > { %v1445_v53 = vld [vmem:[#allocation2 + $0xa0] sm:$0xf]  ;;  %v1446_v60 = vld [vmem:[#allocation2 + $0xa4] sm:$0xf]  ;;  %v5794_v45 = vpop.eup %5793  ;;  %v741_v19 = vadd.f32 1.0, %v5792_v50  ;;  %vm6828_vm14 = vcmp.ne.s16.totalorder %v8595_v14, 0  ;;  %5811 = vrcp.f32 %v743_v9  ;;  %v6865_v57 = vadd.f32 %v5570_v12, %v6337_v48 }
 0x10b   : > { %v2388_v13 = vld [vmem:[#allocation2 + $0xa0] sm:$0xf]  ;;  %v2389_v17 = vld [vmem:[#allocation2 + $0xa4] sm:$0xf]  ;;  %5350 = vst [vmem:[#allocation2 + $0xb0] sm:$0xff] %v5285_v46   ;;  %v5280_v16 = vpack.c.bf16 %v833_v5, %v832_v28  ;;  %8594 = vst [vmem:[#allocation48_spill] sm:$0xff] %v6811_v52  ;;  %5813 = vpow2.f32 %v5031_v25 }
 0x10c   : > { %v2904_v62 = vsel %vm2871_vm1, 0, %v2388_v13  ;;  %v6815_v39 = vsel %vm6695_vm4, 0, %v1445_v53  ;;  %v6819_v43 = vsel %vm6704_vm5, 0, %v1446_v60  ;;  %v2905_v35 = vsel %vm6715_vm6, 0, %v2389_v17  ;;  %v1443_v5 = vld [vmem:[#allocation2 + $0x98] sm:$0xf]  ;;  %v5796_v53 = vpop.eup %5795 }
 0x10d   : > { %v2955_v28 = vshll.u32 %v2904_v62, 16  ;;  %v2959_v46 = vshrl.u32 %v2904_v62, 16  ;;  %5349 = vst [vmem:[#allocation2 + $0xa8] sm:$0xff] %v5280_v16   ;;  %v6832_v23 = vrot.slane %v1900_v15, 5  ;;  %v746_v42 = vadd.f32 1.0, %v5794_v45  ;;  %v5798_v45 = vpop.eup %5797  ;;  %8605 = vst [vmem:[#allocation52_spill] sm:$0xff] %v6865_v57 }
 0x10e   : > { %v1904_v50 = vshrl.u32 %v6766_v6, 16  ;;  %v2052_v60 = vshrl.u32 %v6815_v39, 16  ;;  %v2061_v38 = vshrl.u32 %v6819_v43, 16  ;;  %v1444_v13 = vld [vmem:[#allocation2 + $0x9c] sm:$0xf]  ;;  %v8599_v15 = vsel %vm6056_vm3, %v6223_v40, %v6029_v49  ;;  %v592_v6 = vpop.f32.mrf.mxu0  ;;  %v6867_v30 = vpop.eup %5799  ;;  %v5627_v8 = vld [vmem:[#allocation2 + $0xa0] sm:$0xff]  }
 0x10f   : > { %8598 = vst [vmem:[#allocation49_spill] sm:$0xff] %v6832_v23  ;;  %vm6845_vm15 = vcmp.ne.s16.totalorder %v8599_v15, 0  ;;  %v6850_v9 = vmul.f32 -1.442695, %v6811_v52  ;;  %v2965_v62 = vshll.u32 %v2905_v35, 16  ;;  %v2969_v16 = vshrl.u32 %v2905_v35, 16 }
 0x110   : > { %5815 = vrcp.f32 %v741_v19  ;;  %v8602_v14 = vshll.u32 %v6569_v26, 16  ;;  %v6858_v40 = vrot.slane %v2955_v28, 5  ;;  %v2961_v15 = vrot.slane %v2959_v46, 4  ;;  %v2386_v35 = vld [vmem:[#allocation2 + $0x98] sm:$0xf] }
 0x111   : > { %v6862_v25 = vsel %vm6755_vm11, 0, %v1443_v5  ;;  %5817 = vrcp.f32 %v746_v42  ;;  %v747_v19 = vadd.f32 1.0, %v5796_v53  ;;  %v6870_v52 = vadd.f32 %v6337_v48, %v592_v6  ;;  %v2387_v41 = vld [vmem:[#allocation2 + $0x9c] sm:$0xf] }
 0x112   : > { %v6856_v58 = vor.u32 %v8602_v14, %v6612_v0  ;;  %8604 = vst [vmem:[#allocation51_spill] sm:$0xff] %v6858_v40  ;;  %v1920_v26 = vshll.u32 %v6789_v4, 16  ;;  %v6873_v0 = vpop.eup %5801  ;;  %v6875_v28 = vrot.slane %v2052_v60, 7  ;;  %v6877_v21 = vrot.slane %v2061_v38, 7  ;;  %v1449_v4 = vld [vmem:[#allocation2 + $0xb0] sm:$0xf] }
 0x113   : > { %8606 = vst [vmem:[#allocation53_spill] sm:$0xff] %v6870_v52  ;;  %v6881_v12 = vsel %vm6778_vm12, 0, %v1444_v13  ;;  %v8609_v46 = vsel %vm6056_vm3, %v6062_v11, %v6192_v18  ;;  %v8612_v42 = vsel %vm6084_vm9, %v6094_v24, %v6253_v47  ;;  %v744_v34 = vadd.f32 1.0, %v5798_v45  ;;  %v6901_v60 = vpop.eup %5803 }
 0x114   : > { %8603 = vst [vmem:[#allocation50_spill] sm:$0xff] %v6856_v58  ;;  %8607 = vst [vmem:[#allocation54_spill] sm:$0xff] %v6875_v28  ;;  %vm6888_vm1 = vcmp.ne.s16.totalorder %v8609_v46, 0  ;;  %vm6897_vm2 = vcmp.ne.s16.totalorder %v8612_v42, 0  ;;  %v6903_v38 = vrot.slane %v2965_v62, 5  ;;  %v2971_v13 = vrot.slane %v2969_v16, 4  ;;  %v6908_v14 = vpop.eup %5805 }
 0x115   : > { %8608 = vst [vmem:[#allocation55_spill] sm:$0xff] %v6877_v21  ;;  %v2034_v18 = vshrl.u32 %v6862_v25, 16  ;;  %v6906_v6 = vrot.slane %v1904_v50, 4  ;;  %v2962_v46 = vor.u32 %v2961_v15, %v6858_v40  ;;  %v2902_v47 = vsel %vm2869_vm13, 0, %v2386_v35  ;;  %v6924_v15 = vpop.eup %5807  ;;  %v2390_v29 = vld [vmem:[#allocation2 + $0xa8] sm:$0xf] }
 0x116   : > { %8615 = vst [vmem:[#allocation56_spill] sm:$0xff] %v6903_v38  ;;  %v6914_v42 = vmul.f32 -1.442695, %v6865_v57  ;;  %v2043_v62 = vshrl.u32 %v6881_v12, 16  ;;  %vm2873_vm4 = vcmp.ne.s16.totalorder %v6270_v63, 0  ;;  %5819 = vrcp.f32 %v747_v19  ;;  %v6962_v37 = vpop.eup %5809 }
 0x117   : > { %v6920_v50 = vmul.f32 -1.442695, %v6870_v52  ;;  %v6922_v16 = vrot.slane %v1920_v26, 5  ;;  %v2055_v40 = vshll.u32 %v6815_v39, 16  ;;  %v2064_v57 = vshll.u32 %v6819_v43, 16 }
 0x118   : > { %v2972_v27 = vor.u32 %v2971_v13, %v6903_v38  ;;  %v6931_v31 = vrot.slane %v2034_v18, 7  ;;  %v2903_v19 = vsel %vm6828_vm14, 0, %v2387_v41  ;;  %v2936_v26 = vshrl.u32 %v2902_v47, 16  ;;  %v2392_v52 = vld [vmem:[#allocation2 + $0xb0] sm:$0xf] }
 0x119   : > { %8616 = vst [vmem:[#allocation57_spill] sm:$0xff] %v6922_v16  ;;  %v8618_v39 = vsel %vm6056_vm3, %v6213_v36, %v6029_v49  ;;  %v8621_v43 = vsel %vm6056_vm3, %v6062_v11, %v6158_v56  ;;  %v8624_v41 = vsel %vm6084_vm9, %v6094_v24, %v6226_v44  ;;  %v6964_v18 = vrot.slane %v2962_v46, 4  ;;  %v1450_v38 = vld [vmem:[#allocation2 + $0xb4] sm:$0xf]  ;;  %v5573_v46 = vpop.f32.mrf.mxu0  ;;  %v1447_v17 = vld [vmem:[#allocation2 + $0xa8] sm:$0xf] }
 0x11a   : > { %8617 = vst [vmem:[#allocation58_spill] sm:$0xff] %v6931_v31  ;;  %vm6940_vm5 = vcmp.ne.s16.totalorder %v8618_v39, 0  ;;  %vm6949_vm6 = vcmp.ne.s16.totalorder %v8621_v43, 0  ;;  %vm6958_vm7 = vcmp.ne.s16.totalorder %v8624_v41, 0  ;;  %v2037_v39 = vshll.u32 %v6862_v25, 16  ;;  %v5812_v41 = vpop.eup %5811 }
 0x11b   : > { %8627 = vst [vmem:[#allocation59_spill] sm:$0xff] %v6964_v18  ;;  %v2046_v56 = vshll.u32 %v6881_v12, 16  ;;  %v2939_v43 = vshll.u32 %v2902_v47, 16  ;;  %v6968_v45 = vrot.slane %v2043_v62, 7  ;;  %v6972_v2 = vsel %vm6845_vm15, 0, %v1449_v4  ;;  %v6983_v4 = vpop.eup %5813 }
 0x11c   : > { %5821 = vpow2.f32 %v6835_v33  ;;  %v2945_v25 = vshll.u32 %v2903_v19, 16  ;;  %v2393_v18 = vld [vmem:[#allocation2 + $0xb4] sm:$0xf]  ;;  %v2908_v12 = vsel %vm2875_vm0, 0, %v2392_v52  ;;  %v6985_v47 = vrot.slane %v2972_v27, 4 }
 0x11d   : > { %8628 = vst [vmem:[#allocation60_spill] sm:$0xff] %v6968_v45  ;;  %5823 = vrcp.f32 %v744_v34  ;;  %v2938_v62 = vrot.slane %v2936_v26, 4  ;;  %v2949_v1 = vshrl.u32 %v2903_v19, 16  ;;  %v5816_v44 = vpop.eup %5815  ;;  %v2941_v58 = vrot.slane %v2939_v43, 5 }
 0x11e   : > { %8629 = vst [vmem:[#allocation61_spill] sm:$0xff] %v6985_v47  ;;  %v2088_v10 = vshrl.u32 %v6972_v2, 16  ;;  %5825 = vpow2.f32 %v6850_v9  ;;  %v6991_v51 = vadd.f32 %v5573_v46, %v6337_v48  ;;  %v6995_v52 = vsel %vm6888_vm1, 0, %v1450_v38  ;;  %v5818_v19 = vpop.eup %5817  ;;  %v1448_v47 = vld [vmem:[#allocation2 + $0xac] sm:$0xf] }
 0x11f   : > { %v2909_v27 = vsel %vm6897_vm2, 0, %v2393_v18  ;;  %v2995_v34 = vshll.u32 %v2908_v12, 16  ;;  %v2999_v26 = vshrl.u32 %v2908_v12, 16  ;;  %v7000_v33 = vrot.slane %v2945_v25, 5  ;;  %v2391_v25 = vld [vmem:[#allocation2 + $0xac] sm:$0xf] }
 0x120   : > { %v7011_v53 = vor.u32 %v2055_v40, %v6875_v28  ;;  %v7014_v38 = vor.u32 %v2064_v57, %v6877_v21  ;;  %v2951_v18 = vrot.slane %v2949_v1, 4  ;;  %v2091_v46 = vshll.u32 %v6972_v2, 16 }
 0x121   : > { %8630 = vst [vmem:[#allocation62_spill] sm:$0xff] %v7000_v33  ;;  %v7017_v12 = vrot.slane %v2088_v10, 7  ;;  %v2097_v43 = vshrl.u32 %v6995_v52, 16  ;;  %v3005_v9 = vshll.u32 %v2909_v27, 16  ;;  %v2906_v16 = vsel %vm2873_vm4, 0, %v2390_v29 }
 0x122   : > { %8631 = vst [vmem:[#allocation63_spill] sm:$0xff] %v7011_v53  ;;  %8632 = vst [vmem:[#allocation64_spill] sm:$0xff] %v7014_v38  ;;  %v7023_v5 = vor.u32 %v2037_v39, %v6931_v31  ;;  %v2942_v40 = vor.u32 %v2941_v58, %v2938_v62  ;;  %v7025_v28 = vrot.slane %v2995_v34, 5  ;;  %v3001_v57 = vrot.slane %v2999_v26, 4  ;;  %v8637_v62 = vld [vmem:[#allocation28_spill] sm:$0xff]  ;;  %v8641_v31 = vld [vmem:[#allocation34_spill] sm:$0xff] }
 0x123   : > { %8633 = vst [vmem:[#allocation65_spill] sm:$0xff] %v7017_v12  ;;  %v5820_v38 = vpop.eup %5819  ;;  %v3009_v1 = vshrl.u32 %v2909_v27, 16  ;;  %v7029_v2 = vsel %vm6940_vm5, 0, %v1447_v17  ;;  %v7033_v10 = vsel %vm6949_vm6, 0, %v1448_v47  ;;  %v2907_v29 = vsel %vm6958_vm7, 0, %v2391_v25  ;;  %v8639_v17 = vld [vmem:[#allocation26_spill] sm:$0xff] }
 0x124   : > { %8634 = vst [vmem:[#allocation66_spill] sm:$0xff] %v7023_v5  ;;  %8635 = vst [vmem:[#allocation67_spill] sm:$0xff] %v7025_v28  ;;  %v2975_v63 = vshll.u32 %v2906_v16, 16  ;;  %v2979_v39 = vshrl.u32 %v2906_v16, 16  ;;  %v8636_v5 = vld [vmem:[#allocation24_spill] sm:$0xff]  ;;  %v839_v34 = vmul.f32 %v5812_v41, %v8637_v62  ;;  %v7041_v27 = vor.u32 %v2046_v56, %v6968_v45  ;;  %v8640_v47 = vld [vmem:[#allocation33_spill] sm:$0xff] }
 0x125   : > { %v838_v58 = vmul.f32 %v6901_v60, %v8636_v5  ;;  %v2952_v35 = vor.u32 %v2951_v18, %v7000_v33  ;;  %v836_v13 = vmul.f32 %v6924_v15, %v8639_v17  ;;  %v837_v26 = vmul.f32 %v5816_v44, %v8640_v47  ;;  %v8642_v18 = vld [vmem:[#allocation7_spill] sm:$0xff] }
 0x126   : > { %8638 = vst [vmem:[#allocation24_spill] sm:$0xff] %v7041_v27  ;;  %v2070_v36 = vshrl.u32 %v7029_v2, 16  ;;  %v842_v16 = vmul.f32 %v5818_v19, %v8641_v31  ;;  %v843_v53 = vmul.f32 %v5820_v38, %v6638_v22  ;;  %v2100_v41 = vshll.u32 %v6995_v52, 16  ;;  %v8646_v31 = vld [vmem:[#allocation9_spill] sm:$0xff] }
 0x127   : > { %v5295_v25 = vpack.c.bf16 %v839_v34, %v838_v58  ;;  %v2985_v5 = vshll.u32 %v2907_v29, 16  ;;  %v2989_v56 = vshrl.u32 %v2907_v29, 16  ;;  %v8643_v62 = vsel %vm6056_vm3, %v8642_v18, %v6029_v49  ;;  %v8651_v34 = vld [vmem:[#allocation13_spill] sm:$0xff] }
 0x128   : > { %vm7056_vm8 = vcmp.ne.s16.totalorder %v8643_v62, 0  ;;  %v8647_v44 = vsel %vm6056_vm3, %v6062_v11, %v8646_v31  ;;  %v5290_v52 = vpack.c.bf16 %v837_v26, %v836_v13  ;;  %v7071_v38 = vrot.slane %v2942_v40, 4  ;;  %v605_v13 = vpop.f32.mrf.mxu0 }
 0x129   : > { %v5822_v60 = vpop.eup %5821  ;;  %vm7065_vm10 = vcmp.ne.s16.totalorder %v8647_v44, 0  ;;  %v7073_v29 = vrot.slane %v2097_v43, 7  ;;  %v2079_v58 = vshrl.u32 %v7033_v10, 16  ;;  %5352 = vst [vmem:[#allocation2 + $0xc0] sm:$0xff] %v5295_v25   ;;  %vm2879_vm11 = vcmp.ne.s16.totalorder %v8651_v34, 0 }
 0x12a   : > { %v7069_v19 = vpop.eup %5823  ;;  %8650 = vst [vmem:[#allocation28_spill] sm:$0xff] %v7071_v38  ;;  %v5305_v17 = vpack.c.bf16 %v843_v53, %v842_v16  ;;  %v7077_v47 = vrot.slane %v3005_v9, 5  ;;  %v3011_v18 = vrot.slane %v3009_v1, 4  ;;  %v7079_v62 = vrot.slane %v2975_v63, 5  ;;  %5351 = vst [vmem:[#allocation2 + $0xb8] sm:$0xff] %v5290_v52   ;;  %v8658_v63 = vld [vmem:[#allocation10_spill] sm:$0xff] }
 0x12b   : > { %v2981_v31 = vrot.slane %v2979_v39, 4  ;;  %v5826_v26 = vpop.eup %5825  ;;  %v7081_v44 = vrot.slane %v2952_v35, 4  ;;  %v7084_v43 = vor.u32 %v2091_v46, %v7017_v12  ;;  %v3002_v40 = vor.u32 %v3001_v57, %v7025_v28 }
 0x12c   : > { %8652 = vst [vmem:[#allocation26_spill] sm:$0xff] %v7077_v47  ;;  %8653 = vst [vmem:[#allocation33_spill] sm:$0xff] %v7079_v62  ;;  %v7087_v25 = vrot.slane %v2070_v36, 7  ;;  %v7090_v53 = vrot.slane %v2985_v5, 5  ;;  %v2991_v1 = vrot.slane %v2989_v56, 4  ;;  %v8659_v39 = vsel %vm6084_vm9, %v6094_v24, %v8658_v63  ;;  %v8664_v63 = vld [vmem:[#allocation11_spill] sm:$0xff] }
 0x12d   : > { %8654 = vst [vmem:[#allocation34_spill] sm:$0xff] %v7081_v44  ;;  %8655 = vst [vmem:[#allocation7_spill] sm:$0xff] %v7084_v43  ;;  %vm7097_vm12 = vcmp.ne.s16.totalorder %v8659_v39, 0  ;;  %v745_v46 = vadd.f32 1.0, %v6867_v30  ;;  %v7103_v57 = vor.u32 %v2100_v41, %v7073_v29  ;;  %v7106_v16 = vrot.slane %v2079_v58, 7  ;;  %v5574_v39 = vpop.f32.mrf.mxu0  ;;  %v8721_v43 = vld [vmem:[#allocation44_spill] sm:$0xff] }
 0x12e   : > { %8656 = vst [vmem:[#allocation9_spill] sm:$0xff] %v7087_v25  ;;  %5354 = vst [vmem:[#allocation2 + $0xd0] sm:$0xff] %v5305_v17   ;;  %v750_v5 = vadd.f32 1.0, %v6873_v0  ;;  %v3012_v56 = vor.u32 %v3011_v18, %v7077_v47  ;;  %v2073_v52 = vshll.u32 %v7029_v2, 16  ;;  %v2982_v17 = vor.u32 %v2981_v31, %v7079_v62 }
 0x12f   : > { %8657 = vst [vmem:[#allocation13_spill] sm:$0xff] %v7090_v53  ;;  %8662 = vst [vmem:[#allocation10_spill] sm:$0xff] %v7103_v57  ;;  %v8665_v30 = vsel %vm6056_vm3, %v8664_v63, %v6029_v49  ;;  %v748_v58 = vadd.f32 1.0, %v6908_v14  ;;  %v7122_v9 = vrot.slane %v3002_v40, 4  ;;  %v2082_v2 = vshll.u32 %v7033_v10, 16  ;;  %v8669_v63 = vld [vmem:[#allocation6_spill] sm:$0xff] }
 0x130   : > { %8663 = vst [vmem:[#allocation68_spill] sm:$0xff] %v7106_v16  ;;  %vm7117_vm13 = vcmp.ne.s16.totalorder %v8665_v30, 0  ;;  %v751_v18 = vadd.f32 1.0, %v6962_v37  ;;  %v2992_v31 = vor.u32 %v2991_v1, %v7090_v53  ;;  %v1453_v36 = vld [vmem:[#allocation2 + $0xc0] sm:$0xf]  ;;  %v8670_v30 = vsel %vm6056_vm3, %v6062_v11, %v8669_v63  ;;  %v8674_v10 = vld [vmem:[#allocation12_spill] sm:$0xff] }
 0x131   : > { %8668 = vst [vmem:[#allocation11_spill] sm:$0xff] %v7122_v9  ;;  %v1454_v44 = vld [vmem:[#allocation2 + $0xc4] sm:$0xf]  ;;  %vm7133_vm14 = vcmp.ne.s16.totalorder %v8670_v30, 0  ;;  %v8675_v37 = vsel %vm6084_vm9, %v6094_v24, %v8674_v10  ;;  %5827 = vrcp.f32 %v745_v46  ;;  %v749_v0 = vadd.f32 1.0, %v6983_v4  ;;  %v608_v4 = vpop.f32.mrf.mxu0 }
 0x132   : > { %v8673_v40 = vld [vmem:[#allocation17_spill] sm:$0xff]  ;;  %vm7143_vm0 = vcmp.ne.s16.totalorder %v8675_v37, 0  ;;  %v8678_v63 = vand.u32 15, %v6683_v54  ;;  %5829 = vrcp.f32 %v750_v5  ;;  %v7156_v62 = vadd.f32 %v6337_v48, %v605_v13  ;;  %v2394_v28 = vld [vmem:[#allocation2 + $0xb8] sm:$0xf] }
 0x133   : > { %vm2877_vm15 = vcmp.ne.s16.totalorder %v8673_v40, 0  ;;  %v2396_v33 = vld [vmem:[#allocation2 + $0xc0] sm:$0xf]  ;;  %v7159_v10 = vadd.f32 %v5574_v39, %v6337_v48  ;;  %v7161_v37 = vrot.slane %v3012_v56, 4  ;;  %v7163_v46 = vrot.slane %v2982_v17, 4  ;;  %v8692_v56 = vld [vmem:[#allocation14_spill] sm:$0xff] }
 0x134   : > { %vm7150_vm1 = vcmp.eq.s32.totalorder %v8678_v63, 15  ;;  %8681 = vst [vmem:[#allocation6_spill] sm:$0xff] %v7156_v62  ;;  %5831 = vrcp.f32 %v748_v58  ;;  %v754_v54 = vadd.f32 1.0, %v5822_v60  ;;  %v7167_v63 = vsel %vm7056_vm8, 0, %v1453_v36  ;;  %v2397_v15 = vld [vmem:[#allocation2 + $0xc4] sm:$0xf] }
 0x135   : > { %8682 = vst [vmem:[#allocation17_spill] sm:$0xff] %v7159_v10  ;;  %8683 = vst [vmem:[#allocation12_spill] sm:$0xff] %v7161_v37  ;;  %v7171_v5 = vsel %vm7065_vm10, 0, %v1454_v44  ;;  %5833 = vrcp.f32 %v751_v18  ;;  %v8685_v13 = vand.u32 15, %v6721_v55  ;;  %v7182_v60 = vrot.slane %v2992_v31, 4 }
 0x136   : > { %8684 = vst [vmem:[#allocation69_spill] sm:$0xff] %v7163_v46  ;;  %vm2543_vm4 = vmpackc.low %vm7150_vm1, %vm7150_vm1  ;;  %v2912_v36 = vsel %vm2879_vm11, 0, %v2396_v33  ;;  %5835 = vrcp.f32 %v749_v0  ;;  %v8689_v22 = vor.u32 %v6906_v6, %v6832_v23  ;;  %v7192_v55 = vor.u32 %v2073_v52, %v7087_v25  ;;  %v8696_v33 = vld [vmem:[#allocation15_spill] sm:$0xff]  ;;  %v2395_v46 = vld [vmem:[#allocation2 + $0xbc] sm:$0xf] }
 0x137   : > { %vm7175_vm2 = vcmp.eq.s32.totalorder %v8685_v13, 15  ;;  %8688 = vst [vmem:[#allocation70_spill] sm:$0xff] %v7182_v60  ;;  %v8693_v17 = vsel %vm6056_vm3, %v8692_v56, %v6029_v49  ;;  %v8697_v34 = vsel %vm6056_vm3, %v6062_v11, %v8696_v33  ;;  %v7213_v52 = vmul.f32 -1.442695, %v6991_v51  ;;  %v1451_v13 = vld [vmem:[#allocation2 + $0xb8] sm:$0xf] }
 0x138   : > { %v7189_v44 = vrot.slane %v8689_v22, 4  ;;  %8691 = vst [vmem:[#allocation72_spill] sm:$0xff] %v7192_v55  ;;  %vm7199_vm5 = vcmp.ne.s16.totalorder %v8693_v17, 0  ;;  %vm7208_vm6 = vcmp.ne.s16.totalorder %v8697_v34, 0  ;;  %v7216_v39 = vmul.f32 -1.442695, %v7156_v62  ;;  %vm2545_vm7 = vmpackc.low %vm7175_vm2, %vm7175_vm2  ;;  %v5577_v17 = vpop.f32.mrf.mxu0 }
 0x139   : > { %v7219_v0 = vmul.f32 -1.442695, %v7159_v10  ;;  %v2124_v18 = vshrl.u32 %v7167_v63, 16  ;;  %v2133_v31 = vshrl.u32 %v7171_v5, 16  ;;  %v752_v22 = vadd.f32 1.0, %v5826_v26 }
 0x13a   : > { %8690 = vst [vmem:[#allocation71_spill] sm:$0xff] %v7189_v44  ;;  %v7232_v56 = vsel %vm2543_vm4, 65537, %v8546_v3  ;;  %v2913_v33 = vsel %vm7097_vm12, 0, %v2397_v15  ;;  %v3035_v34 = vshll.u32 %v2912_v36, 16  ;;  %v3039_v38 = vshrl.u32 %v2912_v36, 16  ;;  %v8701_v15 = vld [vmem:[#allocation18_spill] sm:$0xff] }
 0x13b   : > { %5837 = vrcp.f32 %v754_v54  ;;  %v7237_v26 = vor.u32 %v2082_v2, %v7106_v16  ;;  %v1452_v60 = vld [vmem:[#allocation2 + $0xbc] sm:$0xf]  ;;  %v7241_v53 = vmul.f32 %v7069_v19, %v6646_v7  ;;  %v7250_v30 = vsel %vm7117_vm13, 0, %v1451_v13  ;;  %v1457_v9 = vld [vmem:[#allocation2 + $0xd0] sm:$0xf] }
 0x13c   : > { %5839 = vpow2.f32 %v6914_v42  ;;  %v7259_v7 = vsel %vm2545_vm7, 65537, %v8546_v3  ;;  %v7262_v19 = vrot.slane %v2124_v18, 7  ;;  %v2127_v2 = vshll.u32 %v7167_v63, 16  ;;  %v621_v18 = vpop.f32.mrf.mxu0  ;;  %v1458_v47 = vld [vmem:[#allocation2 + $0xd4] sm:$0xf] }
 0x13d   : > { %8700 = vst [vmem:[#allocation14_spill] sm:$0xff] %v7237_v26  ;;  %5841 = vpow2.f32 %v6920_v50  ;;  %v7265_v54 = vrot.slane %v2133_v31, 7  ;;  %v2136_v41 = vshll.u32 %v7171_v5, 16  ;;  %vm2883_vm8 = vcmp.ne.s16.totalorder %v8701_v15, 0  ;;  %v8702_v50 = vld [vmem:[#allocation16_spill] sm:$0xff] }
 0x13e   : > { %v8703_v48 = vsel %vm6084_vm9, %v6094_v24, %v8702_v50  ;;  %v3045_v13 = vshll.u32 %v2913_v33, 16  ;;  %v7280_v63 = vsel %vm7133_vm14, 0, %v1452_v60  ;;  %v2910_v5 = vsel %vm2877_vm15, 0, %v2394_v28  ;;  %v5828_v37 = vpop.eup %5827  ;;  %v7292_v14 = vld [vmem:[%s6320_s9] ss:$0 sm:$0xff]  ;;  %v5578_v27 = vpop.f32.mrf.mxu0 }
 0x13f   : > { %vm7274_vm10 = vcmp.ne.s16.totalorder %v8703_v48, 0  ;;  %v2911_v31 = vsel %vm7143_vm0, 0, %v2395_v46  ;;  %v7286_v35 = vrot.slane %v3035_v34, 5  ;;  %v7288_v42 = vrot.slane %v3039_v38, 4  ;;  %v5830_v38 = vpop.eup %5829 }
 0x140   : > { %v3049_v50 = vshrl.u32 %v2913_v33, 16  ;;  %v2106_v48 = vshrl.u32 %v7250_v30, 16  ;;  %5843 = vrcp.f32 %v752_v22  ;;  %v7295_v60 = vadd.f32 %v7292_v14, %v608_v4 }
 0x141   : > { %8706 = vst [vmem:[#allocation15_spill] sm:$0xff] %v7286_v35  ;;  %v7298_v28 = vadd.f32 %v7292_v14, %v5577_v17  ;;  %v7301_v40 = vadd.f32 %v7292_v14, %v621_v18  ;;  %v2115_v1 = vshrl.u32 %v7280_v63, 16  ;;  %v3015_v46 = vshll.u32 %v2910_v5, 16  ;;  %v5832_v45 = vpop.eup %5831 }
 0x142   : > { %v3019_v33 = vshrl.u32 %v2910_v5, 16  ;;  %v3025_v34 = vshll.u32 %v2911_v31, 16  ;;  %v7306_v4 = vrot.slane %v3045_v13, 5  ;;  %v3029_v26 = vshrl.u32 %v2911_v31, 16  ;;  %v5834_v17 = vpop.eup %5833 }
 0x143   : > { %8707 = vst [vmem:[#allocation18_spill] sm:$0xff] %v7301_v40  ;;  %v3051_v21 = vrot.slane %v3049_v50, 4  ;;  %v7308_v55 = vrot.slane %v2106_v48, 7  ;;  %v7312_v18 = vsel %vm7199_vm5, 0, %v1457_v9  ;;  %v7316_v5 = vsel %vm7208_vm6, 0, %v1458_v47  ;;  %v5836_v12 = vpop.eup %5835 }
 0x144   : > { %8708 = vst [vmem:[#allocation16_spill] sm:$0xff] %v7306_v4  ;;  %v7319_v22 = vor.u32 %v2127_v2, %v7262_v19  ;;  %v7322_v13 = vor.u32 %v2136_v41, %v7265_v54  ;;  %v3042_v31 = vor.u32 %v7288_v42, %v7286_v35  ;;  %v2400_v50 = vld [vmem:[#allocation2 + $0xd0] sm:$0xf]  ;;  %v2401_v48 = vld [vmem:[#allocation2 + $0xd4] sm:$0xf]  ;;  %v7327_v58 = vadd.f32 %v7292_v14, %v5578_v27 }
 0x145   : > { %v7329_v9 = vrot.slane %v2115_v1, 7  ;;  %v7331_v6 = vrot.slane %v3015_v46, 5  ;;  %v3021_v47 = vrot.slane %v3019_v33, 4  ;;  %v7333_v25 = vrot.slane %v3025_v34, 5  ;;  %v8711_v27 = vld [vmem:[#allocation19_spill] sm:$0xff]  ;;  %v8757_v34 = vld [vmem:[#allocation21_spill] sm:$0xff] }
 0x146   : > { %v3031_v2 = vrot.slane %v3029_v26, 4  ;;  %v2160_v57 = vshrl.u32 %v7312_v18, 16  ;;  %v2169_v41 = vshrl.u32 %v7316_v5, 16  ;;  %v841_v16 = vmul.f32 %v5828_v37, %v6655_v61  ;;  %v8715_v26 = vld [vmem:[#allocation8_spill] sm:$0xff]  ;;  %v8719_v61 = vld [vmem:[#allocation22_spill] sm:$0xff] }
 0x147   : > { %8709 = vst [vmem:[#allocation73_spill] sm:$0xff] %v7331_v6  ;;  %8710 = vst [vmem:[#allocation74_spill] sm:$0xff] %v7333_v25  ;;  %v8712_v1 = vsel %vm6056_vm3, %v8711_v27, %v6029_v49  ;;  %v8716_v33 = vsel %vm6056_vm3, %v6062_v11, %v8715_v26  ;;  %vm2881_vm13 = vcmp.ne.s16.totalorder %v8719_v61, 0  ;;  %v846_v37 = vmul.f32 %v5830_v38, %v6669_v59  ;;  %v8720_v27 = vld [vmem:[#allocation42_spill] sm:$0xff] }
 0x148   : > { %v7338_v42 = vpop.eup %5837  ;;  %vm7345_vm11 = vcmp.ne.s16.totalorder %v8712_v1, 0  ;;  %vm7354_vm12 = vcmp.ne.s16.totalorder %v8716_v33, 0  ;;  %v844_v35 = vmul.f32 %v5832_v45, %v6679_v32  ;;  %v847_v1 = vmul.f32 %v5834_v17, %v8720_v27  ;;  %v8722_v45 = vld [vmem:[#allocation20_spill] sm:$0xff] }
 0x149   : > { %v845_v23 = vmul.f32 %v5836_v12, %v8721_v43  ;;  %v5840_v3 = vpop.eup %5839  ;;  %v3052_v44 = vor.u32 %v3051_v21, %v7306_v4  ;;  %v2916_v26 = vsel %vm2883_vm8, 0, %v2400_v50  ;;  %v2917_v33 = vsel %vm7274_vm10, 0, %v2401_v48  ;;  %v8762_v21 = vld [vmem:[#allocation37_spill] sm:$0xff] }
 0x14a   : > { %v5300_v10 = vpack.c.bf16 %v841_v16, %v7241_v53  ;;  %v5842_v62 = vpop.eup %5841  ;;  %v2109_v59 = vshll.u32 %v7250_v30, 16  ;;  %v3022_v32 = vor.u32 %v3021_v47, %v7331_v6  ;;  %v8723_v12 = vsel %vm6084_vm9, %v6094_v24, %v8722_v45  ;;  %v8729_v47 = vld [vmem:[#allocation25_spill] sm:$0xff] }
 0x14b   : > { %vm7376_vm14 = vcmp.ne.s16.totalorder %v8723_v12, 0  ;;  %v5315_v43 = vpack.c.bf16 %v847_v1, %v846_v37  ;;  %v5310_v15 = vpack.c.bf16 %v845_v23, %v844_v35  ;;  %v2118_v36 = vshll.u32 %v7280_v63, 16  ;;  %v8790_v37 = vld [vmem:[#allocation40_spill] sm:$0xff] }
 0x14c   : > { %v3032_v53 = vor.u32 %v3031_v2, %v7333_v25  ;;  %v7382_v16 = vrot.slane %v2160_v57, 7  ;;  %v7384_v30 = vrot.slane %v2169_v41, 7  ;;  %5353 = vst [vmem:[#allocation2 + $0xc8] sm:$0xff] %v5300_v10   ;;  %v7386_v38 = vrot.slane %v3042_v31, 4  ;;  %v8734_v2 = vld [vmem:[#allocation23_spill] sm:$0xff] }
 0x14d   : > { %v3075_v17 = vshll.u32 %v2916_v26, 16  ;;  %v3079_v50 = vshrl.u32 %v2916_v26, 16  ;;  %v3085_v48 = vshll.u32 %v2917_v33, 16  ;;  %5356 = vst [vmem:[#allocation2 + $0xe0] sm:$0xff] %v5315_v43   ;;  %v8730_v23 = vsel %vm6056_vm3, %v8729_v47, %v6029_v49  ;;  %5355 = vst [vmem:[#allocation2 + $0xd8] sm:$0xff] %v5310_v15   ;;  %v7413_v27 = vpop.eup %5843 }
 0x14e   : > { %8726 = vst [vmem:[#allocation19_spill] sm:$0xff] %v7382_v16  ;;  %8727 = vst [vmem:[#allocation8_spill] sm:$0xff] %v7384_v30  ;;  %vm7393_vm15 = vcmp.ne.s16.totalorder %v8730_v23, 0  ;;  %v7397_v57 = vrot.slane %v3052_v44, 4  ;;  %v7400_v10 = vor.u32 %v2109_v59, %v7308_v55  ;;  %v2122_v31 = vrot.slane %v7329_v9, 4 }
 0x14f   : > { %8728 = vst [vmem:[#allocation22_spill] sm:$0xff] %v7386_v38  ;;  %v8735_v41 = vsel %vm6056_vm3, %v6062_v11, %v8734_v2  ;;  %v7415_v44 = vrot.slane %v3022_v32, 4  ;;  %v755_v59 = vadd.f32 1.0, %v5840_v3  ;;  %v7419_v45 = vrot.slane %v3032_v53, 4  ;;  %v8744_v53 = vld [vmem:[#allocation31_spill] sm:$0xff] }
 0x150   : > { %8733 = vst [vmem:[#allocation42_spill] sm:$0xff] %v7397_v57  ;;  %vm7409_vm0 = vcmp.ne.s16.totalorder %v8735_v41, 0  ;;  %v753_v15 = vadd.f32 1.0, %v5842_v62  ;;  %v7423_v47 = vrot.slane %v3075_v17, 5  ;;  %v7425_v23 = vrot.slane %v3079_v50, 4  ;;  %v8774_v57 = vld [vmem:[#allocation46_spill] sm:$0xff] }
 0x151   : > { %8738 = vst [vmem:[#allocation44_spill] sm:$0xff] %v7415_v44  ;;  %8739 = vst [vmem:[#allocation20_spill] sm:$0xff] %v7419_v45  ;;  %v7427_v2 = vrot.slane %v3085_v48, 5  ;;  %v3089_v32 = vshrl.u32 %v2917_v33, 16  ;;  %5845 = vpow2.f32 %v7213_v52  ;;  %v8743_v41 = vshrl.u32 %v7232_v56, 16  ;;  %v8746_v48 = vld [vmem:[#allocation27_spill] sm:$0xff] }
 0x152   : > { %8740 = vst [vmem:[#allocation25_spill] sm:$0xff] %v7423_v47  ;;  %8741 = vst [vmem:[#allocation23_spill] sm:$0xff] %v7425_v23  ;;  %v5039_v3 = vmul.f32 -1.442695, %v7295_v60  ;;  %v8745_v12 = vshrl.u32 %v8744_v53, 16  ;;  %v7438_v62 = vor.u32 %v2118_v36, %v7329_v9  ;;  %vm2887_vm1 = vcmp.ne.s16.totalorder %v8746_v48, 0 }
 0x153   : > { %8742 = vst [vmem:[#allocation75_spill] sm:$0xff] %v7427_v2  ;;  %v7432_v63 = vrot.slane %v8743_v41, 7  ;;  %v1455_v17 = vld [vmem:[#allocation2 + $0xc8] sm:$0xf]  ;;  %v1456_v50 = vld [vmem:[#allocation2 + $0xcc] sm:$0xf]  ;;  %5847 = vrcp.f32 %v755_v59  ;;  %v2130_v9 = vsel %vm6084_vm9, %v2122_v31, %v7319_v22  ;;  %v8758_v61 = vsel %vm6056_vm3, %v6062_v11, %v8757_v34 }
 0x154   : > { %v1886_v26 = vrot.slane %v8745_v12, 4  ;;  %v2398_v43 = vld [vmem:[#allocation2 + $0xc8] sm:$0xf]  ;;  %v8751_v36 = vrot.slane %v7262_v19, 4  ;;  %v7460_v53 = vsel %vm7345_vm11, 0, %v1455_v17  ;;  %5849 = vrcp.f32 %v753_v15 }
 0x155   : > { %v8747_v52 = vld [vmem:[#allocation30_spill] sm:$0xff]  ;;  %v2914_v59 = vsel %vm2881_vm13, 0, %v2398_v43  ;;  %2362 = vst [vmem:[#allocation2 + $0x30] sm:$0xf] %v2130_v9  ;;  %v7468_v22 = vrot.slane %v3089_v32, 4  ;;  %vm7484_vm5 = vcmp.ne.s16.totalorder %v8758_v61, 0  ;;  %5851 = vpow2.f32 %v7216_v39 }
 0x156   : > { %v8748_v33 = vsel %vm6056_vm3, %v8747_v52, %v6029_v49  ;;  %v2139_v12 = vsel %vm6084_vm9, %v8751_v36, %v7322_v13  ;;  %v7464_v52 = vsel %vm7354_vm12, 0, %v1456_v50  ;;  %v1461_v19 = vld [vmem:[#allocation2 + $0xe0] sm:$0xf]  ;;  %v2825_v15 = vshrl.u32 %v7259_v7, 16  ;;  %v8761_v61 = vld [vmem:[#allocation36_spill] sm:$0xff] }
 0x157   : > { %vm7446_vm2 = vcmp.ne.s16.totalorder %v8748_v33, 0  ;;  %v2399_v33 = vld [vmem:[#allocation2 + $0xcc] sm:$0xf]  ;;  %2363 = vst [vmem:[#allocation2 + $0x34] sm:$0xf] %v2139_v12  ;;  %8752 = vst [vmem:[#allocation31_spill] sm:$0xff] %v7468_v22  ;;  %5853 = vpow2.f32 %v7219_v0 }
 0x158   : > { %v8753_v13 = vld [vmem:[#allocation29_spill] sm:$0xff]  ;;  %v2142_v17 = vshrl.u32 %v7460_v53, 16  ;;  %v2915_v50 = vsel %vm7376_vm14, 0, %v2399_v33  ;;  %v3055_v9 = vshll.u32 %v2914_v59, 16  ;;  %v3059_v36 = vshrl.u32 %v2914_v59, 16 }
 0x159   : > { %v8754_v46 = vsel %vm6084_vm9, %v6094_v24, %v8753_v13  ;;  %v1462_v12 = vld [vmem:[#allocation2 + $0xe4] sm:$0xf]  ;;  %v2151_v13 = vshrl.u32 %v7464_v52, 16  ;;  %v3069_v34 = vshrl.u32 %v2915_v50, 16  ;;  %v7498_v39 = vsel %vm7393_vm15, 0, %v1461_v19 }
 0x15a   : > { %vm7475_vm4 = vcmp.ne.s16.totalorder %v8754_v46, 0  ;;  %v3065_v46 = vshll.u32 %v2915_v50, 16  ;;  %vm2885_vm6 = vcmp.ne.s16.totalorder %v8761_v61, 0  ;;  %v2814_v32 = vrot.slane %v7432_v63, 4  ;;  %v8763_v50 = vld [vmem:[#allocation39_spill] sm:$0xff]  ;;  %v8783_v61 = vld [vmem:[#allocation38_spill] sm:$0xff] }
 0x15b   : > { %5855 = vpow2.f32 %v5039_v3  ;;  %v1887_v33 = vor.u32 %v1886_v26, %v8762_v21  ;;  %v7505_v59 = vsel %vm7409_vm0, 0, %v1462_v12  ;;  %v7507_v1 = vrot.slane %v2825_v15, 7  ;;  %v2404_v23 = vld [vmem:[#allocation2 + $0xe0] sm:$0xf]  ;;  %v8765_v26 = vld [vmem:[#allocation35_spill] sm:$0xff] }
 0x15c   : > { %v5044_v0 = vmul.f32 -1.442695, %v7298_v28  ;;  %v7511_v35 = vrot.slane %v2142_v17, 7  ;;  %v7513_v19 = vrot.slane %v3055_v9, 5  ;;  %v3061_v2 = vrot.slane %v3059_v36, 4 }
 0x15d   : > { %v8766_v3 = vsel %vm6084_vm9, %v6094_v24, %v8765_v26  ;;  %v7525_v12 = vrot.slane %v2151_v13, 7  ;;  %v7527_v22 = vrot.slane %v3065_v46, 5  ;;  %v3071_v17 = vrot.slane %v3069_v34, 4  ;;  %v1459_v36 = vld [vmem:[#allocation2 + $0xd8] sm:$0xf] }
 0x15e   : > { %8764 = vst [vmem:[#allocation27_spill] sm:$0xff] %v7513_v19  ;;  %vm7520_vm7 = vcmp.ne.s16.totalorder %v8766_v3, 0  ;;  %v2196_v9 = vshrl.u32 %v7498_v39, 16  ;;  %v2145_v6 = vshll.u32 %v7460_v53, 16  ;;  %v2154_v45 = vshll.u32 %v7464_v52, 16  ;;  %v8775_v52 = vld [vmem:[#allocation48_spill] sm:$0xff] }
 0x15f   : > { %8769 = vst [vmem:[#allocation30_spill] sm:$0xff] %v7527_v22  ;;  %v2205_v26 = vshrl.u32 %v7505_v59, 16  ;;  %v7533_v3 = vrot.slane %v1887_v33, 4  ;;  %v8770_v44 = vshll.u32 %v7312_v18, 16  ;;  %v8772_v13 = vshll.u32 %v7316_v5, 16 }
 0x160   : > { %v2405_v34 = vld [vmem:[#allocation2 + $0xe4] sm:$0xf]  ;;  %v1460_v25 = vld [vmem:[#allocation2 + $0xdc] sm:$0xf]  ;;  %v850_v53 = vmul.f32 %v7338_v42, %v8774_v57  ;;  %v7549_v38 = vmul.f32 %v7413_v27, %v8775_v52  ;;  %v3062_v18 = vor.u32 %v3061_v2, %v7513_v19  ;;  %v7557_v5 = vsel %vm7446_vm2, 0, %v1459_v36 }
 0x161   : > { %v7538_v15 = vor.u32 %v8770_v44, %v7382_v16  ;;  %v7543_v46 = vor.u32 %v8772_v13, %v7384_v30  ;;  %v2920_v44 = vsel %vm2887_vm1, 0, %v2404_v23  ;;  %v5846_v13 = vpop.eup %5845  ;;  %v3072_v42 = vor.u32 %v3071_v17, %v7527_v22  ;;  %v2402_v27 = vld [vmem:[#allocation2 + $0xd8] sm:$0xf]  ;;  %v2403_v33 = vld [vmem:[#allocation2 + $0xdc] sm:$0xf]  ;;  %v8777_v16 = vld [vmem:[#allocation3_spill] sm:$0xff] }
 0x162   : > { %v7561_v57 = vrot.slane %v2196_v9, 7  ;;  %5857 = vpow2.f32 %v5044_v0  ;;  %v5848_v52 = vpop.eup %5847  ;;  %v7564_v2 = vrot.slane %v2205_v26, 7  ;;  %v2921_v23 = vsel %vm7475_vm4, 0, %v2405_v34 }
 0x163   : > { %8771 = vst [vmem:[#allocation29_spill] sm:$0xff] %v7538_v15  ;;  %8773 = vst [vmem:[#allocation21_spill] sm:$0xff] %v7543_v46  ;;  %v7570_v48 = vsel %vm7484_vm5, 0, %v1460_v25  ;;  %v5850_v41 = vpop.eup %5849  ;;  %v3115_v17 = vshll.u32 %v2920_v44, 16  ;;  %v3119_v9 = vshrl.u32 %v2920_v44, 16  ;;  %v2178_v4 = vshrl.u32 %v7557_v5, 16 }
 0x164   : > { %v5852_v0 = vpop.eup %5851  ;;  %v7574_v19 = vrot.slane %v3062_v18, 4  ;;  %v2187_v26 = vshrl.u32 %v7570_v48, 16  ;;  %v7580_v31 = vsel %vm6084_vm9, %v2814_v32, %v8777_v16  ;;  %v8778_v25 = vshll.u32 %v7259_v7, 16 }
 0x165   : > { %v7587_v34 = vrot.slane %v3072_v42, 4  ;;  %v3125_v36 = vshll.u32 %v2921_v23, 16  ;;  %v2918_v18 = vsel %vm2885_vm6, 0, %v2402_v27  ;;  %v5854_v46 = vpop.eup %5853  ;;  %v2147_v15 = vor.u32 %v2145_v6, %v7511_v35 }
 0x166   : > { %8776 = vst [vmem:[#allocation36_spill] sm:$0xff] %v7574_v19  ;;  %v7585_v43 = vor.u32 %v8778_v25, %v7507_v1  ;;  %v3129_v32 = vshrl.u32 %v2921_v23, 16  ;;  %v8780_v19 = vld [vmem:[#allocation52_spill] sm:$0xff]  ;;  %v7595_v7 = vrot.slane %v3115_v17, 5  ;;  %v7597_v25 = vrot.slane %v3119_v9, 4  ;;  %v8791_v17 = vld [vmem:[#allocation53_spill] sm:$0xff] }
 0x167   : > { %8779 = vst [vmem:[#allocation37_spill] sm:$0xff] %v7587_v34  ;;  %v851_v22 = vmul.f32 %v5848_v52, %v8780_v19  ;;  %v7599_v42 = vrot.slane %v2178_v4, 7  ;;  %v2919_v44 = vsel %vm7520_vm7, 0, %v2403_v33  ;;  %v8784_v6 = vsel %vm6056_vm3, %v8783_v61, %v6029_v49 }
 0x168   : > { %v5856_v30 = vpop.eup %5855  ;;  %8781 = vst [vmem:[#allocation39_spill] sm:$0xff] %v7595_v7  ;;  %8782 = vst [vmem:[#allocation35_spill] sm:$0xff] %v7597_v25  ;;  %vm7608_vm8 = vcmp.ne.s16.totalorder %v8784_v6, 0  ;;  %v8787_v19 = vsel %vm6056_vm3, %v6062_v11, %v8762_v21  ;;  %vm2891_vm11 = vcmp.ne.s16.totalorder %v8790_v37, 0  ;;  %v7622_v33 = vrot.slane %v2187_v26, 7  ;;  %v8792_v21 = vld [vmem:[#allocation41_spill] sm:$0xff] }
 0x169   : > { %vm7617_vm10 = vcmp.ne.s16.totalorder %v8787_v19, 0  ;;  %v3095_v52 = vshll.u32 %v2918_v18, 16  ;;  %v5325_v23 = vpack.c.bf16 %v851_v22, %v850_v53  ;;  %v849_v9 = vmul.f32 %v5850_v41, %v8791_v17  ;;  %v624_v17 = vpop.f32.mrf.mxu0  ;;  %v8822_v37 = vld [vmem:[#allocation45_spill] sm:$0xff] }
 0x16a   : > { %v3099_v61 = vshrl.u32 %v2918_v18, 16  ;;  %v758_v6 = vadd.f32 1.0, %v5846_v13  ;;  %v756_v47 = vadd.f32 1.0, %v5852_v0  ;;  %v759_v25 = vadd.f32 1.0, %v5854_v46 }
 0x16b   : > { %v2156_v7 = vor.u32 %v2154_v45, %v7525_v12  ;;  %v3105_v34 = vshll.u32 %v2919_v44, 16  ;;  %5358 = vst [vmem:[#allocation2 + $0xf0] sm:$0xff] %v5325_v23   ;;  %v8793_v19 = vsel %vm6084_vm9, %v6094_v24, %v8792_v21  ;;  %v5320_v22 = vpack.c.bf16 %v849_v9, %v7549_v38  ;;  %v8798_v45 = vld [vmem:[#allocation43_spill] sm:$0xff]  ;;  %v8802_v23 = vld [vmem:[#allocation32_spill] sm:$0xff] }
 0x16c   : > { %vm7631_vm12 = vcmp.ne.s16.totalorder %v8793_v19, 0  ;;  %v757_v53 = vadd.f32 1.0, %v5856_v30  ;;  %v7636_v41 = vrot.slane %v3125_v36, 5  ;;  %v7638_v13 = vrot.slane %v3129_v32, 4  ;;  %v8806_v19 = vld [vmem:[#allocation4_spill] sm:$0xff] }
 0x16d   : > { %v3109_v46 = vshrl.u32 %v2919_v44, 16  ;;  %v8799_v0 = vsel %vm6056_vm3, %v8798_v45, %v6029_v49  ;;  %v8803_v38 = vsel %vm6056_vm3, %v6062_v11, %v8802_v23  ;;  %5859 = vrcp.f32 %v758_v6  ;;  %5357 = vst [vmem:[#allocation2 + $0xe8] sm:$0xff] %v5320_v22   ;;  %v8811_v22 = vld [vmem:[#allocation47_spill] sm:$0xff] }
 0x16e   : > { %8796 = vst [vmem:[#allocation46_spill] sm:$0xff] %v7636_v41  ;;  %8797 = vst [vmem:[#allocation48_spill] sm:$0xff] %v7638_v13  ;;  %vm7645_vm13 = vcmp.ne.s16.totalorder %v8799_v0, 0  ;;  %vm7654_vm14 = vcmp.ne.s16.totalorder %v8803_v38, 0  ;;  %v2181_v36 = vshll.u32 %v7557_v5, 16  ;;  %5861 = vrcp.f32 %v756_v47  ;;  %v8831_v41 = vld [vmem:[#allocation6_spill] sm:$0xff] }
 0x16f   : > { %5863 = vrcp.f32 %v759_v25  ;;  %v5045_v21 = vmul.f32 -1.442695, %v7327_v58  ;;  %v1056_v45 = vadd.s32 240, %v8806_v19  ;;  %v5858_v0 = vpop.eup %5857  ;;  %v7664_v23 = vrot.slane %v3095_v52, 5  ;;  %v5079_v52 = vld [vmem:[%s8382_s3 + $0x4] sm:$0xf] }
 0x170   : > { %v7666_v6 = vrot.slane %v3099_v61, 4  ;;  %v7668_v5 = vrot.slane %v3105_v34, 5  ;;  %5865 = vrcp.f32 %v757_v53  ;;  %v7670_v38 = vrot.slane %v3109_v46, 4  ;;  %5397 = vmatprep.mubr.bf16.mxu1 %v5079_v52 }
 0x171   : > { %8807 = vst [vmem:[#allocation3_spill] sm:$0xff] %v7664_v23  ;;  %vm2889_vm15 = vcmp.ne.s16.totalorder %v8811_v22, 0  ;;  %v5042_v47 = vmul.f32 -1.442695, %v7301_v40  ;;  %v1055_v25 = vadd.s32 232, %v8806_v19  ;;  %v7676_v44 = vadd.f32 %v7292_v14, %v624_v17 }
 0x172   : > { %8808 = vst [vmem:[#allocation52_spill] sm:$0xff] %v7666_v6  ;;  %8809 = vst [vmem:[#allocation38_spill] sm:$0xff] %v7668_v5  ;;  %v8813_v34 = vrot.slane %v8763_v50, 4  ;;  %v7689_v53 = vadd.s32 248, %v8806_v19  ;;  %v1272_v46 = vand.u32 15, %v1056_v45  ;;  %v8814_v9 = vrot.slane %v7265_v54, 4 }
 0x173   : > { %8810 = vst [vmem:[#allocation40_spill] sm:$0xff] %v7670_v38  ;;  %8812 = vst [vmem:[#allocation53_spill] sm:$0xff] %v7676_v44  ;;  %v1465_v17 = vld [vmem:[#allocation2 + $0xf0] sm:$0xf]  ;;  %v1466_v32 = vld [vmem:[#allocation2 + $0xf4] sm:$0xf]  ;;  %5867 = vpow2.f32 %v5045_v21  ;;  %v1893_v30 = vsel %vm6056_vm3, %v7533_v3, %v6029_v49 }
 0x174   : > { %v7686_v61 = vsel %vm6084_vm9, %v8813_v34, %v8777_v16  ;;  %v2148_v14 = vsel %vm6084_vm9, %v8814_v9, %v2147_v15  ;;  %v2408_v38 = vld [vmem:[#allocation2 + $0xf0] sm:$0xf]  ;;  %v8815_v50 = vld [vmem:[#allocation50_spill] sm:$0xff]  ;;  %v8819_v15 = vrot.slane %v7511_v35, 4  ;;  %v8820_v19 = vrot.slane %v7073_v29, 4 }
 0x175   : > { %v8816_v5 = vsel %vm6084_vm9, %v6094_v24, %v8815_v50  ;;  %2364 = vst [vmem:[#allocation2 + $0x38] sm:$0xf] %v2148_v14  ;;  %v2016_v52 = vsel %vm7617_vm10, 0, %v1466_v32  ;;  %v2409_v50 = vld [vmem:[#allocation2 + $0xf4] sm:$0xf]  ;;  %v2924_v35 = vsel %vm2891_vm11, 0, %v2408_v38  ;;  %5869 = vpow2.f32 %v5042_v47 }
 0x176   : > { %vm7700_vm0 = vcmp.ne.s16.totalorder %v8816_v5, 0  ;;  %v2157_v9 = vsel %vm6084_vm9, %v8819_v15, %v2156_v7  ;;  %v2112_v45 = vsel %vm6084_vm9, %v8820_v19, %v7400_v10  ;;  %v2015_v5 = vsel %vm7608_vm8, 0, %v1465_v17  ;;  %v1463_v14 = vld [vmem:[#allocation2 + $0xe8] sm:$0xf]  ;;  %v1464_v32 = vld [vmem:[#allocation2 + $0xec] sm:$0xf] }
 0x177   : > { %v762_v21 = vadd.f32 1.0, %v5858_v0  ;;  %2365 = vst [vmem:[#allocation2 + $0x3c] sm:$0xf] %v2157_v9  ;;  %2360 = vst [vmem:[#allocation2 + $0x28] sm:$0xf] %v2112_v45  ;;  %v2232_v7 = vshrl.u32 %v2015_v5, 16 }
 0x178   : > { %v8821_v29 = vshll.u32 %v7232_v56, 16  ;;  %v1265_v10 = vand.u32 15, %v1055_v25  ;;  %v7729_v27 = vmul.f32 -1.442695, %v7676_v44  ;;  %v2241_v4 = vshrl.u32 %v2016_v52, 16 }
 0x179   : > { %v8823_v38 = vshrl.u32 %v8822_v37, 16  ;;  %v2925_v19 = vsel %vm7631_vm12, 0, %v2409_v50  ;;  %v3155_v56 = vshll.u32 %v2924_v35, 16  ;;  %vm7739_vm1 = vcmp.eq.s32.totalorder %v1272_v46, 0  ;;  %v2406_v18 = vld [vmem:[#allocation2 + $0xe8] sm:$0xf] }
 0x17a   : > { %v7726_v15 = vor.u32 %v8821_v29, %v7432_v63  ;;  %v7743_v25 = vrot.slane %v2232_v7, 7  ;;  %v3159_v45 = vshrl.u32 %v2924_v35, 16  ;;  %v7747_v29 = vsel %vm7645_vm13, 0, %v1463_v14  ;;  %v5860_v7 = vpop.eup %5859  ;;  %v2407_v9 = vld [vmem:[#allocation2 + $0xec] sm:$0xf]  ;;  %vm1603_vm4 = vmpackc.low %vm7739_vm1, %vm7739_vm1 }
 0x17b   : > { %v7734_v0 = vrot.slane %v8823_v38, 4  ;;  %v7751_v37 = vsel %vm7654_vm14, 0, %v1464_v32  ;;  %v8826_v26 = vshll.u32 %v7498_v39, 16  ;;  %v8827_v47 = vshll.u32 %v7505_v59, 16 }
 0x17c   : > { %v7764_v35 = vor.u32 %v2181_v36, %v7599_v42  ;;  %v2235_v14 = vshll.u32 %v2015_v5, 16  ;;  %v7770_v32 = vrot.slane %v2241_v4, 7  ;;  %v3165_v39 = vshll.u32 %v2925_v19, 16  ;;  %v8844_v4 = vld [vmem:[#allocation49_spill] sm:$0xff] }
 0x17d   : > { %v7756_v50 = vor.u32 %v8826_v26, %v7561_v57  ;;  %v7761_v46 = vor.u32 %v8827_v47, %v7564_v2  ;;  %v3169_v38 = vshrl.u32 %v2925_v19, 16  ;;  %v5862_v26 = vpop.eup %5861  ;;  %v2214_v59 = vshrl.u32 %v7747_v29, 16  ;;  %v8830_v19 = vld [vmem:[#allocation57_spill] sm:$0xff] }
 0x17e   : > { %v2223_v47 = vshrl.u32 %v7751_v37, 16  ;;  %5871 = vrcp.f32 %v762_v21  ;;  %v5864_v54 = vpop.eup %5863  ;;  %v2244_v3 = vshll.u32 %v2016_v52, 16  ;;  %v2922_v5 = vsel %vm2889_vm15, 0, %v2406_v18 }
 0x17f   : > { %vm7780_vm2 = vcmp.eq.s32.totalorder %v1265_v10, 15  ;;  %v1927_v17 = vor.u32 %v7734_v0, %v8830_v19  ;;  %v5866_v6 = vpop.eup %5865  ;;  %v7787_v23 = vor.u32 %v2235_v14, %v7743_v25  ;;  %v7790_v36 = vrot.slane %v3155_v56, 5 }
 0x180   : > { %v7792_v21 = vrot.slane %v3159_v45, 4  ;;  %v7795_v22 = vor.u32 %v2244_v3, %v7770_v32  ;;  %v7798_v10 = vrot.slane %v3165_v39, 5  ;;  %v2923_v0 = vsel %vm7700_vm0, 0, %v2407_v9  ;;  %v5868_v13 = vpop.eup %5867  ;;  %v8832_v39 = vld [vmem:[#allocation17_spill] sm:$0xff]  ;;  %vm2547_vm5 = vmpackc.low %vm7780_vm2, %vm7780_vm2 }
 0x181   : > { %v7805_v18 = vrot.slane %v3169_v38, 4  ;;  %v7807_v56 = vrot.slane %v2214_v59, 7  ;;  %v2225_v45 = vrot.slane %v2223_v47, 7  ;;  %v3135_v14 = vshll.u32 %v2922_v5, 16  ;;  %v8833_v59 = vld [vmem:[#allocation71_spill] sm:$0xff] }
 0x182   : > { %v854_v3 = vmul.f32 %v5860_v7, %v6991_v51  ;;  %v852_v52 = vmul.f32 %v5862_v26, %v8831_v41  ;;  %v855_v44 = vmul.f32 %v5864_v54, %v8832_v39  ;;  %v853_v34 = vmul.f32 %v5866_v6, %v7295_v60  ;;  %v3357_v7 = vld [vmem:[%s8382_s3] sm:$0xf] }
 0x183   : > { %v3139_v9 = vshrl.u32 %v2922_v5, 16  ;;  %v3145_v38 = vshll.u32 %v2923_v0, 16  ;;  %v3149_v40 = vshrl.u32 %v2923_v0, 16  ;;  %v8834_v47 = vsel %vm6056_vm3, %v8833_v59, %v6029_v49  ;;  %5415 = vmatprep.mubr.bf16.mxu0 %v3357_v7 }
 0x184   : > { %vm7821_vm6 = vcmp.ne.s16.totalorder %v8834_v47, 0  ;;  %v8837_v60 = vsel %vm6056_vm3, %v6062_v11, %v8830_v19  ;;  %vm2895_vm8 = vcmp.ne.s16.totalorder %v7580_v31, 0  ;;  %v8840_v6 = vmov 0  }
 0x185   : > { %vm7830_vm7 = vcmp.ne.s16.totalorder %v8837_v60, 0  ;;  %v1635_v54 = vsel %vm1603_vm4, 65537, %v8840_v6  ;;  %v5335_v26 = vpack.c.bf16 %v855_v44, %v854_v3  ;;  %v5330_v5 = vpack.c.bf16 %v853_v34, %v852_v52 }
 0x186   : > { %v763_v19 = vadd.f32 1.0, %v5868_v13  ;;  %v1940_v0 = vshll.u32 %v1635_v54, 16  ;;  %v2217_v39 = vshll.u32 %v7747_v29, 16  ;;  %vm7845_vm10 = vcmp.ne.s16.totalorder %v1893_v30, 0  ;;  %v5870_v13 = vpop.eup %5869 }
 0x187   : > { %v1944_v47 = vshrl.u32 %v1635_v54, 16  ;;  %v8843_v63 = vand.u32 15, %v7689_v53  ;;  %v7857_v44 = vsel %vm2547_vm5, 65537, %v8840_v6  ;;  %v2221_v52 = vrot.slane %v7807_v56, 4  ;;  %5360 = vst [vmem:[#allocation2 + $0x100] sm:$0xff] %v5335_v26   ;;  %5359 = vst [vmem:[#allocation2 + $0xf8] sm:$0xff] %v5330_v5  }
 0x188   : > { %v2226_v29 = vshll.u32 %v7751_v37, 16  ;;  %v7861_v30 = vrot.slane %v3135_v14, 5  ;;  %v2843_v53 = vshrl.u32 %v7857_v44, 16  ;;  %v2230_v3 = vrot.slane %v2225_v45, 4 }
 0x189   : > { %vm2453_vm11 = vcmp.eq.s32.totalorder %v8843_v63, 15  ;;  %v8845_v34 = vsel %vm6056_vm3, %v6062_v11, %v8844_v4  ;;  %v7873_v54 = vrot.slane %v1940_v0, 5  ;;  %v1946_v37 = vrot.slane %v1944_v47, 4 }
 0x18a   : > { %vm2549_vm12 = vmpackc.low %vm2453_vm11, %vm2453_vm11  ;;  %vm7869_vm13 = vcmp.ne.s16.totalorder %v8845_v34, 0  ;;  %v7878_v7 = vrot.slane %v3139_v9, 4  ;;  %v7880_v26 = vrot.slane %v3145_v38, 5  ;;  %v7882_v5 = vrot.slane %v3149_v40, 4 }
 0x18b   : > { %v7876_v14 = vsel %vm2549_vm12, 65537, %v8840_v6  ;;  %5873 = vrcp.f32 %v763_v19  ;;  %v2219_v63 = vor.u32 %v2217_v39, %v7807_v56  ;;  %v2228_v4 = vor.u32 %v2226_v29, %v2225_v45  ;;  %v5872_v38 = vpop.eup %5871 }
 0x18c   : > { %v8848_v0 = vsel %vm6084_vm9, %v6094_v24, %v7585_v43  ;;  %v760_v6 = vadd.f32 1.0, %v5870_v13  ;;  %v7894_v9 = vrot.slane %v1927_v17, 4  ;;  %vm2893_vm15 = vcmp.ne.s16.totalorder %v7686_v61, 0 }
 0x18d   : > { %vm7890_vm14 = vcmp.ne.s16.totalorder %v8848_v0, 0  ;;  %v7897_v40 = vrot.slane %v2843_v53, 7  ;;  %v2861_v56 = vshrl.u32 %v7876_v14, 16  ;;  %5875 = vpow2.f32 %v7729_v27 }
 0x18e   : > { %v2846_v45 = vshll.u32 %v7857_v44, 16  ;;  %v8851_v43 = vsel %vm6084_vm9, %v6094_v24, %v7726_v15  ;;  %v1947_v17 = vor.u32 %v1946_v37, %v7873_v54  ;;  %v8854_v39 = vrot.slane %v7308_v55, 4  ;;  %v1469_v37 = vld [vmem:[#allocation2 + $0x100] sm:$0xf]  ;;  %v1470_v0 = vld [vmem:[#allocation2 + $0x104] sm:$0xf] }
 0x18f   : > { %vm7907_vm0 = vcmp.ne.s16.totalorder %v8851_v43, 0  ;;  %v2238_v27 = vsel %vm6084_vm9, %v2230_v3, %v7787_v23  ;;  %v8855_v44 = vrot.slane %v7743_v25, 4  ;;  %v8856_v29 = vshll.u32 %v7570_v48, 16  ;;  %v8858_v25 = vld [vmem:[#allocation7_spill] sm:$0xff]  ;;  %v2412_v43 = vld [vmem:[#allocation2 + $0x100] sm:$0xf] }
 0x190   : > { %v2121_v13 = vsel %vm6084_vm9, %v8854_v39, %v7438_v62  ;;  %v8857_v62 = vrot.slane %v7507_v1, 4  ;;  %2374 = vst [vmem:[#allocation2 + $0x60] sm:$0xf] %v2238_v27  ;;  %v8861_v1 = vld [vmem:[#allocation10_spill] sm:$0xff]  ;;  %v8862_v39 = vld [vmem:[#allocation65_spill] sm:$0xff]  ;;  %v8864_v27 = vrot.slane %v7564_v2, 4  ;;  %v858_v31 = vmul.f32 %v5872_v38, %v7298_v28 }
 0x191   : > { %v2247_v15 = vsel %vm6084_vm9, %v8855_v44, %v7795_v22  ;;  %v7928_v53 = vor.u32 %v8856_v29, %v7622_v33  ;;  %2361 = vst [vmem:[#allocation2 + $0x2c] sm:$0xf] %v2121_v13  ;;  %v8859_v22 = vld [vmem:[#allocation68_spill] sm:$0xff]  ;;  %v8863_v44 = vrot.slane %v8862_v39, 4  ;;  %v2229_v29 = vsel %vm6084_vm9, %v2221_v52, %v2228_v4 }
 0x192   : > { %v7937_v23 = vsel %vm6084_vm9, %v8857_v62, %v8777_v16  ;;  %2375 = vst [vmem:[#allocation2 + $0x64] sm:$0xf] %v2247_v15  ;;  %v8860_v3 = vrot.slane %v8859_v22, 4  ;;  %v2220_v15 = vsel %vm6084_vm9, %v8864_v27, %v2219_v63  ;;  %v2019_v62 = vsel %vm7821_vm6, 0, %v1469_v37  ;;  %2373 = vst [vmem:[#allocation2 + $0x5c] sm:$0xf] %v2229_v29 }
 0x193   : > { %v2103_v13 = vsel %vm6084_vm9, %v8863_v44, %v8861_v1  ;;  %v2928_v22 = vsel %vm2895_vm8, 0, %v2412_v43  ;;  %2372 = vst [vmem:[#allocation2 + $0x58] sm:$0xf] %v2220_v15  ;;  %v2268_v2 = vshrl.u32 %v2019_v62, 16  ;;  %v1467_v63 = vld [vmem:[#allocation2 + $0xf8] sm:$0xf]  ;;  %5877 = vrcp.f32 %v760_v6 }
 0x194   : > { %v2094_v48 = vsel %vm6084_vm9, %v8860_v3, %v8858_v25  ;;  %v2020_v25 = vsel %vm7830_vm7, 0, %v1470_v0  ;;  %v2864_v3 = vshll.u32 %v7876_v14, 16  ;;  %2359 = vst [vmem:[#allocation2 + $0x24] sm:$0xf] %v2103_v13  ;;  %v7964_v1 = vrot.slane %v1947_v17, 4  ;;  %v5613_v20 = vld [vmem:[#allocation2 + $0xf8] sm:$0xff]  }
 0x195   : > { %2358 = vst [vmem:[#allocation2 + $0x20] sm:$0xf] %v2094_v48  ;;  %v2277_v48 = vshrl.u32 %v2020_v25, 16  ;;  %v7966_v52 = vrot.slane %v2861_v56, 7  ;;  %v3195_v51 = vshll.u32 %v2928_v22, 16  ;;  %v3199_v4 = vshrl.u32 %v2928_v22, 16 }
 0x196   : > { %v1468_v37 = vld [vmem:[#allocation2 + $0xfc] sm:$0xf]  ;;  %v2017_v41 = vsel %vm7845_vm10, 0, %v1467_v63  ;;  %v2270_v0 = vrot.slane %v2268_v2, 7  ;;  %v2413_v43 = vld [vmem:[#allocation2 + $0x104] sm:$0xf]  ;;  %v1953_v28 = vsel %vm6056_vm3, %v7964_v1, %v6029_v49  ;;  %v7988_v38 = vor.u32 %v2846_v45, %v7897_v40 }
 0x197   : > { %8865 = vst [vmem:[#allocation41_spill] sm:$0xff] %v7966_v52  ;;  %v7971_v14 = vrot.slane %v2277_v48, 7  ;;  %v2271_v44 = vshll.u32 %v2019_v62, 16  ;;  %v2280_v17 = vshll.u32 %v2020_v25, 16  ;;  %v2018_v56 = vsel %vm7869_vm13, 0, %v1468_v37 }
 0x198   : > { %v2250_v13 = vshrl.u32 %v2017_v41, 16  ;;  %v2410_v27 = vld [vmem:[#allocation2 + $0xf8] sm:$0xf]  ;;  %v2411_v15 = vld [vmem:[#allocation2 + $0xfc] sm:$0xf]  ;;  %v7981_v59 = vor.u32 %v2864_v3, %v7966_v52  ;;  %v7992_v60 = vsel %vm7890_vm14, 0, %v2413_v43  ;;  %v5874_v22 = vpop.eup %5873 }
 0x199   : > { %v7994_v29 = vrot.slane %v3195_v51, 5  ;;  %v7996_v62 = vrot.slane %v3199_v4, 4  ;;  %v2275_v3 = vrot.slane %v2270_v0, 4  ;;  %v2282_v2 = vor.u32 %v2280_v17, %v7971_v14 }
 0x19a   : > { %v2252_v25 = vrot.slane %v2250_v13, 7  ;;  %v2259_v48 = vshrl.u32 %v2018_v56, 16  ;;  %v2926_v63 = vsel %vm2893_vm15, 0, %v2410_v27  ;;  %v2253_v1 = vshll.u32 %v2017_v41, 16  ;;  %v5876_v43 = vpop.eup %5875 }
 0x19b   : > { %v2262_v45 = vshll.u32 %v2018_v56, 16  ;;  %v2927_v47 = vsel %vm7907_vm0, 0, %v2411_v15  ;;  %v3175_v37 = vshll.u32 %v2926_v63, 16  ;;  %v3179_v4 = vshrl.u32 %v2926_v63, 16 }
 0x19c   : > { %v2257_v51 = vrot.slane %v2252_v25, 4  ;;  %v2261_v34 = vrot.slane %v2259_v48, 7  ;;  %v3185_v55 = vshll.u32 %v2927_v47, 16  ;;  %v2255_v13 = vor.u32 %v2253_v1, %v2252_v25 }
 0x19d   : > { %v8003_v6 = vrot.slane %v3175_v37, 5  ;;  %v3189_v39 = vshrl.u32 %v2927_v47, 16  ;;  %v859_v17 = vmul.f32 %v5874_v22, %v7327_v58  ;;  %v3181_v27 = vrot.slane %v3179_v4, 4  ;;  %v8870_v47 = vld [vmem:[#allocation14_spill] sm:$0xff] }
 0x19e   : > { %v2264_v52 = vor.u32 %v2262_v45, %v2261_v34  ;;  %v2266_v61 = vrot.slane %v2261_v34, 4  ;;  %v8006_v41 = vrot.slane %v3185_v55, 5  ;;  %vm1991_vm1 = vcmp.ne.s16.totalorder %v6062_v11, 0 }
 0x19f   : > { %v2273_v19 = vor.u32 %v2271_v44, %v2270_v0  ;;  %v3205_v56 = vshll.u32 %v7992_v60, 16  ;;  %v3191_v15 = vrot.slane %v3189_v39, 4  ;;  %v5345_v48 = vpack.c.bf16 %v859_v17, %v858_v31  ;;  %v8876_v17 = vld [vmem:[#allocation60_spill] sm:$0xff] }
 0x1a0   : > { %v3202_v25 = vor.u32 %v7996_v62, %v7994_v29  ;;  %v3209_v63 = vshrl.u32 %v7992_v60, 16  ;;  %v3182_v1 = vor.u32 %v3181_v27, %v8003_v6  ;;  %v761_v58 = vadd.f32 1.0, %v5876_v43  ;;  %v8867_v60 = vld [vmem:[#allocation72_spill] sm:$0xff]  ;;  %v8868_v62 = vld [vmem:[#allocation55_spill] sm:$0xff]  ;;  %v8035_v37 = vpop.eup %5877 }
 0x1a1   : > { %v3192_v34 = vor.u32 %v3191_v15, %v8006_v41  ;;  %5362 = vst [vmem:[#allocation2 + $0x110] sm:$0xff] %v5345_v48   ;;  %v2274_v55 = vsel %vm6084_vm9, %v2266_v61, %v2273_v19  ;;  %v2283_v0 = vsel %vm6084_vm9, %v2275_v3, %v2282_v2  ;;  %v8866_v39 = vrot.slane %v7770_v32, 4  ;;  %v8871_v3 = vld [vmem:[#allocation9_spill] sm:$0xff]  ;;  %v8878_v19 = vld [vmem:[#allocation64_spill] sm:$0xff]  ;;  %v8879_v15 = vld [vmem:[#allocation54_spill] sm:$0xff] }
 0x1a2   : > { %5879 = vrcp.f32 %v761_v58  ;;  %2378 = vst [vmem:[#allocation2 + $0x70] sm:$0xf] %v2274_v55  ;;  %2379 = vst [vmem:[#allocation2 + $0x74] sm:$0xf] %v2283_v0  ;;  %v2265_v44 = vsel %vm6084_vm9, %v2257_v51, %v2264_v52  ;;  %v8869_v22 = vrot.slane %v8868_v62, 4  ;;  %v8872_v2 = vrot.slane %v8871_v3, 4 }
 0x1a3   : > { %v2256_v31 = vsel %vm6084_vm9, %v8866_v39, %v2255_v13  ;;  %2377 = vst [vmem:[#allocation2 + $0x6c] sm:$0xf] %v2265_v44  ;;  %v8873_v52 = vrot.slane %v7622_v33, 4  ;;  %v8874_v51 = vrot.slane %v7561_v57, 4  ;;  %v8875_v13 = vld [vmem:[#allocation63_spill] sm:$0xff]  ;;  %v8877_v61 = vrot.slane %v8876_v17, 4 }
 0x1a4   : > { %2376 = vst [vmem:[#allocation2 + $0x68] sm:$0xf] %v2256_v31  ;;  %v2076_v45 = vsel %vm6084_vm9, %v8869_v22, %v8867_v60  ;;  %v2085_v32 = vsel %vm6084_vm9, %v8872_v2, %v8870_v47  ;;  %v8880_v48 = vrot.slane %v8879_v15, 4  ;;  %vm8057_vm2 = vcmp.ne.s16.totalorder %v1953_v28, 0  ;;  %v8883_v57 = vld [vmem:[#allocation8_spill] sm:$0xff]  ;;  %v8887_v39 = vld [vmem:[#allocation58_spill] sm:$0xff] }
 0x1a5   : > { %2356 = vst [vmem:[#allocation2 + $0x18] sm:$0xf] %v2076_v45  ;;  %2357 = vst [vmem:[#allocation2 + $0x1c] sm:$0xf] %v2085_v32  ;;  %v2202_v43 = vsel %vm6084_vm9, %v8873_v52, %v7756_v50  ;;  %v2211_v4 = vsel %vm6084_vm9, %v8874_v51, %v7761_v46  ;;  %v2058_v27 = vsel %vm6084_vm9, %v8877_v61, %v8875_v13  ;;  %v8884_v46 = vrot.slane %v8883_v57, 4  ;;  %v8886_v28 = vld [vmem:[#allocation24_spill] sm:$0xff] }
 0x1a6   : > { %v2067_v33 = vsel %vm6084_vm9, %v8880_v48, %v8878_v19  ;;  %2370 = vst [vmem:[#allocation2 + $0x50] sm:$0xf] %v2202_v43  ;;  %2371 = vst [vmem:[#allocation2 + $0x54] sm:$0xf] %v2211_v4  ;;  %v8885_v55 = vrot.slane %v7599_v42, 4  ;;  %v8888_v31 = vrot.slane %v8887_v39, 4 }
 0x1a7   : > { %2354 = vst [vmem:[#allocation2 + $0x10] sm:$0xf] %v2058_v27  ;;  %2355 = vst [vmem:[#allocation2 + $0x14] sm:$0xf] %v2067_v33  ;;  %v2184_v58 = vsel %vm6084_vm9, %v8884_v46, %v7764_v35  ;;  %v8076_v60 = vrot.slane %v3205_v56, 5  ;;  %v8889_v62 = vld [vmem:[#allocation30_spill] sm:$0xff] }
 0x1a8   : > { %v2193_v0 = vsel %vm6084_vm9, %v8885_v55, %v7928_v53  ;;  %v2049_v44 = vsel %vm6084_vm9, %v8888_v31, %v8886_v28  ;;  %2368 = vst [vmem:[#allocation2 + $0x48] sm:$0xf] %v2184_v58  ;;  %v8890_v22 = vld [vmem:[#allocation36_spill] sm:$0xff]  ;;  %v8891_v42 = vld [vmem:[#allocation25_spill] sm:$0xff]  ;;  %v8894_v3 = vrot.slane %v7525_v12, 4  ;;  %v3211_v2 = vrot.slane %v3209_v63, 4 }
 0x1a9   : > { %2369 = vst [vmem:[#allocation2 + $0x4c] sm:$0xf] %v2193_v0  ;;  %2353 = vst [vmem:[#allocation2 + $0xc] sm:$0xf] %v2049_v44  ;;  %v3068_v35 = vsel %vm6056_vm3, %v8890_v22, %v8889_v62  ;;  %v8892_v45 = vld [vmem:[#allocation37_spill] sm:$0xff]  ;;  %v8897_v43 = vld [vmem:[#allocation19_spill] sm:$0xff] }
 0x1aa   : > { %v3078_v53 = vsel %vm6056_vm3, %v8892_v45, %v8891_v42  ;;  %v8893_v47 = vld [vmem:[#allocation29_spill] sm:$0xff]  ;;  %3303 = vst [vmem:[#allocation2 + $0x158] sm:$0xf] %v3068_v35  ;;  %v8898_v51 = vrot.slane %v8897_v43, 4  ;;  %v3203_v13 = vrot.slane %v3202_v25, 4  ;;  %v8899_v61 = vld [vmem:[#allocation16_spill] sm:$0xff] }
 0x1ab   : > { %v2166_v56 = vsel %vm6084_vm9, %v8894_v3, %v8893_v47  ;;  %v8895_v32 = vld [vmem:[#allocation5_spill] sm:$0xff]  ;;  %3304 = vst [vmem:[#allocation2 + $0x15c] sm:$0xf] %v3078_v53  ;;  %v1442_v17 = vld [vmem:[#allocation2 + $0x94] sm:$0x8]  ;;  %v8900_v12 = vld [vmem:[#allocation22_spill] sm:$0xff]  ;;  %v1943_v3 = vsel %vm6056_vm3, %v6062_v11, %v7873_v54 }
 0x1ac   : > { %vm1959_vm4 = vcmp.ne.s16.totalorder %v8895_v32, 0  ;;  %v8896_v52 = vld [vmem:[#allocation21_spill] sm:$0xff]  ;;  %2366 = vst [vmem:[#allocation2 + $0x40] sm:$0xf] %v2166_v56  ;;  %v3048_v27 = vsel %vm6056_vm3, %v8900_v12, %v8899_v61  ;;  %v8901_v63 = vld [vmem:[#allocation27_spill] sm:$0xff]  ;;  %v8902_v19 = vld [vmem:[#allocation42_spill] sm:$0xff]  ;;  %v3208_v25 = vsel %vm6056_vm3, %v3203_v13, %v8076_v60 }
 0x1ad   : > { %v2175_v4 = vsel %vm6084_vm9, %v8898_v51, %v8896_v52  ;;  %v3058_v15 = vsel %vm6056_vm3, %v8902_v19, %v8901_v63  ;;  %v3183_v48 = vrot.slane %v3182_v1, 4  ;;  %v3193_v33 = vrot.slane %v3192_v34, 4  ;;  %v1473_v57 = vld [vmem:[#allocation2 + $0x110] sm:$0xf]  ;;  %v1474_v46 = vld [vmem:[#allocation2 + $0x114] sm:$0xf] }
 0x1ae   : > { %2367 = vst [vmem:[#allocation2 + $0x44] sm:$0xf] %v2175_v4  ;;  %3301 = vst [vmem:[#allocation2 + $0x150] sm:$0xf] %v3048_v27  ;;  %v8903_v58 = vld [vmem:[#allocation74_spill] sm:$0xff]  ;;  %v8904_v55 = vld [vmem:[#allocation44_spill] sm:$0xff]  ;;  %v2849_v52 = vsel %vm6084_vm9, %v6094_v24, %v7988_v38 }
 0x1af   : > { %3302 = vst [vmem:[#allocation2 + $0x154] sm:$0xf] %v3058_v15  ;;  %v3028_v0 = vsel %vm6056_vm3, %v8904_v55, %v8903_v58  ;;  %v8905_v28 = vld [vmem:[#allocation15_spill] sm:$0xff]  ;;  %v8906_v39 = vld [vmem:[#allocation20_spill] sm:$0xff]  ;;  %v8907_v1 = vld [vmem:[#allocation26_spill] sm:$0xff]  ;;  %v8122_v62 = vsel %vm8057_vm2, 0, %v1473_v57  ;;  %v3188_v53 = vsel %vm6056_vm3, %v3183_v48, %v8006_v41  ;;  %v2867_v41 = vsel %vm6084_vm9, %v6094_v24, %v7981_v59  ;;  %v5880_v19 = vpop.eup %5879 }
 0x1b0   : > { %v3038_v31 = vsel %vm6056_vm3, %v8906_v39, %v8905_v28  ;;  %v8908_v34 = vld [vmem:[#allocation11_spill] sm:$0xff]  ;;  %v2024_v22 = vsel %vm1991_vm1, 0, %v1474_v46  ;;  %v8909_v35 = vrot.slane %v7897_v40, 4  ;;  %3317 = vst [vmem:[#allocation2 + $0x190] sm:$0xf] %v3208_v25  ;;  %v2304_v50 = vshrl.u32 %v8122_v62, 16 }
 0x1b1   : > { %v3008_v44 = vsel %vm6056_vm3, %v8908_v34, %v8907_v1  ;;  %3299 = vst [vmem:[#allocation2 + $0x148] sm:$0xf] %v3028_v0  ;;  %3300 = vst [vmem:[#allocation2 + $0x14c] sm:$0xf] %v3038_v31  ;;  %v2313_v47 = vshrl.u32 %v2024_v22, 16  ;;  %v1992_v40 = vsel %vm1959_vm4, 0, %v1442_v17  ;;  %v3198_v11 = vsel %vm6056_vm3, %v3193_v33, %v7994_v29 }
 0x1b2   : > { %v2858_v45 = vsel %vm6084_vm9, %v8909_v35, %v8777_v16  ;;  %3297 = vst [vmem:[#allocation2 + $0x140] sm:$0xf] %v3008_v44  ;;  %3315 = vst [vmem:[#allocation2 + $0x188] sm:$0xf] %v3188_v53  ;;  %v3212_v16 = vor.u32 %v3211_v2, %v8076_v60  ;;  %v2416_v56 = vld [vmem:[#allocation2 + $0x110] sm:$0xf]  ;;  %v3142_v35 = vor.u32 %v7878_v7, %v7861_v30 }
 0x1b3   : > { %v8153_v54 = vrot.slane %v2304_v50, 7  ;;  %v2315_v32 = vrot.slane %v2313_v47, 7  ;;  %v2316_v43 = vshll.u32 %v2024_v22, 16  ;;  %vm2899_vm5 = vcmp.ne.s16.totalorder %v2858_v45, 0  ;;  %3316 = vst [vmem:[#allocation2 + $0x18c] sm:$0xf] %v3198_v11 }
 0x1b4   : > { %v2284_v60 = vrot.slane %v7971_v14, 4  ;;  %v2029_v2 = vshrl.u32 %v1992_v40, 16  ;;  %v8910_v51 = vld [vmem:[#allocation73_spill] sm:$0xff]  ;;  %v8911_v59 = vld [vmem:[#allocation12_spill] sm:$0xff]  ;;  %v8914_v29 = vld [vmem:[#allocation18_spill] sm:$0xff]  ;;  %vm8167_vm6 = vcmp.ne.s16.totalorder %v2867_v41, 0  ;;  %v8926_v53 = vsel %vm6056_vm3, %v7894_v9, %v6029_v49 }
 0x1b5   : > { %v3018_v4 = vsel %vm6056_vm3, %v8911_v59, %v8910_v51  ;;  %v8912_v13 = vld [vmem:[#allocation13_spill] sm:$0xff]  ;;  %v856_v17 = vmul.f32 %v8035_v37, %v8914_v29  ;;  %v2311_v61 = vrot.slane %v8153_v54, 4  ;;  %v2318_v12 = vor.u32 %v2316_v43, %v2315_v32  ;;  %v2417_v27 = vld [vmem:[#allocation2 + $0x114] sm:$0xf]  ;;  %v8918_v57 = vld [vmem:[#allocation70_spill] sm:$0xff] }
 0x1b6   : > { %v8913_v24 = vld [vmem:[#allocation69_spill] sm:$0xff]  ;;  %3298 = vst [vmem:[#allocation2 + $0x144] sm:$0xf] %v3018_v4  ;;  %v2932_v15 = vsel %vm2899_vm5, 0, %v2416_v56  ;;  %v8171_v48 = vrot.slane %v3212_v16, 4  ;;  %v8917_v33 = vld [vmem:[#allocation67_spill] sm:$0xff]  ;;  %v3152_v49 = vor.u32 %v7882_v5, %v7880_v26  ;;  %v8933_v41 = vor.u32 %v7792_v21, %v7790_v36 }
 0x1b7   : > { %v2988_v38 = vsel %vm6056_vm3, %v8913_v24, %v8912_v13  ;;  %v2998_v46 = vsel %vm6056_vm3, %v8918_v57, %v8917_v33  ;;  %v8919_v37 = vld [vmem:[#allocation56_spill] sm:$0xff]  ;;  %v8920_v25 = vld [vmem:[#allocation59_spill] sm:$0xff]  ;;  %v8921_v55 = vld [vmem:[#allocation53_spill] sm:$0xff]  ;;  %v2319_v28 = vsel %vm6084_vm9, %v2311_v61, %v2318_v12  ;;  %v2307_v45 = vshll.u32 %v8122_v62, 16 }
 0x1b8   : > { %3295 = vst [vmem:[#allocation2 + $0x138] sm:$0xf] %v2988_v38  ;;  %v2968_v58 = vsel %vm6056_vm3, %v8920_v25, %v8919_v37  ;;  %v857_v0 = vmul.f32 %v5880_v19, %v8921_v55  ;;  %3296 = vst [vmem:[#allocation2 + $0x13c] sm:$0xf] %v2998_v46  ;;  %v8922_v39 = vld [vmem:[#allocation33_spill] sm:$0xff]  ;;  %v8924_v34 = vld [vmem:[#allocation62_spill] sm:$0xff]  ;;  %v8939_v13 = vor.u32 %v7805_v18, %v7798_v10 }
 0x1b9   : > { %v8923_v31 = vld [vmem:[#allocation61_spill] sm:$0xff]  ;;  %3293 = vst [vmem:[#allocation2 + $0x130] sm:$0xf] %v2968_v58  ;;  %v8925_v44 = vld [vmem:[#allocation28_spill] sm:$0xff]  ;;  %vm8200_vm7 = vcmp.ne.s16.totalorder %v8926_v53, 0  ;;  %vm8204_vm8 = vcmp.ne.s16.totalorder %v1943_v3, 0 }
 0x1ba   : > { %v2978_v1 = vsel %vm6056_vm3, %v8923_v31, %v8922_v39  ;;  %v2948_v22 = vsel %vm6056_vm3, %v8925_v44, %v8924_v34  ;;  %vm2897_vm10 = vcmp.ne.s16.totalorder %v7937_v23, 0  ;;  %v5078_v40 = vrot.slane %v2029_v2, 11  ;;  %2383 = vst [vmem:[#allocation2 + $0x84] sm:$0xf] %v2319_v28  ;;  %v8931_v7 = vld [vmem:[#allocation51_spill] sm:$0xff]  ;;  %v8932_v16 = vld [vmem:[#allocation34_spill] sm:$0xff] }
 0x1bb   : > { %3294 = vst [vmem:[#allocation2 + $0x134] sm:$0xf] %v2978_v1  ;;  %v2958_v56 = vsel %vm6056_vm3, %v8932_v16, %v8931_v7  ;;  %3291 = vst [vmem:[#allocation2 + $0x128] sm:$0xf] %v2948_v22  ;;  %v2933_v9 = vsel %vm8167_vm6, 0, %v2417_v27  ;;  %v5340_v3 = vpack.c.bf16 %v857_v0, %v856_v17  ;;  %v3163_v11 = vrot.slane %v8933_v41, 4 }
 0x1bc   : > { %3292 = vst [vmem:[#allocation2 + $0x12c] sm:$0xf] %v2958_v56  ;;  %v8934_v32 = vld [vmem:[#allocation39_spill] sm:$0xff]  ;;  %v3235_v51 = vshll.u32 %v2932_v15, 16  ;;  %vm8222_vm11 = vcmp.ne.s16.totalorder %v2849_v52, 0  ;;  %v8938_v4 = vld [vmem:[#allocation66_spill] sm:$0xff] }
 0x1bd   : > { %v8935_v43 = vld [vmem:[#allocation35_spill] sm:$0xff]  ;;  %v2040_v5 = vsel %vm6084_vm9, %v5078_v40, %v8938_v4  ;;  %v3173_v24 = vrot.slane %v8939_v13, 4  ;;  %v8940_v38 = vld [vmem:[#allocation46_spill] sm:$0xff]  ;;  %v8941_v21 = vld [vmem:[#allocation48_spill] sm:$0xff]  ;;  %5361 = vst [vmem:[#allocation2 + $0x108] sm:$0xff] %v5340_v3   ;;  %v3168_v52 = vsel %vm6056_vm3, %v3163_v11, %v7798_v10  ;;  %v3239_v27 = vshrl.u32 %v2932_v15, 16 }
 0x1be   : > { %v3122_v2 = vor.u32 %v8935_v43, %v8934_v32  ;;  %v3132_v29 = vor.u32 %v8941_v21, %v8940_v38  ;;  %2352 = vst [vmem:[#allocation2 + $0x8] sm:$0xf] %v2040_v5  ;;  %v8942_v17 = vld [vmem:[#allocation3_spill] sm:$0xff]  ;;  %v8943_v61 = vld [vmem:[#allocation52_spill] sm:$0xff]  ;;  %3313 = vst [vmem:[#allocation2 + $0x180] sm:$0xf] %v3168_v52  ;;  %v2309_v21 = vor.u32 %v2307_v45, %v8153_v54 }
 0x1bf   : > { %v3102_v12 = vor.u32 %v8943_v61, %v8942_v17  ;;  %v3178_v63 = vsel %vm6056_vm3, %v3173_v24, %v8003_v6  ;;  %v3143_v18 = vrot.slane %v3142_v35, 4  ;;  %v8944_v19 = vld [vmem:[#allocation38_spill] sm:$0xff]  ;;  %v8945_v33 = vld [vmem:[#allocation40_spill] sm:$0xff]  ;;  %v3245_v46 = vshll.u32 %v2933_v9, 16  ;;  %v8947_v24 = vld [vmem:[#allocation75_spill] sm:$0xff] }
 0x1c0   : > { %v3112_v57 = vor.u32 %v8945_v33, %v8944_v19  ;;  %3314 = vst [vmem:[#allocation2 + $0x184] sm:$0xf] %v3178_v63  ;;  %v3153_v37 = vrot.slane %v3152_v49, 4  ;;  %v3249_v25 = vshrl.u32 %v2933_v9, 16  ;;  %v3123_v58 = vrot.slane %v3122_v2, 4  ;;  %v5610_v53 = vld [vmem:[#allocation2 + $0xc8] sm:$0xff]  }
 0x1c1   : > { %v3148_v10 = vsel %vm6056_vm3, %v3143_v18, %v7880_v26  ;;  %v8247_v55 = vrot.slane %v3235_v51, 5  ;;  %v3133_v15 = vrot.slane %v3132_v29, 4  ;;  %v8252_v0 = vrot.slane %v3239_v27, 4  ;;  %v5611_v49 = vld [vmem:[#allocation2 + $0x100] sm:$0xff]  }
 0x1c2   : > { %v3158_v6 = vsel %vm6056_vm3, %v3153_v37, %v7790_v36  ;;  %3311 = vst [vmem:[#allocation2 + $0x178] sm:$0xf] %v3148_v10  ;;  %v3128_v28 = vsel %vm6056_vm3, %v3123_v58, %v8940_v38  ;;  %v3103_v39 = vrot.slane %v3102_v12, 4  ;;  %v8257_v31 = vrot.slane %v3245_v46, 5  ;;  %v8946_v36 = vld [vmem:[#allocation23_spill] sm:$0xff]  ;;  %v5612_v14 = vld [vmem:[#allocation2 + $0xc0] sm:$0xff]  }
 0x1c3   : > { %3312 = vst [vmem:[#allocation2 + $0x17c] sm:$0xf] %v3158_v6  ;;  %v3138_v26 = vsel %vm6056_vm3, %v3133_v15, %v7861_v30  ;;  %3309 = vst [vmem:[#allocation2 + $0x170] sm:$0xf] %v3128_v28  ;;  %v3113_v1 = vrot.slane %v3112_v57, 4  ;;  %v3082_v34 = vor.u32 %v8946_v36, %v8891_v42  ;;  %v3251_v3 = vrot.slane %v3249_v25, 4 }
 0x1c4   : > { %v1471_v44 = vld [vmem:[#allocation2 + $0x108] sm:$0xf]  ;;  %v1472_v22 = vld [vmem:[#allocation2 + $0x10c] sm:$0xf]  ;;  %3310 = vst [vmem:[#allocation2 + $0x174] sm:$0xf] %v3138_v26  ;;  %v3108_v40 = vsel %vm6056_vm3, %v3103_v39, %v8944_v19  ;;  %v3242_v46 = vor.u32 %v8252_v0, %v8247_v55 }
 0x1c5   : > { %v2414_v35 = vld [vmem:[#allocation2 + $0x108] sm:$0xf]  ;;  %v2021_v7 = vsel %vm8200_vm7, 0, %v1471_v44  ;;  %v2022_v30 = vsel %vm8204_vm8, 0, %v1472_v22  ;;  %v2415_v16 = vld [vmem:[#allocation2 + $0x10c] sm:$0xf]  ;;  %v3118_v9 = vsel %vm6056_vm3, %v3113_v1, %v8934_v32  ;;  %v3252_v58 = vor.u32 %v3251_v3, %v8257_v31 }
 0x1c6   : > { %v2930_v56 = vsel %vm2897_vm10, 0, %v2414_v35  ;;  %v5609_v42 = vld [vmem:[#allocation2 + $0x108] sm:$0xff]   ;;  %3307 = vst [vmem:[#allocation2 + $0x168] sm:$0xf] %v3108_v40  ;;  %v2286_v41 = vshrl.u32 %v2021_v7, 16  ;;  %v2289_v11 = vshll.u32 %v2021_v7, 16 }
 0x1c7   : > { %v2295_v43 = vshrl.u32 %v2022_v30, 16  ;;  %3308 = vst [vmem:[#allocation2 + $0x16c] sm:$0xf] %v3118_v9  ;;  %v2298_v50 = vshll.u32 %v2022_v30, 16  ;;  %v2931_v47 = vsel %vm8222_vm11, 0, %v2415_v16  ;;  %v3215_v2 = vshll.u32 %v2930_v56, 16  ;;  %5381 = vmatprep.subr.bf16.mxu1 %v5609_v42 }
 0x1c8   : > { %v3219_v51 = vshrl.u32 %v2930_v56, 16  ;;  %v2288_v23 = vrot.slane %v2286_v41, 7  ;;  %v3225_v5 = vshll.u32 %v2931_v47, 16  ;;  %v3229_v13 = vshrl.u32 %v2931_v47, 16  ;;  %5382 = vmatpush3.bf16.xpose.msra.mxu1 %v5610_v53  ;;  %v8948_v32 = vld [vmem:[#allocation31_spill] sm:$0xff]  ;;  %v8949_v28 = vld [vmem:[#allocation41_spill] sm:$0xff] }
 0x1c9   : > { %v2297_v4 = vrot.slane %v2295_v43, 7  ;;  %v3092_v38 = vor.u32 %v8948_v32, %v8947_v24  ;;  %v3217_v29 = vrot.slane %v3215_v2, 5  ;;  %5383 = vmatprep.subr.bf16.mxu1 %v5611_v49  ;;  %v3083_v57 = vrot.slane %v3082_v34, 4  ;;  %v2418_v10 = vld [vmem:[#allocation2 + $0x118] sm:$0x1]  ;;  %v5618_v40 = vld [vmem:[#allocation2 + $0x70] sm:$0xff]  }
 0x1ca   : > { %v3221_v52 = vrot.slane %v3219_v51, 4  ;;  %v2291_v59 = vor.u32 %v2289_v11, %v2288_v23  ;;  %v2293_v61 = vrot.slane %v2288_v23, 4  ;;  %v3227_v18 = vrot.slane %v3225_v5, 5  ;;  %v5615_v35 = vld [vmem:[#allocation2 + $0xb8] sm:$0xff]   ;;  %v5620_v16 = vld [vmem:[#allocation2 + $0x30] sm:$0xff]   ;;  %v5622_v56 = vld [vmem:[#allocation2 + $0x68] sm:$0xff]  }
 0x1cb   : > { %v2300_v12 = vor.u32 %v2298_v50, %v2297_v4  ;;  %v2302_v27 = vrot.slane %v2297_v4, 4  ;;  %v3231_v19 = vrot.slane %v3229_v13, 4  ;;  %v3218_v33 = vsel %vm6056_vm3, %v8171_v48, %v3217_v29  ;;  %v5616_v53 = vld [vmem:[#allocation2 + $0x38] sm:$0xff]   ;;  %v5621_v42 = vld [vmem:[#allocation2 + $0xe8] sm:$0xff]   ;;  %v5626_v3 = vld [vmem:[#allocation2 + $0x60] sm:$0xff]  }
 0x1cc   : > { %v3222_v63 = vor.u32 %v3221_v52, %v3217_v29  ;;  %v2292_v62 = vsel %vm6084_vm9, %v2284_v60, %v2291_v59  ;;  %3318 = vst [vmem:[#allocation2 + $0x194] sm:$0xf] %v3218_v33  ;;  %v3088_v60 = vsel %vm6056_vm3, %v3083_v57, %v8947_v24  ;;  %v3093_v25 = vrot.slane %v3092_v38, 4  ;;  %v5623_v49 = vld [vmem:[#allocation2 + $0xa8] sm:$0xff]   ;;  %v5625_v41 = vld [vmem:[#allocation2 + $0xe0] sm:$0xff]   ;;  %v5630_v43 = vld [vmem:[#allocation2 + $0x58] sm:$0xff]  }
 0x1cd   : > { %v2301_v54 = vsel %vm6084_vm9, %v2293_v61, %v2300_v12  ;;  %v2310_v45 = vsel %vm6084_vm9, %v2302_v27, %v2309_v21  ;;  %v3232_v37 = vor.u32 %v3231_v19, %v3227_v18  ;;  %2380 = vst [vmem:[#allocation2 + $0x78] sm:$0xf] %v2292_v62  ;;  %3305 = vst [vmem:[#allocation2 + $0x160] sm:$0xf] %v3088_v60  ;;  %v2868_v39 = vrot.slane %v8949_v28, 4  ;;  %v5624_v9 = vld [vmem:[#allocation2 + $0x28] sm:$0xff]  }
 0x1ce   : > { %2381 = vst [vmem:[#allocation2 + $0x7c] sm:$0xf] %v2301_v54  ;;  %v3223_v48 = vrot.slane %v3222_v63, 4  ;;  %2382 = vst [vmem:[#allocation2 + $0x80] sm:$0xf] %v2310_v45  ;;  %v3098_v0 = vsel %vm6056_vm3, %v3093_v25, %v8942_v17  ;;  %v3243_v1 = vrot.slane %v3242_v46, 4 }
 0x1cf   : > { %v3233_v15 = vrot.slane %v3232_v37, 4  ;;  %3306 = vst [vmem:[#allocation2 + $0x164] sm:$0xf] %v3098_v0  ;;  %vm2901_vm9 = vcmp.ne.s16.totalorder %v2868_v39, 0  ;;  %v3253_v44 = vrot.slane %v3252_v58, 4  ;;  %v5628_v11 = vld [vmem:[#allocation2 + $0x20] sm:$0xff]  }
 0x1d0   : > { %v3228_v6 = vsel %vm6056_vm3, %v3223_v48, %v3227_v18  ;;  %5384 = vmatpush3.bf16.xpose.msra.mxu1 %v5612_v14  ;;  %v2934_v36 = vsel %vm2901_vm9, 0, %v2418_v10  ;;  %v3248_v34 = vsel %vm6056_vm3, %v3243_v1, %v8257_v31  ;;  %v5619_v31 = vld [vmem:[#allocation2 + $0xb0] sm:$0xff]   ;;  %v5629_v50 = vld [vmem:[#allocation2 + $0xd8] sm:$0xff]   ;;  %v5637_v13 = vld [vmem:[#allocation2 + $0x48] sm:$0xff]  }
 0x1d1   : > { %3319 = vst [vmem:[#allocation2 + $0x198] sm:$0xf] %v3228_v6  ;;  %5385 = vmatprep.subr.bf16.mxu1 %v5613_v20  ;;  %v3238_v26 = vsel %vm6056_vm3, %v3233_v15, %v8247_v55  ;;  %v3255_v17 = vshll.u32 %v2934_v36, 16  ;;  %3321 = vst [vmem:[#allocation2 + $0x1a0] sm:$0xf] %v3248_v34  ;;  %v5617_v55 = vld [vmem:[#allocation2 + $0xf0] sm:$0xff]  }
 0x1d2   : > { %3320 = vst [vmem:[#allocation2 + $0x19c] sm:$0xf] %v3238_v26  ;;  %v5631_v47 = vld [vmem:[#allocation2 + $0x98] sm:$0xff]   ;;  %v5634_v51 = vld [vmem:[#allocation2 + $0x50] sm:$0xff]   ;;  %v5641_v38 = vld [vmem:[#allocation2 + $0x40] sm:$0xff]  }
 0x1d3   : > { %v3257_v7 = vrot.slane %v3255_v17, 5  ;;  %v5632_v2 = vld [vmem:[#allocation2 + $0x18] sm:$0xff]   ;;  %v5633_v23 = vld [vmem:[#allocation2 + $0xd0] sm:$0xff]   ;;  %v5639_v21 = vld [vmem:[#allocation2 + $0x8] sm:$0xff]  }
 0x1d4   : > { %v5635_v4 = vld [vmem:[#allocation2 + $0x90] sm:$0xff]   ;;  %v5640_v32 = vld [vmem:[#allocation2 + $0x158] sm:$0xff]   ;;  %v8317_v29 = vld [vmem:[%s8382_s3 + $0x8] sm:$0xf] }
 0x1d5   : > { %v5614_v22 = vld [vmem:[#allocation2 + $0x78] sm:$0xff]   ;;  %v3258_v30 = vsel %vm6056_vm3, %v3253_v44, %v3257_v7  ;;  %v5636_v5 = vld [vmem:[#allocation2 + $0x10] sm:$0xff]   ;;  %v5882_v52 = vld [vmem:[%s8382_s3 + $0x4] sm:$0xf]  ;;  %vm4900_vm3 = vcmask 0  }
 0x1d6   : > { %5399 = vmatprep.subr.bf16.mxu0 %v5614_v22  ;;  %3322 = vst [vmem:[#allocation2 + $0x1a4] sm:$0xf] %v3258_v30  ;;  %v5642_v59 = vld [vmem:[#allocation2 + $0x190] sm:$0xff]   ;;  %v5643_v61 = vld [vmem:[#allocation2] sm:$0xff]   ;;  %v5645_v63 = vld [vmem:[#allocation2 + $0x188] sm:$0xff]  }
 0x1d7   : > { %5400 = vmatpush3.bf16.xpose.msra.mxu0 %v5616_v53  ;;  %v5644_v12 = vld [vmem:[#allocation2 + $0x150] sm:$0xff]   ;;  %v5646_v27 = vld [vmem:[#allocation2 + $0x80] sm:$0xff]   ;;  %v8326_v18 = vld [vmem:[%s8382_s3 + $0xc] sm:$0xf] }
 0x1d8   : > { %5386 = vmatpush3.bf16.xpose.msra.mxu1 %v5615_v35  ;;  %5401 = vmatprep.subr.bf16.mxu0 %v5618_v40  ;;  %v5648_v19 = vld [vmem:[#allocation2 + $0x40] sm:$0xff]   ;;  %v5647_v62 = vld [vmem:[#allocation2 + $0x148] sm:$0xff]   ;;  %v5650_v54 = vld [vmem:[#allocation2 + $0x78] sm:$0xff]  }
 0x1d9   : > { %5387 = vmatprep.subr.bf16.mxu1 %v5617_v55  ;;  %v5638_v24 = vld [vmem:[#allocation2 + $0x198] sm:$0xff]   ;;  %v5883_v33 = vld [vmem:[%s8382_s3] sm:$0xf]  ;;  %v5654_v37 = vld [vmem:[#allocation2 + $0x70] sm:$0xff]  }
 0x1da   : > { %v5649_v45 = vld [vmem:[#allocation2 + $0x180] sm:$0xff]   ;;  %v5652_v57 = vld [vmem:[#allocation2 + $0x38] sm:$0xff]   ;;  %v5656_v14 = vld [vmem:[#allocation2 + $0x30] sm:$0xff]  }
 0x1db   : > { %v5651_v46 = vld [vmem:[#allocation2 + $0x140] sm:$0xff]   ;;  %v5653_v48 = vld [vmem:[#allocation2 + $0x178] sm:$0xff]   ;;  %v5658_v25 = vld [vmem:[#allocation2 + $0x68] sm:$0xff]  }
 0x1dc   : > { %v5655_v60 = vld [vmem:[#allocation2 + $0x138] sm:$0xff]   ;;  %v5657_v10 = vld [vmem:[#allocation2 + $0x170] sm:$0xff]   ;;  %v5660_v58 = vld [vmem:[#allocation2 + $0x28] sm:$0xff]  }
 0x1dd   : > { %v5659_v20 = vld [vmem:[#allocation2 + $0x130] sm:$0xff]   ;;  %v5662_v6 = vld [vmem:[#allocation2 + $0x60] sm:$0xff]   ;;  %v5661_v15 = vld [vmem:[#allocation2 + $0x168] sm:$0xff]  }
 0x1de   : > { %v5664_v0 = vld [vmem:[#allocation2 + $0x20] sm:$0xff]   ;;  %v5663_v28 = vld [vmem:[#allocation2 + $0x128] sm:$0xff]   ;;  %v5666_v39 = vld [vmem:[#allocation2 + $0x58] sm:$0xff]  }
 0x1df   : > { %5402 = vmatpush3.bf16.xpose.msra.mxu0 %v5620_v16  ;;  %v5665_v26 = vld [vmem:[#allocation2 + $0x160] sm:$0xff]   ;;  %v5668_v36 = vld [vmem:[#allocation2 + $0x18] sm:$0xff]   ;;  %v5669_v34 = vld [vmem:[#allocation2 + $0x50] sm:$0xff]  }
 0x1e0   : > { %5388 = vmatpush3.bf16.xpose.msra.mxu1 %v5619_v31  ;;  %5403 = vmatprep.subr.bf16.mxu0 %v5622_v56  ;;  %v5667_v1 = vld [vmem:[#allocation2 + $0x120] sm:$0xff]   ;;  %v5670_v44 = vld [vmem:[#allocation2 + $0x110] sm:$0xff]   ;;  %v5673_v17 = vld [vmem:[#allocation2 + $0x48] sm:$0xff]  }
 0x1e1   : > { %5389 = vmatprep.subr.bf16.mxu1 %v5621_v42  ;;  %v5671_v22 = vld [vmem:[#allocation2 + $0x10] sm:$0xff]   ;;  %v5674_v40 = vld [vmem:[#allocation2 + $0x108] sm:$0xff]   ;;  %v5678_v30 = vld [vmem:[#allocation2 + $0x1a0] sm:$0xff]  }
 0x1e2   : > { %v5672_v35 = vld [vmem:[#allocation2 + $0xd0] sm:$0xff]   ;;  %v5675_v7 = vld [vmem:[#allocation2 + $0x8] sm:$0xff]   ;;  %v5677_v16 = vld [vmem:[#allocation2 + $0x100] sm:$0xff]  }
 0x1e3   : > { %v8335_v53 = vld [vmem:[%s8382_s3 + $0x10] sm:$0xf]  ;;  %v5676_v55 = vld [vmem:[#allocation2 + $0xc8] sm:$0xff]   ;;  %v8342_v31 = vld [vmem:[%s8382_s3 + $0x14] sm:$0xf] }
 0x1e4   : > { %v5680_v56 = vld [vmem:[#allocation2 + $0x160] sm:$0xff]  }
 0x1e5   : > { %v5679_v42 = vld [vmem:[#allocation2 + $0xc0] sm:$0xff]  }
 0x1e7   : > { %5404 = vmatpush3.bf16.xpose.msra.mxu0 %v5624_v9  ;;  %v5681_v9 = vld [vmem:[#allocation2 + $0xf8] sm:$0xff]  }
 0x1e8   : > { %5390 = vmatpush3.bf16.xpose.msra.mxu1 %v5623_v49  ;;  %5405 = vmatprep.subr.bf16.mxu0 %v5626_v3  ;;  %v5682_v49 = vld [vmem:[#allocation2 + $0x198] sm:$0xff]  }
 0x1e9   : > { %5391 = vmatprep.subr.bf16.mxu1 %v5625_v41  ;;  %v5684_v3 = vld [vmem:[#allocation2 + $0x158] sm:$0xff]  }
 0x1ea   : > { %v5683_v41 = vld [vmem:[#allocation2 + $0xb8] sm:$0xff]  }
 0x1ef   : > { %5406 = vmatpush3.bf16.xpose.msra.mxu0 %v5628_v11  ;;  %v5685_v11 = vld [vmem:[#allocation2 + $0xf0] sm:$0xff]  }
 0x1f0   : > { %5392 = vmatpush3.bf16.xpose.msra.mxu1 %v5627_v8  ;;  %5407 = vmatprep.subr.bf16.mxu0 %v5630_v43  ;;  %v5686_v8 = vld [vmem:[#allocation2 + $0x190] sm:$0xff]  }
 0x1f1   : > { %5393 = vmatprep.subr.bf16.mxu1 %v5629_v50  ;;  %v5688_v43 = vld [vmem:[#allocation2 + $0x150] sm:$0xff]  }
 0x1f2   : > { %v5687_v50 = vld [vmem:[#allocation2 + $0xb0] sm:$0xff]  }
 0x1f7   : > { %5408 = vmatpush3.bf16.xpose.msra.mxu0 %v5632_v2  ;;  %v5689_v2 = vld [vmem:[#allocation2 + $0xe8] sm:$0xff]  }
 0x1f8   : > { %5394 = vmatpush3.bf16.xpose.msra.mxu1 %v5631_v47  ;;  %5409 = vmatprep.subr.bf16.mxu0 %v5634_v51  ;;  %v5690_v47 = vld [vmem:[#allocation2 + $0x188] sm:$0xff]  }
 0x1f9   : > { %5395 = vmatprep.subr.bf16.mxu1 %v5633_v23  ;;  %v5692_v51 = vld [vmem:[#allocation2 + $0x148] sm:$0xff]  }
 0x1fa   : > { %v5691_v23 = vld [vmem:[#allocation2 + $0xa8] sm:$0xff]  }
 0x1ff   : > { %5410 = vmatpush3.bf16.xpose.msra.mxu0 %v5636_v5  ;;  %v5693_v5 = vld [vmem:[#allocation2 + $0xe0] sm:$0xff]  }
 0x200   : > { %5396 = vmatpush3.bf16.xpose.msra.mxu1 %v5635_v4  ;;  %5411 = vmatprep.subr.bf16.mxu0 %v5637_v13  ;;  %v5694_v4 = vld [vmem:[#allocation2 + $0x180] sm:$0xff]  }
 0x201   : > { %5417 = vmatprep.subr.bf16.mxu1 %v5638_v24  ;;  %v5696_v13 = vld [vmem:[#allocation2 + $0x140] sm:$0xff]  }
 0x202   : > { %v5695_v24 = vld [vmem:[#allocation2 + $0xa0] sm:$0xff]  }
 0x207   : > { %5398 = vmatmul.mubr.bf16.vlgmr.msra.gmra.mxu1 %v5882_v52  ;;  %5412 = vmatpush3.bf16.xpose.msra.mxu0 %v5639_v21  ;;  %v5700_v21 = vld [vmem:[#allocation2 + $0x138] sm:$0xff]  }
 0x208   : > { %5418 = vmatpush3.bf16.xpose.msra.mxu1 %v5640_v32  ;;  %5413 = vmatprep.subr.bf16.mxu0 %v5641_v38  ;;  %v5698_v32 = vld [vmem:[#allocation2 + $0x178] sm:$0xff]  }
 0x209   : > { %5419 = vmatprep.subr.bf16.mxu1 %v5642_v59  ;;  %5433 = vmatprep.mubr.bf16.mxu1 %v8317_v29  ;;  %v5697_v38 = vld [vmem:[#allocation2 + $0xd8] sm:$0xff]   ;;  %v5701_v59 = vld [vmem:[#allocation2 + $0x170] sm:$0xff]  }
 0x20a   : > { %v5699_v52 = vld [vmem:[#allocation2 + $0x98] sm:$0xff]  }
 0x20f   : > { %5414 = vmatpush3.bf16.xpose.msra.mxu0 %v5643_v61  ;;  %v5703_v61 = vld [vmem:[#allocation2 + $0x130] sm:$0xff]  }
 0x210   : > { %5420 = vmatpush3.bf16.xpose.msra.mxu1 %v5644_v12  ;;  %5435 = vmatprep.subr.bf16.mxu0 %v5646_v27  ;;  %v5704_v12 = vld [vmem:[#allocation2 + $0x48] sm:$0xff]  }
 0x211   : > { %5421 = vmatprep.subr.bf16.mxu1 %v5645_v63  ;;  %v5705_v27 = vld [vmem:[#allocation2 + $0x168] sm:$0xff]   ;;  %v8349_v63 = vld [vmem:[%s8382_s3 + $0x18] sm:$0xf] }
 0x216   : > { %5416 = vmatmul.mubr.bf16.vlgmr.msra.gmra.mxu0 %v5883_v33  ;;  %v5707_v33 = vld [vmem:[#allocation2 + $0x128] sm:$0xff]  }
 0x217   : > { %5436 = vmatpush3.bf16.xpose.msra.mxu0 %v5648_v19  ;;  %5451 = vmatprep.mubr.bf16.mxu0 %v8326_v18  ;;  %v5710_v19 = vld [vmem:[#allocation2 + $0x118] sm:$0xff]  }
 0x218   : > { %5422 = vmatpush3.bf16.xpose.msra.mxu1 %v5647_v62  ;;  %5437 = vmatprep.subr.bf16.mxu0 %v5650_v54  ;;  %v5708_v62 = vld [vmem:[#allocation2 + $0x40] sm:$0xff]   ;;  %v5709_v54 = vld [vmem:[#allocation2 + $0x78] sm:$0xff]  }
 0x219   : > { %5423 = vmatprep.subr.bf16.mxu1 %v5649_v45  ;;  %v8356_v45 = vld [vmem:[%s8382_s3 + $0x1c] sm:$0xf] }
 0x21f   : > { %5438 = vmatpush3.bf16.xpose.msra.mxu0 %v5652_v57  ;;  %v5712_v57 = vld [vmem:[#allocation2 + $0xd8] sm:$0xff]  }
 0x220   : > { %5424 = vmatpush3.bf16.xpose.msra.mxu1 %v5651_v46  ;;  %5439 = vmatprep.subr.bf16.mxu0 %v5654_v37  ;;  %v5711_v46 = vld [vmem:[#allocation2 + $0x38] sm:$0xff]   ;;  %v5714_v37 = vld [vmem:[#allocation2 + $0x110] sm:$0xff]  }
 0x221   : > { %5425 = vmatprep.subr.bf16.mxu1 %v5653_v48  ;;  %v5713_v48 = vld [vmem:[#allocation2 + $0x70] sm:$0xff]  }
 0x227   : > { %5440 = vmatpush3.bf16.xpose.msra.mxu0 %v5656_v14  ;;  %v5716_v14 = vld [vmem:[#allocation2 + $0xd0] sm:$0xff]  }
 0x228   : > { %5426 = vmatpush3.bf16.xpose.msra.mxu1 %v5655_v60  ;;  %5441 = vmatprep.subr.bf16.mxu0 %v5658_v25  ;;  %v5715_v60 = vld [vmem:[#allocation2 + $0x30] sm:$0xff]   ;;  %v5718_v25 = vld [vmem:[#allocation2 + $0x108] sm:$0xff]  }
 0x229   : > { %5427 = vmatprep.subr.bf16.mxu1 %v5657_v10  ;;  %v5717_v10 = vld [vmem:[#allocation2 + $0x68] sm:$0xff]  }
 0x22f   : > { %5442 = vmatpush3.bf16.xpose.msra.mxu0 %v5660_v58  ;;  %v5720_v58 = vld [vmem:[#allocation2 + $0xc8] sm:$0xff]  }
 0x230   : > { %5428 = vmatpush3.bf16.xpose.msra.mxu1 %v5659_v20  ;;  %5443 = vmatprep.subr.bf16.mxu0 %v5662_v6  ;;  %v5719_v20 = vld [vmem:[#allocation2 + $0x28] sm:$0xff]   ;;  %v5722_v6 = vld [vmem:[#allocation2 + $0x100] sm:$0xff]  }
 0x231   : > { %5429 = vmatprep.subr.bf16.mxu1 %v5661_v15  ;;  %v5721_v15 = vld [vmem:[#allocation2 + $0x60] sm:$0xff]  }
 0x237   : > { %5444 = vmatpush3.bf16.xpose.msra.mxu0 %v5664_v0  ;;  %v5724_v0 = vld [vmem:[#allocation2 + $0xc0] sm:$0xff]  }
 0x238   : > { %5430 = vmatpush3.bf16.xpose.msra.mxu1 %v5663_v28  ;;  %5445 = vmatprep.subr.bf16.mxu0 %v5666_v39  ;;  %v5723_v28 = vld [vmem:[#allocation2 + $0x20] sm:$0xff]   ;;  %v5726_v39 = vld [vmem:[#allocation2 + $0xf8] sm:$0xff]  }
 0x239   : > { %5431 = vmatprep.subr.bf16.mxu1 %v5665_v26  ;;  %v5725_v26 = vld [vmem:[#allocation2 + $0x58] sm:$0xff]  }
 0x23f   : > { %5446 = vmatpush3.bf16.xpose.msra.mxu0 %v5668_v36  ;;  %v5727_v36 = vld [vmem:[#allocation2 + $0x18] sm:$0xff]  }
 0x240   : > { %5432 = vmatpush3.bf16.xpose.msra.mxu1 %v5667_v1  ;;  %5447 = vmatprep.subr.bf16.mxu0 %v5669_v34  ;;  %v5728_v1 = vld [vmem:[#allocation2 + $0xb8] sm:$0xff]   ;;  %v5730_v34 = vld [vmem:[#allocation2 + $0xf0] sm:$0xff]  }
 0x241   : > { %5453 = vmatprep.subr.bf16.mxu1 %v5670_v44  ;;  %v5729_v44 = vld [vmem:[#allocation2 + $0x50] sm:$0xff]  }
 0x247   : > { %5434 = vmatmul.mubr.bf16.vlgmr.msra.gmra.mxu1 %v8317_v29  ;;  %5448 = vmatpush3.bf16.xpose.msra.mxu0 %v5671_v22  ;;  %v5702_v29 = vld [vmem:[#allocation2 + $0x88] sm:$0xff]   ;;  %v5732_v22 = vld [vmem:[#allocation2 + $0xb0] sm:$0xff]  }
 0x248   : > { %5454 = vmatpush3.bf16.xpose.msra.mxu1 %v5672_v35  ;;  %5449 = vmatprep.subr.bf16.mxu0 %v5673_v17  ;;  %v5734_v35 = vld [vmem:[#allocation2 + $0x1a8] sm:$0xff]   ;;  %v5731_v17 = vld [vmem:[#allocation2 + $0x10] sm:$0xff]  }
 0x249   : > { %5455 = vmatprep.subr.bf16.mxu1 %v5674_v40  ;;  %5469 = vmatprep.mubr.bf16.mxu1 %v8335_v53  ;;  %v5735_v40 = vld [vmem:[#allocation2 + $0xa8] sm:$0xff]  }
 0x24f   : > { %5450 = vmatpush3.bf16.xpose.msra.mxu0 %v5675_v7  ;;  %v5736_v7 = vld [vmem:[#allocation2 + $0x168] sm:$0xff]  }
 0x250   : > { %5456 = vmatpush3.bf16.xpose.msra.mxu1 %v5676_v55  ;;  %5471 = vmatprep.subr.bf16.mxu0 %v5678_v30  ;;  %v5737_v55 = vld [vmem:[#allocation2 + $0xe0] sm:$0xff]  }
 0x251   : > { %5457 = vmatprep.subr.bf16.mxu1 %v5677_v16  ;;  %v5214_v30 = vld [vmem:[%s8382_s3 + $0x20] sm:$0xf] }
 0x256   : > { %5452 = vmatmul.mubr.bf16.vlgmr.msra.gmra.mxu0 %v8326_v18  ;;  %v5706_v18 = vld [vmem:[#allocation2 + $0x80] sm:$0xff]  }
 0x257   : > { %5472 = vmatpush3.bf16.xpose.msra.mxu0 %v5680_v56  ;;  %5487 = vmatprep.mubr.bf16.mxu0 %v8342_v31 }
 0x258   : > { %5458 = vmatpush3.bf16.xpose.msra.mxu1 %v5679_v42  ;;  %5473 = vmatprep.subr.bf16.mxu0 %v5682_v49 }
 0x259   : > { %5459 = vmatprep.subr.bf16.mxu1 %v5681_v9  ;;  %v5739_v9 = vld [vmem:[#allocation2 + $0xa0] sm:$0xff]  }
 0x25f   : > { %5474 = vmatpush3.bf16.xpose.msra.mxu0 %v5684_v3  ;;  %v4877_v3 = vld [vmem:[%s8383_s4] sm:$0xff] }
 0x260   : > { %5460 = vmatpush3.bf16.xpose.msra.mxu1 %v5683_v41  ;;  %5475 = vmatprep.subr.bf16.mxu0 %v5686_v8  ;;  %v5740_v41 = vld [vmem:[#allocation2 + $0x160] sm:$0xff]   ;;  %v5741_v8 = vld [vmem:[#allocation2 + $0x198] sm:$0xff]  }
 0x261   : > { %5461 = vmatprep.subr.bf16.mxu1 %v5685_v11  ;;  %4880 = vperm.xlu0 %5590, %v4877_v3   ;;  %v4886_v3 = vld [vmem:[%s278_s15 + $0x8] sm:$0xff] }
 0x267   : > { %5476 = vmatpush3.bf16.xpose.msra.mxu0 %v5688_v43  ;;  %v5742_v43 = vld [vmem:[#allocation2 + $0x158] sm:$0xff]  }
 0x268   : > { %5462 = vmatpush3.bf16.xpose.msra.mxu1 %v5687_v50  ;;  %5477 = vmatprep.subr.bf16.mxu0 %v5690_v47  ;;  %v5743_v47 = vld [vmem:[#allocation2 + $0x190] sm:$0xff]  }
 0x269   : > { %5463 = vmatprep.subr.bf16.mxu1 %v5689_v2 }
 0x26f   : > { %5478 = vmatpush3.bf16.xpose.msra.mxu0 %v5692_v51 }
 0x270   : > { %5464 = vmatpush3.bf16.xpose.msra.mxu1 %v5691_v23  ;;  %5479 = vmatprep.subr.bf16.mxu0 %v5694_v4 }
 0x271   : > { %5465 = vmatprep.subr.bf16.mxu1 %v5693_v5  ;;  %v5744_v5 = vld [vmem:[#allocation2 + $0x150] sm:$0xff]  }
 0x277   : > { %5480 = vmatpush3.bf16.xpose.msra.mxu0 %v5696_v13  ;;  %v5745_v13 = vld [vmem:[#allocation2 + $0x188] sm:$0xff]  }
 0x278   : > { %5466 = vmatpush3.bf16.xpose.msra.mxu1 %v5695_v24  ;;  %5481 = vmatprep.subr.bf16.mxu0 %v5698_v32  ;;  %v5746_v24 = vld [vmem:[#allocation2 + $0x148] sm:$0xff]   ;;  %v5747_v32 = vld [vmem:[#allocation2 + $0x180] sm:$0xff]  }
 0x279   : > { %5467 = vmatprep.subr.bf16.mxu1 %v5697_v38  ;;  %v5748_v38 = vld [vmem:[#allocation2 + $0x140] sm:$0xff]  }
 0x27f   : > { %5482 = vmatpush3.bf16.xpose.msra.mxu0 %v5700_v21  ;;  %v5749_v21 = vld [vmem:[#allocation2 + $0x178] sm:$0xff]  }
 0x280   : > { %5468 = vmatpush3.bf16.xpose.msra.mxu1 %v5699_v52  ;;  %5483 = vmatprep.subr.bf16.mxu0 %v5701_v59  ;;  %v5751_v52 = vld [vmem:[#allocation2 + $0x170] sm:$0xff]  }
 0x281   : > { %5489 = vmatprep.subr.bf16.mxu1 %v5702_v29  ;;  %v5750_v29 = vld [vmem:[#allocation2 + $0x138] sm:$0xff]   ;;  %v5752_v59 = vld [vmem:[#allocation2 + $0x130] sm:$0xff]  }
 0x287   : > { %5470 = vmatmul.mubr.bf16.vlgmr.msra.gmra.mxu1 %v8335_v53  ;;  %5484 = vmatpush3.bf16.xpose.msra.mxu0 %v5703_v61  ;;  %v5733_v53 = vld [vmem:[#allocation2 + $0xe8] sm:$0xff]  }
 0x288   : > { %5490 = vmatpush3.bf16.xpose.msra.mxu1 %v5704_v12  ;;  %5485 = vmatprep.subr.bf16.mxu0 %v5705_v27 }
 0x289   : > { %5491 = vmatprep.subr.bf16.mxu1 %v5706_v18  ;;  %5505 = vmatprep.mubr.bf16.mxu1 %v8349_v63 }
 0x28f   : > { %5486 = vmatpush3.bf16.xpose.msra.mxu0 %v5707_v33 }
 0x290   : > { %5492 = vmatpush3.bf16.xpose.msra.mxu1 %v5708_v62  ;;  %5507 = vmatprep.subr.bf16.mxu0 %v5710_v19 }
 0x291   : > { %5493 = vmatprep.subr.bf16.mxu1 %v5709_v54 }
 0x296   : > { %5488 = vmatmul.mubr.bf16.vlgmr.msra.gmra.mxu0 %v8342_v31  ;;  %v5738_v31 = vld [vmem:[#allocation2 + $0x1a0] sm:$0xff]  }
 0x297   : > { %5508 = vmatpush3.bf16.xpose.msra.mxu0 %v5712_v57  ;;  %5523 = vmatprep.mubr.bf16.mxu0 %v8356_v45 }
 0x298   : > { %5494 = vmatpush3.bf16.xpose.msra.mxu1 %v5711_v46  ;;  %5509 = vmatprep.subr.bf16.mxu0 %v5714_v37 }
 0x299   : > { %5495 = vmatprep.subr.bf16.mxu1 %v5713_v48 }
 0x29f   : > { %5510 = vmatpush3.bf16.xpose.msra.mxu0 %v5716_v14 }
 0x2a0   : > { %5496 = vmatpush3.bf16.xpose.msra.mxu1 %v5715_v60  ;;  %5511 = vmatprep.subr.bf16.mxu0 %v5718_v25 }
 0x2a1   : > { %5497 = vmatprep.subr.bf16.mxu1 %v5717_v10 }
 0x2a7   : > { %5512 = vmatpush3.bf16.xpose.msra.mxu0 %v5720_v58 }
 0x2a8   : > { %5498 = vmatpush3.bf16.xpose.msra.mxu1 %v5719_v20  ;;  %5513 = vmatprep.subr.bf16.mxu0 %v5722_v6 }
 0x2a9   : > { %5499 = vmatprep.subr.bf16.mxu1 %v5721_v15 }
 0x2af   : > { %5514 = vmatpush3.bf16.xpose.msra.mxu0 %v5724_v0 }
 0x2b0   : > { %5500 = vmatpush3.bf16.xpose.msra.mxu1 %v5723_v28  ;;  %5515 = vmatprep.subr.bf16.mxu0 %v5726_v39 }
 0x2b1   : > { %5501 = vmatprep.subr.bf16.mxu1 %v5725_v26 }
 0x2b7   : > { %5516 = vmatpush3.bf16.xpose.msra.mxu0 %v5728_v1 }
 0x2b8   : > { %5502 = vmatpush3.bf16.xpose.msra.mxu1 %v5727_v36  ;;  %5517 = vmatprep.subr.bf16.mxu0 %v5730_v34 }
 0x2b9   : > { %5503 = vmatprep.subr.bf16.mxu1 %v5729_v44 }
 0x2bf   : > { %5518 = vmatpush3.bf16.xpose.msra.mxu0 %v5732_v22 }
 0x2c0   : > { %5504 = vmatpush3.bf16.xpose.msra.mxu1 %v5731_v17  ;;  %5519 = vmatprep.subr.bf16.mxu0 %v5733_v53 }
 0x2c1   : > { %5525 = vmatprep.subr.bf16.mxu1 %v5734_v35 }
 0x2c7   : > { %v3522_v16 = vpop.f32.mrf.mxu1  ;;  %5506 = vmatmul.mubr.bf16.vlgmr.msra.gmra.mxu1 %v8349_v63  ;;  %5520 = vmatpush3.bf16.xpose.msra.mxu0 %v5735_v40 }
 0x2c8   : > { %5526 = vmatpush3.bf16.xpose.msra.mxu1 %v5736_v7  ;;  %5521 = vmatprep.subr.bf16.mxu0 %v5737_v55 }
 0x2c9   : > { %v3524_v56 = vpop.f32.mrf.mxu1  ;;  %5527 = vmatprep.subr.bf16.mxu1 %v5738_v31  ;;  %5541 = vmatprep.mubr.bf16.mxu1 %v5214_v30  ;;  %v4885_v31 = vld [vmem:[%s278_s15] sm:$0xff] }
 0x2cb   : > { %v3526_v42 = vpop.f32.mrf.mxu1 }
 0x2cd   : > { %v3527_v49 = vpop.f32.mrf.mxu1 }
 0x2cf   : > { %5522 = vmatpush3.bf16.xpose.msra.mxu0 %v5739_v9 }
 0x2d0   : > { %5528 = vmatpush3.bf16.xpose.msra.mxu1 %v5740_v41 }
 0x2d1   : > { %5529 = vmatprep.subr.bf16.mxu1 %v5741_v8 }
 0x2d6   : > { %v3659_v11 = vpop.f32.mrf.mxu0  ;;  %5524 = vmatmul.mubr.bf16.vlgmr.msra.gmra.mxu0 %v8356_v45 }
 0x2d7   : > { %v3660_v50 = vadd.f32 %v3659_v11, %v3522_v16 }
 0x2d8   : > { %5530 = vmatpush3.bf16.xpose.msra.mxu1 %v5742_v43  ;;  %v3661_v2 = vpop.f32.mrf.mxu0 }
 0x2d9   : > { %v3662_v51 = vadd.f32 %v3661_v2, %v3524_v56  ;;  %5531 = vmatprep.subr.bf16.mxu1 %v5743_v47 }
 0x2da   : > { %v3663_v23 = vpop.f32.mrf.mxu0 }
 0x2dc   : > { %v3664_v4 = vpop.f32.mrf.mxu0  ;;  %v4881_v55 = vpop.permute.xlu0 %4880 }
 0x2e0   : > { %5532 = vmatpush3.bf16.xpose.msra.mxu1 %v5744_v5 }
 0x2e1   : > { %5533 = vmatprep.subr.bf16.mxu1 %v5745_v13 }
 0x2e8   : > { %5534 = vmatpush3.bf16.xpose.msra.mxu1 %v5746_v24 }
 0x2e9   : > { %5535 = vmatprep.subr.bf16.mxu1 %v5747_v32 }
 0x2f0   : > { %5536 = vmatpush3.bf16.xpose.msra.mxu1 %v5748_v38 }
 0x2f1   : > { %5537 = vmatprep.subr.bf16.mxu1 %v5749_v21 }
 0x2f8   : > { %5538 = vmatpush3.bf16.xpose.msra.mxu1 %v5750_v29 }
 0x2f9   : > { %5539 = vmatprep.subr.bf16.mxu1 %v5751_v52 }
 0x300   : > { %5540 = vmatpush3.bf16.xpose.msra.mxu1 %v5752_v59 }
 0x307   : > { %v3830_v61 = vpop.f32.mrf.mxu1  ;;  %5542 = vmatmul.mubr.bf16.vlgmr.msra.gmra.mxu1 %v5214_v30 }
 0x308   : > { %v3837_v12 = vadd.f32 %v3830_v61, %v3660_v50 }
 0x309   : > { %v3832_v27 = vpop.f32.mrf.mxu1 }
 0x30a   : > { %v3838_v63 = vadd.f32 %v3832_v27, %v3662_v51 }
 0x30b   : > { %v3834_v18 = vpop.f32.mrf.mxu1 }
 0x30d   : > { %v3835_v19 = vpop.f32.mrf.mxu1 }
 0x316   : > { %v4003_v33 = vpop.f32.mrf.mxu0 }
 0x317   : > { %v4010_v62 = vadd.f32 %v4003_v33, %v3837_v12 }
 0x318   : > { %v4005_v54 = vpop.f32.mrf.mxu0 }
 0x319   : > { %v4011_v45 = vadd.f32 %v4005_v54, %v3838_v63 }
 0x31a   : > { %v4007_v57 = vpop.f32.mrf.mxu0 }
 0x31c   : > { %v4008_v46 = vpop.f32.mrf.mxu0 }
 0x347   : > { %v4176_v37 = vpop.f32.mrf.mxu1 }
 0x348   : > { %v4183_v48 = vadd.f32 %v4176_v37, %v4010_v62 }
 0x349   : > { %v4178_v14 = vpop.f32.mrf.mxu1 }
 0x34a   : > { %v4184_v60 = vadd.f32 %v4178_v14, %v4011_v45 }
 0x34b   : > { %v4180_v25 = vpop.f32.mrf.mxu1 }
 0x34d   : > { %v4181_v10 = vpop.f32.mrf.mxu1 }
 0x356   : > { %v4349_v58 = vpop.f32.mrf.mxu0 }
 0x357   : > { %v4356_v20 = vadd.f32 %v4349_v58, %v4183_v48 }
 0x358   : > { %v4351_v6 = vpop.f32.mrf.mxu0 }
 0x359   : > { %v4357_v15 = vadd.f32 %v4351_v6, %v4184_v60 }
 0x35a   : > { %v4353_v0 = vpop.f32.mrf.mxu0 }
 0x35c   : > { %v4354_v28 = vpop.f32.mrf.mxu0 }
 0x387   : > { %v4522_v39 = vpop.f32.mrf.mxu1 }
 0x388   : > { %v4529_v17 = vadd.f32 %v4522_v39, %v4356_v20 }
 0x389   : > { %v4524_v26 = vpop.f32.mrf.mxu1 }
 0x38a   : > { %v4530_v53 = vadd.f32 %v4524_v26, %v4357_v15 }
 0x38b   : > { %v4526_v1 = vpop.f32.mrf.mxu1 }
 0x38d   : > { %v4527_v36 = vpop.f32.mrf.mxu1 }
 0x396   : > { %v4695_v34 = vpop.f32.mrf.mxu0 }
 0x397   : > { %v4702_v40 = vadd.f32 %v4695_v34, %v4529_v17 }
 0x398   : > { %v4697_v44 = vpop.f32.mrf.mxu0 }
 0x399   : > { %v4703_v30 = vadd.f32 %v4697_v44, %v4530_v53 }
 0x39a   : > { %v4699_v22 = vpop.f32.mrf.mxu0 }
 0x39c   : > { %v4700_v35 = vpop.f32.mrf.mxu0 }
 0x3c7   : > { %v4868_v7 = vpop.f32.mrf.mxu1 }
 0x3c8   : > { %v4875_v16 = vadd.f32 %v4868_v7, %v4702_v40 }
 0x3c9   : > { %v4870_v56 = vpop.f32.mrf.mxu1 }
 0x3ca   : > { %v4883_v42 = vadd.f32 %v4881_v55, %v4875_v16  ;;  %v4876_v49 = vadd.f32 %v4870_v56, %v4703_v30 }
 0x3cb   : > { %v4872_v9 = vpop.f32.mrf.mxu1 }
 0x3cc   : > { %v4887_v41 = vsub.f32 %v4883_v42, %v4885_v31  ;;  %v4884_v8 = vadd.f32 %v4881_v55, %v4876_v49 }
 0x3cd   : > { %v4873_v11 = vpop.f32.mrf.mxu1 }
 0x3ce   : > { %v4888_v43 = vsub.f32 %v4884_v8, %v4886_v3  ;;  %v4889_v50 = vmul.f32 %v4887_v41, %v4887_v41 }
 0x3d0   : > { %v4890_v47 = vmul.f32 %v4888_v43, %v4888_v43 }
 0x3d2   : > { %v4891_v2 = vadd.f32 %v4890_v47, %v4889_v50 }
 0x3d4   : > { %4892 = vadd.xlane.f32.xlu0 %v4891_v2 }
 0x45d   : > { %v4893_v51 = vpop.xlane.xlu0 %4892 }
 0x45e   : > { %v4894_v23 = vrot.slane %v4893_v51, 4 }
 0x460   : > { %v4895_v4 = vadd.f32 %v4894_v23, %v4893_v51 }
 0x462   : > { %v4896_v5 = vrot.slane %v4895_v4, 2 }
 0x464   : > { %v4897_v13 = vadd.f32 %v4896_v5, %v4895_v4 }
 0x466   : > { %v4898_v24 = vrot.slane %v4897_v13, 1 }
 0x468   : > { %v4899_v32 = vadd.f32 %v4898_v24, %v4897_v13 }
 0x46a   : > { %4901 = vst.msk [vmem:[%s281_s18] sm:$0x1] %vm4900_vm3, %v4899_v32 }
 0x46b PF: > { %s16_s21 = sadd.s32 1, %s5890_s21  }
 0x46c   : > { %p13_p4 = scmp.ge.s32.totalorder %s16_s21, 4  }
 0x46e   :  { %15 = sbr.rel (!%p13_p4) target bundleno = 1 (0x1), region = 90 }

</bundles_post_ra>
